<compile_context>
chip_gen: v6e
topology: v6e:2x2x1
jax: 0.10.0
libtpu: 0.0.40
codegen_flags: <defaults>
</compile_context>

<pallas_src>
import functools
import math

import jax
import jax.numpy as jnp
from jax.experimental import pallas as pl
from jax.experimental.pallas import tpu as pltpu


def _default_vmem_limit():
    """Generation-dependent scoped-VMEM cap: ~3/4 of physical VMEM."""
    try:
        info = pltpu.get_tpu_info()
        cap = None
        for name in ("vmem_capacity_bytes", "vmem_size_bytes", "vmem_bytes"):
            cap = getattr(info, name, None)
            if cap:
                break
        if cap:
            return int(min(cap * 3 // 4, 100 * 1024 * 1024))
    except Exception:
        pass
    return 48 * 1024 * 1024  # safe fallback (fits under v7x's 64 MiB)


_VMEM_LIMIT = _default_vmem_limit()


def _cparams(sem):
    return pltpu.CompilerParams(dimension_semantics=sem, vmem_limit_bytes=_VMEM_LIMIT)


def _rup(n, m):
    return ((n + m - 1) // m) * m


def _tile(dim, tile, unit):
    """Pick (padded_dim, tile) such that padded_dim % tile == 0 and tile % unit == 0."""
    tile = max(unit, (tile // unit) * unit)
    if dim <= tile:
        p = _rup(dim, unit)
        return p, p
    return _rup(dim, tile), tile


def _pad_to(x, shape):
    pads = [(0, int(s) - int(d)) for d, s in zip(x.shape, shape)]
    if any(p[1] > 0 for p in pads):
        x = jnp.pad(x, pads)
    return x


def _act(y, act):
    if act == "relu":
        return jnp.maximum(y, 0.0)
    if act == "gelu2":
        # GELU2(x) = x * sigmoid(1.702 x)
        return y * (1.0 / (1.0 + jnp.exp(-1.702 * y)))
    return y


# ----------------------------------------------------------------------------
# Tiled linear kernels (bf16 operands, f32 accumulator in VMEM scratch)
# ----------------------------------------------------------------------------
def _matmul_kernel(x_ref, w_ref, b_ref, o_ref, acc_ref, *, act):
    @pl.when(pl.program_id(2) == 0)
    def _():
        acc_ref[...] = jnp.zeros_like(acc_ref)

    acc_ref[...] += jnp.dot(x_ref[...], w_ref[...],
                            preferred_element_type=jnp.float32)

    @pl.when(pl.program_id(2) == pl.num_programs(2) - 1)
    def _():
        y = _act(acc_ref[...] + b_ref[...].astype(jnp.float32), act)
        o_ref[...] = y.astype(o_ref.dtype)


def _matmul_resid_kernel(x_ref, w_ref, b_ref, r_ref, m_ref, o_ref, acc_ref, *, act):
    @pl.when(pl.program_id(2) == 0)
    def _():
        acc_ref[...] = jnp.zeros_like(acc_ref)

    acc_ref[...] += jnp.dot(x_ref[...], w_ref[...],
                            preferred_element_type=jnp.float32)

    @pl.when(pl.program_id(2) == pl.num_programs(2) - 1)
    def _():
        y = _act(acc_ref[...] + b_ref[...].astype(jnp.float32), act)
        # out = (resid + y) zeroed at masked rows (m == 1)
        y = (r_ref[...].astype(jnp.float32) + y) * (1.0 - m_ref[...])
        o_ref[...] = y.astype(o_ref.dtype)


def linear(x2d, w, b=None, act="none", resid=None, row_mask=None,
           out_dtype=jnp.bfloat16, tm=512, tn=512, tk=1024):
    """y = act(x2d @ w + b) [optionally fused: (resid + y) * (1 - row_mask)].
    x2d: (M, K); w: (K, N); b: (N,); resid: (M, N); row_mask: (M, 1) in {0,1}."""
    M, K = x2d.shape
    K2, N = w.shape
    assert K == K2
    Mp, tm = _tile(M, tm, 8)
    Np, tn = _tile(N, tn, 128)
    Kp, tk = _tile(K, tk, 128)

    x_p = _pad_to(x2d, (Mp, Kp)).astype(jnp.bfloat16)
    w_p = _pad_to(w, (Kp, Np)).astype(jnp.bfloat16)
    b_arr = b if b is not None else jnp.zeros((N,), jnp.float32)
    b_p = _pad_to(b_arr.astype(jnp.float32).reshape(1, N), (1, Np))

    in_specs = [
        pl.BlockSpec((tm, tk), lambda i, j, k: (i, k)),
        pl.BlockSpec((tk, tn), lambda i, j, k: (k, j)),
        pl.BlockSpec((1, tn), lambda i, j, k: (0, j)),
    ]
    args = [x_p, w_p, b_p]
    if resid is not None:
        r_p = _pad_to(resid, (Mp, Np)).astype(jnp.bfloat16)
        m_p = _pad_to(row_mask.astype(jnp.float32), (Mp, 1))
        in_specs += [pl.BlockSpec((tm, tn), lambda i, j, k: (i, j)),
                     pl.BlockSpec((tm, 1), lambda i, j, k: (i, 0))]
        args += [r_p, m_p]
        kern = functools.partial(_matmul_resid_kernel, act=act)
    else:
        kern = functools.partial(_matmul_kernel, act=act)

    out = pl.pallas_call(
        kern,
        out_shape=jax.ShapeDtypeStruct((Mp, Np), out_dtype),
        grid=(Mp // tm, Np // tn, Kp // tk),
        in_specs=in_specs,
        out_specs=pl.BlockSpec((tm, tn), lambda i, j, k: (i, j)),
        scratch_shapes=[pltpu.VMEM((tm, tn), jnp.float32)],
        compiler_params=_cparams(("parallel", "parallel", "arbitrary")),
    )(*args)
    return out[:M, :N]


# ----------------------------------------------------------------------------
# Fused LayerNorm(+modulation) -> matmul kernel.
# LN is computed ONCE per batch element (first N tile) into a VMEM scratch and
# reused for every N tile; K = D kept whole, N tiled (large tn).
# ----------------------------------------------------------------------------
def _ln_matmul_kernel(x_ref, mul_ref, add_ref, w_ref, b_ref, o_ref, xn_ref, *, act):
    @pl.when(pl.program_id(1) == 0)
    def _():
        x = x_ref[0].astype(jnp.float32)                      # (T, D)
        mu = jnp.mean(x, axis=-1, keepdims=True)
        var = jnp.mean(jnp.square(x - mu), axis=-1, keepdims=True)
        xn = (x - mu) * jax.lax.rsqrt(var + 1e-5)
        xn = xn * mul_ref[0] + add_ref[0]                     # (T,D)*(1,D)+(1,D)
        xn_ref[...] = xn.astype(xn_ref.dtype)

    y = jnp.dot(xn_ref[...], w_ref[...], preferred_element_type=jnp.float32)
    y = _act(y + b_ref[...].astype(jnp.float32), act)
    o_ref[0] = y.astype(o_ref.dtype)


def ln_linear(x, mul, add, w, b, act="none", out_dtype=jnp.bfloat16, tn=1024):
    """y = act((LN_noaffine(x) * mul + add) @ w + b);  x: (B,T,D); mul/add: (B,1,D)."""
    B, T, D = x.shape
    N = w.shape[1]
    Np, tn = _tile(N, tn, 128)
    w_p = _pad_to(w, (D, Np)).astype(jnp.bfloat16)
    b_p = _pad_to(b.astype(jnp.float32).reshape(1, N), (1, Np))
    out = pl.pallas_call(
        functools.partial(_ln_matmul_kernel, act=act),
        out_shape=jax.ShapeDtypeStruct((B, T, Np), out_dtype),
        grid=(B, Np // tn),
        in_specs=[
            pl.BlockSpec((1, T, D), lambda bb, n: (bb, 0, 0)),
            pl.BlockSpec((1, 1, D), lambda bb, n: (bb, 0, 0)),
            pl.BlockSpec((1, 1, D), lambda bb, n: (bb, 0, 0)),
            pl.BlockSpec((D, tn), lambda bb, n: (0, n)),
            pl.BlockSpec((1, tn), lambda bb, n: (0, n)),
        ],
        out_specs=pl.BlockSpec((1, T, tn), lambda bb, n: (bb, 0, n)),
        scratch_shapes=[pltpu.VMEM((T, D), jnp.bfloat16)],
        compiler_params=_cparams(("parallel", "arbitrary")),
    )(x.astype(jnp.bfloat16), mul.astype(jnp.float32), add.astype(jnp.float32), w_p, b_p)
    return out[..., :N]


# ----------------------------------------------------------------------------
# Multi-head attention with fused proj / mask / residual.
# Softmax scale is pre-folded into the Q projection weights (prepare_params);
# per-head outputs are concatenated and projected with a single (Tq,D)@(D,D) matmul.
# Grid = (B, T/tq): the query-block axis gives a second parallel axis (v7x megacore).
# ----------------------------------------------------------------------------
def _attn_core(mq_ref, mk_ref, q_ref, k_ref, v_ref, pw_ref, pb_ref, r_ref, o_ref, n_head):
    kbias = None
    if mk_ref is not None:
        kbias = mk_ref[0] * (-1e30)                           # (1, Tk), finite => no NaN
    ohs = []
    for h in range(n_head):
        qh = q_ref[0, h]                                      # (Tq, hd) bf16 (scale folded)
        s = jax.lax.dot_general(qh, k_ref[0, h], (((1,), (1,)), ((), ())),
                                preferred_element_type=jnp.float32)   # (Tq, Tk)
        if kbias is not None:
            s = s + kbias
        s = s - jnp.max(s, axis=-1, keepdims=True)
        p = jnp.exp(s)
        p = p * pl.reciprocal(jnp.sum(p, axis=-1, keepdims=True), approx=True)
        oh = jnp.dot(p.astype(jnp.bfloat16), v_ref[0, h],
                     preferred_element_type=jnp.float32)              # (Tq, hd)
        ohs.append(oh.astype(jnp.bfloat16))
    y = jnp.concatenate(ohs, axis=-1)                         # (Tq, D) bf16 staging
    y = jnp.dot(y, pw_ref[...], preferred_element_type=jnp.float32)   # one K=D projection
    y = y + pb_ref[...].astype(jnp.float32)
    y = y * (1.0 - mq_ref[0])                                 # zero masked query rows
    o_ref[0] = (r_ref[0].astype(jnp.float32) + y).astype(o_ref.dtype)


def _attn_self_kernel(mq_ref, mk_ref, q_ref, k_ref, v_ref, pw_ref, pb_ref, r_ref, o_ref,
                      *, n_head):
    _attn_core(mq_ref, mk_ref, q_ref, k_ref, v_ref, pw_ref, pb_ref, r_ref, o_ref, n_head)


def _attn_cross_kernel(mq_ref, q_ref, k_ref, v_ref, pw_ref, pb_ref, r_ref, o_ref,
                       *, n_head):
    _attn_core(mq_ref, None, q_ref, k_ref, v_ref, pw_ref, pb_ref, r_ref, o_ref, n_head)


def mha_proj_residual(q, k, v, proj_w, proj_b, x_resid, mask_q, mask_k, tq=256):
    """x_resid + mask_q_zero( softmax(QK^T + key_bias) V @ proj_w + proj_b ).
    q: (B,H,T,hd) (scale pre-folded into q); k,v: (B,H,Tk,hd);
    mask_q: (B,T,1); mask_k: (B,1,Tk) or None."""
    B, H, T, hd = q.shape
    Tk = k.shape[2]
    D = H * hd
    Tp, tq = _tile(T, tq, 8)

    q_p = _pad_to(q, (B, H, Tp, hd)).astype(jnp.bfloat16)
    mq_p = _pad_to(mask_q.astype(jnp.float32), (B, Tp, 1))
    r_p = _pad_to(x_resid, (B, Tp, D)).astype(jnp.bfloat16)
    pw = proj_w.astype(jnp.bfloat16)                          # (D, D)
    pb = proj_b.astype(jnp.float32).reshape(1, D)

    in_specs = [pl.BlockSpec((1, tq, 1), lambda b, qi: (b, qi, 0))]
    args = [mq_p]
    if mask_k is not None:
        in_specs.append(pl.BlockSpec((1, 1, Tk), lambda b, qi: (b, 0, 0)))
        args.append(mask_k.astype(jnp.float32))
        kern = functools.partial(_attn_self_kernel, n_head=H)
    else:
        kern = functools.partial(_attn_cross_kernel, n_head=H)
    in_specs += [
        pl.BlockSpec((1, H, tq, hd), lambda b, qi: (b, 0, qi, 0)),
        pl.BlockSpec((1, H, Tk, hd), lambda b, qi: (b, 0, 0, 0)),
        pl.BlockSpec((1, H, Tk, hd), lambda b, qi: (b, 0, 0, 0)),
        pl.BlockSpec((D, D), lambda b, qi: (0, 0)),
        pl.BlockSpec((1, D), lambda b, qi: (0, 0)),
        pl.BlockSpec((1, tq, D), lambda b, qi: (b, qi, 0)),
    ]
    args += [q_p, k.astype(jnp.bfloat16), v.astype(jnp.bfloat16), pw, pb, r_p]

    out = pl.pallas_call(
        kern,
        out_shape=jax.ShapeDtypeStruct((B, Tp, D), jnp.bfloat16),
        grid=(B, Tp // tq),
        in_specs=in_specs,
        out_specs=pl.BlockSpec((1, tq, D), lambda b, qi: (b, qi, 0)),
        compiler_params=_cparams(("parallel", "parallel")),
    )(*args)
    return out[:, :T, :]


# ----------------------------------------------------------------------------
# Batched matmul kernel (per-quantizer logits)
# ----------------------------------------------------------------------------
def _bmm_kernel(x_ref, w_ref, o_ref):
    o_ref[0] = jnp.dot(x_ref[0], w_ref[0],
                       preferred_element_type=jnp.float32).astype(o_ref.dtype)


def batched_matmul(x, w, out_dtype=jnp.float32, tm=256, tn=512):
    """x: (G, M, K); w: (G, K, N) -> (G, M, N).  K kept whole (K = n_embd)."""
    G, M, K = x.shape
    N = w.shape[2]
    Mp, tm = _tile(M, tm, 8)
    Np, tn = _tile(N, tn, 128)
    x_p = _pad_to(x, (G, Mp, K)).astype(jnp.bfloat16)
    w_p = _pad_to(w, (G, K, Np)).astype(jnp.bfloat16)
    out = pl.pallas_call(
        _bmm_kernel,
        out_shape=jax.ShapeDtypeStruct((G, Mp, Np), out_dtype),
        grid=(G, Mp // tm, Np // tn),
        in_specs=[pl.BlockSpec((1, tm, K), lambda g, i, j: (g, i, 0)),
                  pl.BlockSpec((1, K, tn), lambda g, i, j: (g, 0, j))],
        out_specs=pl.BlockSpec((1, tm, tn), lambda g, i, j: (g, i, j)),
        compiler_params=_cparams(("parallel", "parallel", "parallel")),
    )(x_p, w_p)
    return out[:, :M, :N]


# ----------------------------------------------------------------------------
# 3x3 conv + folded BN + ReLU: width taps folded into the contraction (K = 3*Cin),
# H rows flattened into M = H*W -> 3 matmuls per Cout tile (one per dh).
# ----------------------------------------------------------------------------
def _conv3x3_kernel(x_ref, w_ref, b_ref, o_ref):
    H = o_ref.shape[1]
    W = o_ref.shape[2]
    K = x_ref.shape[3]
    cout = o_ref.shape[3]
    acc = jnp.zeros((H * W, cout), jnp.float32)
    for dh in range(3):
        xs = x_ref[0, dh:dh + H].reshape(H * W, K)            # (H*W, 3*Cin) bf16
        acc = acc + jnp.dot(xs, w_ref[dh], preferred_element_type=jnp.float32)
    y = jnp.maximum(acc + b_ref[...].astype(jnp.float32), 0.0)
    o_ref[0] = y.reshape(H, W, cout).astype(o_ref.dtype)


def conv3x3_bn_relu(x_nhwc, w_oihw, gamma, beta, run_mean, run_var, eps=1e-5, tc=256):
    """Conv2d(k=3, s=1, p=1, bias=False) + eval-mode BatchNorm + ReLU, NHWC layout.
    BN is folded into the conv weight/bias: scale=gamma/sqrt(var+eps), bias=beta-scale*mean."""
    B, H, W, Cin = x_nhwc.shape
    Cout = w_oihw.shape[0]
    scale = gamma.astype(jnp.float32) * jax.lax.rsqrt(run_var.astype(jnp.float32) + eps)
    bias = beta.astype(jnp.float32) - scale * run_mean.astype(jnp.float32)

    # (Cout, Cin, kh, kw) -> (kh, kw, Cin, Cout), BN scale folded; -> (3, 3*Cin, Cout)
    wt = jnp.transpose(w_oihw.astype(jnp.float32), (2, 3, 1, 0)) * scale[None, None, None, :]
    wt = wt.reshape(3, 3 * Cin, Cout)
    Cp, tc = _tile(Cout, tc, 128)
    wt = _pad_to(wt, (3, 3 * Cin, Cp)).astype(jnp.bfloat16)
    b_p = _pad_to(bias.reshape(1, Cout), (1, Cp))

    # JAX-side width-im2col: xw[b, h, w, dw*Cin + c] = x_pad[b, h, w+dw, c]
    xp = jnp.pad(x_nhwc, ((0, 0), (1, 1), (1, 1), (0, 0))).astype(jnp.bfloat16)
    xw = jnp.concatenate([xp[:, :, 0:W, :], xp[:, :, 1:W + 1, :], xp[:, :, 2:W + 2, :]],
                         axis=-1)                              # (B, H+2, W, 3*Cin)

    out = pl.pallas_call(
        _conv3x3_kernel,
        out_shape=jax.ShapeDtypeStruct((B, H, W, Cp), jnp.bfloat16),
        grid=(B, Cp // tc),
        in_specs=[
            pl.BlockSpec((1, H + 2, W, 3 * Cin), lambda b, c: (b, 0, 0, 0)),
            pl.BlockSpec((3, 3 * Cin, tc), lambda b, c: (0, 0, c)),
            pl.BlockSpec((1, tc), lambda b, c: (0, c)),
        ],
        out_specs=pl.BlockSpec((1, H, W, tc), lambda b, c: (b, 0, 0, c)),
        compiler_params=_cparams(("parallel", "parallel")),
    )(xw, wt, b_p)
    return out[..., :Cout]


def double_conv(x_nhwc, p):
    x = conv3x3_bn_relu(x_nhwc, p["w1"], p["bn1_g"], p["bn1_b"], p["bn1_m"], p["bn1_v"])
    x = conv3x3_bn_relu(x, p["w2"], p["bn2_g"], p["bn2_b"], p["bn2_m"], p["bn2_v"])
    return x


# ----------------------------------------------------------------------------
# Transformer block (attn_type='selfcross', mlp_type='fc', activate='GELU2')
# ----------------------------------------------------------------------------
def _to_heads(x, n_head):
    B, T, D = x.shape
    hd = D // n_head
    return x.reshape(B, T, n_head, hd).transpose(0, 2, 1, 3)


def adaln_mod(t, p, D):
    """AdaLayerNorm modulation (learned timestep embedding, emb_type without 'abs').
    Tiny (B,D)@(D,2D) projection -> plain XLA (kernel launch would dominate)."""
    emb = jnp.take(p["emb"], t, axis=0).astype(jnp.float32)     # (B, D)
    emb = emb * jax.nn.sigmoid(emb)                             # SiLU
    h = jnp.dot(emb, p["w"].astype(jnp.float32)) + p["b"].astype(jnp.float32)  # (B, 2D)
    B = emb.shape[0]
    scale, shift = h[:, :D], h[:, D:]
    return (1.0 + scale).reshape(B, 1, D), shift.reshape(B, 1, D)


def block_forward(x, cond, mask_q, mask_k, mask_rows, t, p, n_head):
    B, T, D = x.shape

    # --- self attention: AdaLN fused into the (D,3D) QKV projection
    #     (softmax scale pre-folded into the Q slice of qkv_w/qkv_b) ---
    mul, add = adaln_mod(t, p["ln1"], D)
    qkv = ln_linear(x, mul, add, p["attn1"]["qkv_w"], p["attn1"]["qkv_b"])   # (B,T,3D)
    q, k, v = jnp.split(qkv, 3, axis=-1)
    x = mha_proj_residual(_to_heads(q, n_head), _to_heads(k, n_head), _to_heads(v, n_head),
                          p["attn1"]["proj_w"], p["attn1"]["proj_b"],
                          x, mask_q, mask_k)

    # --- cross attention: AdaLN fused into Q proj; fused (D,2D) KV proj on cond ---
    mul, add = adaln_mod(t, p["ln1_1"], D)
    qn = ln_linear(x, mul, add, p["attn2"]["q_w"], p["attn2"]["q_b"])        # (B,T,D)
    TE = cond.shape[1]
    kv = linear(cond.reshape(B * TE, D), p["attn2"]["kv_w"],
                p["attn2"]["kv_b"]).reshape(B, TE, 2 * D)
    kc, vc = jnp.split(kv, 2, axis=-1)
    x = mha_proj_residual(_to_heads(qn, n_head), _to_heads(kc, n_head), _to_heads(vc, n_head),
                          p["attn2"]["proj_w"], p["attn2"]["proj_b"],
                          x, mask_q, None)

    # --- MLP: affine ln2 fused into first linear (GELU2); residual + row-mask fused
    #     into the second linear ---
    mul2 = jnp.broadcast_to(p["ln2_g"].astype(jnp.float32)[None, None, :], (B, 1, D))
    add2 = jnp.broadcast_to(p["ln2_b"].astype(jnp.float32)[None, None, :], (B, 1, D))
    h = ln_linear(x, mul2, add2, p["mlp_w1"], p["mlp_b1"], act="gelu2")      # (B,T,4D)
    x = linear(h.reshape(B * T, -1), p["mlp_w2"], p["mlp_b2"],
               resid=x.reshape(B * T, D), row_mask=mask_rows).reshape(B, T, D)
    return x


# ----------------------------------------------------------------------------
# Full model forward
# ----------------------------------------------------------------------------
def text2image_forward(params, input_ids, condition, x_mask, t, cfg):
    n_q, D, n_head = cfg["n_q"], cfg["n_embd"], cfg["n_head"]
    B = input_ids.shape[0]
    T = input_ids.shape[2]
    S = cfg["semantic_token_nums"]

    # content embedding (synthetic, see TODO above): (B, n_q, T, D) NHWC
    cont_emb = jnp.stack(
        [jnp.take(params["content_embs"][qq], input_ids[:, qq], axis=0) for qq in range(n_q)],
        axis=1)
    pos_emb = params["content_pos"][:T][None]                    # (1, T, D)

    # UNet-style encode: inc -> maxpool(n_q, 1) -> double conv
    x1 = double_conv(cont_emb, params["inc"])                                   # (B,n_q,T,D)
    x2 = double_conv(jnp.max(x1, axis=1, keepdims=True), params["down1"])       # (B,1,T,D)
    emb = (x2.reshape(B, T, D) + pos_emb).astype(jnp.bfloat16)

    # condition embeddings
    ps = condition["prompt_semantics"].reshape(B, -1)
    ts = condition["target_semantics"].reshape(B, -1)
    pa = condition["prompt_acoustics"][:, 0, :]
    ps = jnp.concatenate([jnp.full((B, 1), S, ps.dtype), ps,
                          jnp.full((B, 1), S + 1, ps.dtype)], axis=1)
    ts = jnp.concatenate([jnp.full((B, 1), S + 2, ts.dtype), ts,
                          jnp.full((B, 1), S + 3, ts.dtype)], axis=1)
    ps_emb = jnp.take(params["semantic_embedding"], ps, axis=0)
    ts_emb = jnp.take(params["semantic_embedding"], ts, axis=0)
    pa_emb = jnp.take(params["content_embs"][0], pa, axis=0)
    ps_emb = ps_emb + params["prompt_semantic_pos"][:ps_emb.shape[1]][None]
    ts_emb = ts_emb + params["target_semantic_pos"][:ts_emb.shape[1]][None]
    pa_emb = pa_emb + params["prompt_acoustic_pos"][:pa_emb.shape[1]][None]
    cond_emb = jnp.concatenate([ps_emb, ts_emb, pa_emb], axis=1).astype(jnp.bfloat16)

    # masks as {0,1} floats, built once (in-kernel they become additive bias / row zeroing)
    mask_f = x_mask.astype(jnp.float32)
    mask_q = mask_f[:, :, None]                                 # (B, T, 1) query rows
    mask_k = mask_f[:, None, :]                                 # (B, 1, T) self-attn keys
    mask_rows = mask_f.reshape(B * T, 1)

    # transformer blocks
    for bp in params["blocks"]:
        emb = block_forward(emb, cond_emb, mask_q, mask_k, mask_rows, t, bp, n_head)

    # UNet-style decode: upsample (nearest, (n_q, 1)) -> cat skip -> double conv
    x3 = emb.reshape(B, 1, T, D)
    x3_up = jnp.repeat(x3, n_q, axis=1)                         # nearest upsample on H
    cat = jnp.concatenate([x1, x3_up.astype(x1.dtype)], axis=-1)  # channels: [skip, upsampled]
    x_up = double_conv(cat, params["up1"])                      # (B, n_q, T, D)

    # fused per-quantizer logits: (n_q, B*T, D) @ (n_q, D, out_cls) in one batched kernel
    out_cls = cfg["num_embed"] - 1
    xq = jnp.transpose(x_up, (1, 0, 2, 3)).reshape(n_q, B * T, D)
    if "logits_w" in params:                                    # precomputed in prepare_params
        wq = params["logits_w"]
    else:
        wq = jnp.stack([jnp.transpose(params["content_embs"][qq][:out_cls])
                        for qq in range(n_q)], axis=0)          # (n_q, D, out_cls)
    logits = batched_matmul(xq, wq, out_dtype=jnp.float32)      # (n_q, B*T, out_cls)
    logits = logits.reshape(n_q, B, T, out_cls).transpose(1, 0, 2, 3)
    logits = logits.reshape(B, n_q * T, out_cls)
    return jnp.transpose(logits, (0, 2, 1))                     # 'b l c -> b c l'


# ----------------------------------------------------------------------------
# One-time parameter preparation (host/XLA side, outside the hot path):
#   * fold the softmax scale 1/sqrt(hd) into the Q projection weights & biases,
#   * precompute the stacked/transposed logits weight.
# ----------------------------------------------------------------------------
def prepare_params(params, cfg):
    D, H, n_q = cfg["n_embd"], cfg["n_head"], cfg["n_q"]
    hd = D // H
    scale = 1.0 / math.sqrt(hd)
    out_cls = cfg["num_embed"] - 1

    new = dict(params)
    blocks = []
    qcol = jnp.concatenate([jnp.full((D,), scale, jnp.float32),
                            jnp.ones((2 * D,), jnp.float32)])
    for bp in params["blocks"]:
        bp = dict(bp)
        a1 = dict(bp["attn1"])
        a1["qkv_w"] = (a1["qkv_w"].astype(jnp.float32) * qcol[None, :]).astype(jnp.bfloat16)
        a1["qkv_b"] = a1["qkv_b"].astype(jnp.float32) * qcol
        bp["attn1"] = a1
        a2 = dict(bp["attn2"])
        a2["q_w"] = (a2["q_w"].astype(jnp.float32) * scale).astype(jnp.bfloat16)
        a2["q_b"] = a2["q_b"].astype(jnp.float32) * scale
        bp["attn2"] = a2
        blocks.append(bp)
    new["blocks"] = blocks
    new["logits_w"] = jnp.stack(
        [jnp.transpose(params["content_embs"][qq][:out_cls]).astype(jnp.bfloat16)
         for qq in range(n_q)], axis=0)                         # (n_q, D, out_cls)
    return new


# ----------------------------------------------------------------------------
# Deterministic synthetic parameters (std=0.02 normals; big matrices in bf16)
# ----------------------------------------------------------------------------
def init_params(key, cfg, max_pos=64):
    n_q, D = cfg["n_q"], cfg["n_embd"]
    hid = cfg["mlp_hidden_times"] * D
    bf = jnp.bfloat16
    ks = iter(jax.random.split(key, 4096))

    def nrm(shape, std=0.02, dtype=jnp.float32):
        return (std * jax.random.normal(next(ks), shape)).astype(dtype)

    def zeros(shape):
        return jnp.zeros(shape, jnp.float32)

    def dconv(cin, cmid, cout):
        return dict(w1=nrm((cmid, cin, 3, 3)),
                    bn1_g=jnp.ones((cmid,), jnp.float32), bn1_b=zeros((cmid,)),
                    bn1_m=zeros((cmid,)), bn1_v=jnp.ones((cmid,), jnp.float32),
                    w2=nrm((cout, cmid, 3, 3)),
                    bn2_g=jnp.ones((cout,), jnp.float32), bn2_b=zeros((cout,)),
                    bn2_m=zeros((cout,)), bn2_v=jnp.ones((cout,), jnp.float32))

    def self_attn():
        return dict(qkv_w=nrm((D, 3 * D), dtype=bf), qkv_b=zeros((3 * D,)),
                    proj_w=nrm((D, D), dtype=bf), proj_b=zeros((D,)))

    def cross_attn():
        return dict(q_w=nrm((D, D), dtype=bf), q_b=zeros((D,)),
                    kv_w=nrm((D, 2 * D), dtype=bf), kv_b=zeros((2 * D,)),
                    proj_w=nrm((D, D), dtype=bf), proj_b=zeros((D,)))

    def adaln():
        return dict(emb=nrm((cfg["diffusion_step"], D)),
                    w=nrm((D, 2 * D), dtype=bf), b=zeros((2 * D,)))

    blocks = []
    for _ in range(cfg["n_layer"]):
        blocks.append(dict(
            ln1=adaln(), ln1_1=adaln(),
            attn1=self_attn(), attn2=cross_attn(),
            ln2_g=jnp.ones((D,), jnp.float32), ln2_b=zeros((D,)),
            mlp_w1=nrm((D, hid), dtype=bf), mlp_b1=zeros((hid,)),
            mlp_w2=nrm((hid, D), dtype=bf), mlp_b2=zeros((D,)),
        ))

    return dict(
        content_embs=[nrm((cfg["num_embed"], D), dtype=bf) for _ in range(n_q)],
        content_pos=nrm((max_pos, D), dtype=bf),
        semantic_embedding=nrm((cfg["semantic_token_nums"] + 4, D), dtype=bf),
        prompt_semantic_pos=nrm((50, D), dtype=bf),
        target_semantic_pos=nrm((50, D), dtype=bf),
        prompt_acoustic_pos=nrm((50, D), dtype=bf),
        inc=dconv(D, D, D),
        down1=dconv(D, D, D),
        up1=dconv(2 * D, D, D),
        blocks=blocks,
    )


# ----------------------------------------------------------------------------
if __name__ == "__main__":
    cfg = dict(
        n_q=2, n_embd=32, n_head=4, n_layer=2, mlp_hidden_times=4,
        diffusion_step=100, num_embed=66, semantic_token_nums=50,
    )
    B, T = 2, 8

    key = jax.random.PRNGKey(0)
    pkey, dkey = jax.random.split(key)
    params = prepare_params(init_params(pkey, cfg), cfg)

    k1, k2, k3, k4, k5 = jax.random.split(dkey, 5)
    input_ids = jax.random.randint(k1, (B, cfg["n_q"], T), 0, cfg["num_embed"] - 1)
    condition = {
        "prompt_semantics": jax.random.randint(k2, (B, 4), 0, cfg["semantic_token_nums"]),
        "target_semantics": jax.random.randint(k3, (B, 5), 0, cfg["semantic_token_nums"]),
        "prompt_acoustics": jax.random.randint(k4, (B, cfg["n_q"], 6), 0, cfg["num_embed"] - 1),
    }
    # mask the last two acoustic positions (padding)
    x_mask = jnp.zeros((B, T), dtype=bool).at[:, -2:].set(True)
    t = jax.random.randint(k5, (B,), 0, cfg["diffusion_step"])

    fwd = jax.jit(functools.partial(text2image_forward, cfg=cfg))
    out = fwd(params, input_ids, condition, x_mask, t)
    out = jax.block_until_ready(out)
    assert out.shape == (B, cfg["num_embed"] - 1, cfg["n_q"] * T), out.shape
    assert bool(jnp.all(jnp.isfinite(out)))
    print("KERNEL_OK")
</pallas_src>

<mosaic_0001>
module attributes {stable_mosaic.version = 11 : i64} {
  func.func @_conv3x3_kernel(%arg0: i32, %arg1: i32, %arg2: memref<1x4x8x96xbf16, #tpu.memory_space<vmem>>, %arg3: memref<3x96x128xbf16, #tpu.memory_space<vmem>>, %arg4: memref<1x128xf32, #tpu.memory_space<vmem>>, %arg5: memref<1x2x8x128xbf16, #tpu.memory_space<vmem>>) attributes {dimension_semantics = [#tpu.dimension_semantics<parallel>, #tpu.dimension_semantics<parallel>], iteration_bounds = array<i64: 2, 1>, scalar_prefetch = 0 : i64, scratch_operands = 0 : i64, tpu.core_type = #tpu.core_type<tc>, window_params = [{transform_indices = @transform_0, window_bounds = array<i64: 1, 4, 8, 96>}, {transform_indices = @transform_1, window_bounds = array<i64: 3, 96, 128>}, {transform_indices = @transform_2, window_bounds = array<i64: 1, 128>}, {transform_indices = @transform_3, window_bounds = array<i64: 1, 2, 8, 128>}]} {
    %cst = arith.constant 0.000000e+00 : f32
    %0 = vector.broadcast %cst : f32 to vector<16x128xf32>
    %c0 = arith.constant 0 : index
    %c0_0 = arith.constant 0 : index
    %c0_1 = arith.constant 0 : index
    %c0_2 = arith.constant 0 : index
    %1 = vector.load %arg2[%c0, %c0_0, %c0_1, %c0_2] : memref<1x4x8x96xbf16, #tpu.memory_space<vmem>>, vector<1x2x8x96xbf16>
    %2 = vector.shape_cast %1 : vector<1x2x8x96xbf16> to vector<2x8x96xbf16>
    %3 = vector.shape_cast %2 : vector<2x8x96xbf16> to vector<16x96xbf16>
    %c0_3 = arith.constant 0 : index
    %c0_4 = arith.constant 0 : index
    %c0_5 = arith.constant 0 : index
    %4 = vector.load %arg3[%c0_3, %c0_4, %c0_5] : memref<3x96x128xbf16, #tpu.memory_space<vmem>>, vector<1x96x128xbf16>
    %5 = vector.shape_cast %4 : vector<1x96x128xbf16> to vector<96x128xbf16>
    %cst_6 = arith.constant dense<0.000000e+00> : vector<16x128xf32>
    %6 = tpu.matmul %3, %5, %cst_6 {dimension_numbers = #tpu.dot_dimension_numbers<[1], [0], [0], [1], [0, 0, 1, 1], [], []>} : vector<16x96xbf16>, vector<96x128xbf16>, vector<16x128xf32> -> vector<16x128xf32>
    %7 = arith.addf %0, %6 : vector<16x128xf32>
    %c0_7 = arith.constant 0 : index
    %c1 = arith.constant 1 : index
    %c0_8 = arith.constant 0 : index
    %c0_9 = arith.constant 0 : index
    %8 = vector.load %arg2[%c0_7, %c1, %c0_8, %c0_9] : memref<1x4x8x96xbf16, #tpu.memory_space<vmem>>, vector<1x2x8x96xbf16>
    %9 = vector.shape_cast %8 : vector<1x2x8x96xbf16> to vector<2x8x96xbf16>
    %10 = vector.shape_cast %9 : vector<2x8x96xbf16> to vector<16x96xbf16>
    %c1_10 = arith.constant 1 : index
    %c0_11 = arith.constant 0 : index
    %c0_12 = arith.constant 0 : index
    %11 = vector.load %arg3[%c1_10, %c0_11, %c0_12] : memref<3x96x128xbf16, #tpu.memory_space<vmem>>, vector<1x96x128xbf16>
    %12 = vector.shape_cast %11 : vector<1x96x128xbf16> to vector<96x128xbf16>
    %cst_13 = arith.constant dense<0.000000e+00> : vector<16x128xf32>
    %13 = tpu.matmul %10, %12, %cst_13 {dimension_numbers = #tpu.dot_dimension_numbers<[1], [0], [0], [1], [0, 0, 1, 1], [], []>} : vector<16x96xbf16>, vector<96x128xbf16>, vector<16x128xf32> -> vector<16x128xf32>
    %14 = arith.addf %7, %13 : vector<16x128xf32>
    %c0_14 = arith.constant 0 : index
    %c2 = arith.constant 2 : index
    %c0_15 = arith.constant 0 : index
    %c0_16 = arith.constant 0 : index
    %15 = vector.load %arg2[%c0_14, %c2, %c0_15, %c0_16] : memref<1x4x8x96xbf16, #tpu.memory_space<vmem>>, vector<1x2x8x96xbf16>
    %16 = vector.shape_cast %15 : vector<1x2x8x96xbf16> to vector<2x8x96xbf16>
    %17 = vector.shape_cast %16 : vector<2x8x96xbf16> to vector<16x96xbf16>
    %c2_17 = arith.constant 2 : index
    %c0_18 = arith.constant 0 : index
    %c0_19 = arith.constant 0 : index
    %18 = vector.load %arg3[%c2_17, %c0_18, %c0_19] : memref<3x96x128xbf16, #tpu.memory_space<vmem>>, vector<1x96x128xbf16>
    %19 = vector.shape_cast %18 : vector<1x96x128xbf16> to vector<96x128xbf16>
    %cst_20 = arith.constant dense<0.000000e+00> : vector<16x128xf32>
    %20 = tpu.matmul %17, %19, %cst_20 {dimension_numbers = #tpu.dot_dimension_numbers<[1], [0], [0], [1], [0, 0, 1, 1], [], []>} : vector<16x96xbf16>, vector<96x128xbf16>, vector<16x128xf32> -> vector<16x128xf32>
    %21 = arith.addf %14, %20 : vector<16x128xf32>
    %c0_21 = arith.constant 0 : index
    %c0_22 = arith.constant 0 : index
    %22 = vector.load %arg4[%c0_21, %c0_22] : memref<1x128xf32, #tpu.memory_space<vmem>>, vector<1x128xf32>
    %23 = vector.broadcast %22 : vector<1x128xf32> to vector<16x128xf32>
    %24 = arith.addf %21, %23 : vector<16x128xf32>
    %cst_23 = arith.constant 0.000000e+00 : f32
    %25 = vector.broadcast %cst_23 : f32 to vector<16x128xf32>
    %26 = arith.maximumf %24, %25 : vector<16x128xf32>
    %27 = vector.shape_cast %26 : vector<16x128xf32> to vector<2x8x128xf32>
    %28 = arith.truncf %27 : vector<2x8x128xf32> to vector<2x8x128xbf16>
    %c0_24 = arith.constant 0 : index
    %c0_25 = arith.constant 0 : index
    %c0_26 = arith.constant 0 : index
    %c0_27 = arith.constant 0 : index
    %29 = vector.load %arg5[%c0_24, %c0_25, %c0_26, %c0_27] : memref<1x2x8x128xbf16, #tpu.memory_space<vmem>>, vector<1x2x8x128xbf16>
    %30 = vector.shape_cast %29 : vector<1x2x8x128xbf16> to vector<2x8x128xbf16>
    %31 = vector.shape_cast %28 : vector<2x8x128xbf16> to vector<1x2x8x128xbf16>
    tpu.vector_store %arg5[%c0_24, %c0_25, %c0_26, %c0_27], %31 {strides = array<i32>} : memref<1x2x8x128xbf16, #tpu.memory_space<vmem>>, vector<1x2x8x128xbf16>,
    return
  }
  func.func @transform_0(%arg0: i32, %arg1: i32) -> (i32, i32, i32, i32) {
    %c0_i32 = arith.constant 0 : i32
    %c0_i32_0 = arith.constant 0 : i32
    %c0_i32_1 = arith.constant 0 : i32
    %c0_i32_2 = arith.constant 0 : i32
    return %arg0, %c0_i32, %c0_i32_0, %c0_i32_1 : i32, i32, i32, i32
  }
  func.func @transform_1(%arg0: i32, %arg1: i32) -> (i32, i32, i32) {
    %c0_i32 = arith.constant 0 : i32
    %c0_i32_0 = arith.constant 0 : i32
    %c0_i32_1 = arith.constant 0 : i32
    return %c0_i32, %c0_i32_0, %arg1 : i32, i32, i32
  }
  func.func @transform_2(%arg0: i32, %arg1: i32) -> (i32, i32) {
    %c0_i32 = arith.constant 0 : i32
    %c0_i32_0 = arith.constant 0 : i32
    return %c0_i32, %arg1 : i32, i32
  }
  func.func @transform_3(%arg0: i32, %arg1: i32) -> (i32, i32, i32, i32) {
    %c0_i32 = arith.constant 0 : i32
    %c0_i32_0 = arith.constant 0 : i32
    %c0_i32_1 = arith.constant 0 : i32
    return %arg0, %c0_i32, %c0_i32_0, %arg1 : i32, i32, i32, i32
  }
}

module attributes {stable_mosaic.version = 11 : i64} {
  func.func @_conv3x3_kernel(%arg0: i32, %arg1: i32, %arg2: memref<1x3x8x96xbf16, #tpu.memory_space<vmem>>, %arg3: memref<3x96x128xbf16, #tpu.memory_space<vmem>>, %arg4: memref<1x128xf32, #tpu.memory_space<vmem>>, %arg5: memref<1x1x8x128xbf16, #tpu.memory_space<vmem>>) attributes {dimension_semantics = [#tpu.dimension_semantics<parallel>, #tpu.dimension_semantics<parallel>], iteration_bounds = array<i64: 2, 1>, scalar_prefetch = 0 : i64, scratch_operands = 0 : i64, tpu.core_type = #tpu.core_type<tc>, window_params = [{transform_indices = @transform_0, window_bounds = array<i64: 1, 3, 8, 96>}, {transform_indices = @transform_1, window_bounds = array<i64: 3, 96, 128>}, {transform_indices = @transform_2, window_bounds = array<i64: 1, 128>}, {transform_indices = @transform_3, window_bounds = array<i64: 1, 1, 8, 128>}]} {
    %cst = arith.constant 0.000000e+00 : f32
    %0 = vector.broadcast %cst : f32 to vector<8x128xf32>
    %c0 = arith.constant 0 : index
    %c0_0 = arith.constant 0 : index
    %c0_1 = arith.constant 0 : index
    %c0_2 = arith.constant 0 : index
    %1 = vector.load %arg2[%c0, %c0_0, %c0_1, %c0_2] : memref<1x3x8x96xbf16, #tpu.memory_space<vmem>>, vector<1x1x8x96xbf16>
    %2 = vector.shape_cast %1 : vector<1x1x8x96xbf16> to vector<1x8x96xbf16>
    %3 = vector.shape_cast %2 : vector<1x8x96xbf16> to vector<8x96xbf16>
    %c0_3 = arith.constant 0 : index
    %c0_4 = arith.constant 0 : index
    %c0_5 = arith.constant 0 : index
    %4 = vector.load %arg3[%c0_3, %c0_4, %c0_5] : memref<3x96x128xbf16, #tpu.memory_space<vmem>>, vector<1x96x128xbf16>
    %5 = vector.shape_cast %4 : vector<1x96x128xbf16> to vector<96x128xbf16>
    %cst_6 = arith.constant dense<0.000000e+00> : vector<8x128xf32>
    %6 = tpu.matmul %3, %5, %cst_6 {dimension_numbers = #tpu.dot_dimension_numbers<[1], [0], [0], [1], [0, 0, 1, 1], [], []>} : vector<8x96xbf16>, vector<96x128xbf16>, vector<8x128xf32> -> vector<8x128xf32>
    %7 = arith.addf %0, %6 : vector<8x128xf32>
    %c0_7 = arith.constant 0 : index
    %c1 = arith.constant 1 : index
    %c0_8 = arith.constant 0 : index
    %c0_9 = arith.constant 0 : index
    %8 = vector.load %arg2[%c0_7, %c1, %c0_8, %c0_9] : memref<1x3x8x96xbf16, #tpu.memory_space<vmem>>, vector<1x1x8x96xbf16>
    %9 = vector.shape_cast %8 : vector<1x1x8x96xbf16> to vector<1x8x96xbf16>
    %10 = vector.shape_cast %9 : vector<1x8x96xbf16> to vector<8x96xbf16>
    %c1_10 = arith.constant 1 : index
    %c0_11 = arith.constant 0 : index
    %c0_12 = arith.constant 0 : index
    %11 = vector.load %arg3[%c1_10, %c0_11, %c0_12] : memref<3x96x128xbf16, #tpu.memory_space<vmem>>, vector<1x96x128xbf16>
    %12 = vector.shape_cast %11 : vector<1x96x128xbf16> to vector<96x128xbf16>
    %cst_13 = arith.constant dense<0.000000e+00> : vector<8x128xf32>
    %13 = tpu.matmul %10, %12, %cst_13 {dimension_numbers = #tpu.dot_dimension_numbers<[1], [0], [0], [1], [0, 0, 1, 1], [], []>} : vector<8x96xbf16>, vector<96x128xbf16>, vector<8x128xf32> -> vector<8x128xf32>
    %14 = arith.addf %7, %13 : vector<8x128xf32>
    %c0_14 = arith.constant 0 : index
    %c2 = arith.constant 2 : index
    %c0_15 = arith.constant 0 : index
    %c0_16 = arith.constant 0 : index
    %15 = vector.load %arg2[%c0_14, %c2, %c0_15, %c0_16] : memref<1x3x8x96xbf16, #tpu.memory_space<vmem>>, vector<1x1x8x96xbf16>
    %16 = vector.shape_cast %15 : vector<1x1x8x96xbf16> to vector<1x8x96xbf16>
    %17 = vector.shape_cast %16 : vector<1x8x96xbf16> to vector<8x96xbf16>
    %c2_17 = arith.constant 2 : index
    %c0_18 = arith.constant 0 : index
    %c0_19 = arith.constant 0 : index
    %18 = vector.load %arg3[%c2_17, %c0_18, %c0_19] : memref<3x96x128xbf16, #tpu.memory_space<vmem>>, vector<1x96x128xbf16>
    %19 = vector.shape_cast %18 : vector<1x96x128xbf16> to vector<96x128xbf16>
    %cst_20 = arith.constant dense<0.000000e+00> : vector<8x128xf32>
    %20 = tpu.matmul %17, %19, %cst_20 {dimension_numbers = #tpu.dot_dimension_numbers<[1], [0], [0], [1], [0, 0, 1, 1], [], []>} : vector<8x96xbf16>, vector<96x128xbf16>, vector<8x128xf32> -> vector<8x128xf32>
    %21 = arith.addf %14, %20 : vector<8x128xf32>
    %c0_21 = arith.constant 0 : index
    %c0_22 = arith.constant 0 : index
    %22 = vector.load %arg4[%c0_21, %c0_22] : memref<1x128xf32, #tpu.memory_space<vmem>>, vector<1x128xf32>
    %23 = vector.broadcast %22 : vector<1x128xf32> to vector<8x128xf32>
    %24 = arith.addf %21, %23 : vector<8x128xf32>
    %cst_23 = arith.constant 0.000000e+00 : f32
    %25 = vector.broadcast %cst_23 : f32 to vector<8x128xf32>
    %26 = arith.maximumf %24, %25 : vector<8x128xf32>
    %27 = vector.shape_cast %26 : vector<8x128xf32> to vector<1x8x128xf32>
    %28 = arith.truncf %27 : vector<1x8x128xf32> to vector<1x8x128xbf16>
    %c0_24 = arith.constant 0 : index
    %c0_25 = arith.constant 0 : index
    %c0_26 = arith.constant 0 : index
    %c0_27 = arith.constant 0 : index
    %29 = vector.load %arg5[%c0_24, %c0_25, %c0_26, %c0_27] : memref<1x1x8x128xbf16, #tpu.memory_space<vmem>>, vector<1x1x8x128xbf16>
    %30 = vector.shape_cast %29 : vector<1x1x8x128xbf16> to vector<1x8x128xbf16>
    %31 = vector.shape_cast %28 : vector<1x8x128xbf16> to vector<1x1x8x128xbf16>
    tpu.vector_store %arg5[%c0_24, %c0_25, %c0_26, %c0_27], %31 {strides = array<i32>} : memref<1x1x8x128xbf16, #tpu.memory_space<vmem>>, vector<1x1x8x128xbf16>,
    return
  }
  func.func @transform_0(%arg0: i32, %arg1: i32) -> (i32, i32, i32, i32) {
    %c0_i32 = arith.constant 0 : i32
    %c0_i32_0 = arith.constant 0 : i32
    %c0_i32_1 = arith.constant 0 : i32
    %c0_i32_2 = arith.constant 0 : i32
    return %arg0, %c0_i32, %c0_i32_0, %c0_i32_1 : i32, i32, i32, i32
  }
  func.func @transform_1(%arg0: i32, %arg1: i32) -> (i32, i32, i32) {
    %c0_i32 = arith.constant 0 : i32
    %c0_i32_0 = arith.constant 0 : i32
    %c0_i32_1 = arith.constant 0 : i32
    return %c0_i32, %c0_i32_0, %arg1 : i32, i32, i32
  }
  func.func @transform_2(%arg0: i32, %arg1: i32) -> (i32, i32) {
    %c0_i32 = arith.constant 0 : i32
    %c0_i32_0 = arith.constant 0 : i32
    return %c0_i32, %arg1 : i32, i32
  }
  func.func @transform_3(%arg0: i32, %arg1: i32) -> (i32, i32, i32, i32) {
    %c0_i32 = arith.constant 0 : i32
    %c0_i32_0 = arith.constant 0 : i32
    %c0_i32_1 = arith.constant 0 : i32
    return %arg0, %c0_i32, %c0_i32_0, %arg1 : i32, i32, i32, i32
  }
}

module attributes {stable_mosaic.version = 11 : i64} {
  func.func @_ln_matmul_kernel(%arg0: i32, %arg1: i32, %arg2: memref<1x8x32xbf16, #tpu.memory_space<vmem>>, %arg3: memref<1x1x32xf32, #tpu.memory_space<vmem>>, %arg4: memref<1x1x32xf32, #tpu.memory_space<vmem>>, %arg5: memref<32x128xbf16, #tpu.memory_space<vmem>>, %arg6: memref<1x128xf32, #tpu.memory_space<vmem>>, %arg7: memref<1x8x128xbf16, #tpu.memory_space<vmem>>, %arg8: memref<8x32xbf16, #tpu.memory_space<vmem>>) attributes {dimension_semantics = [#tpu.dimension_semantics<parallel>, #tpu.dimension_semantics<arbitrary>], iteration_bounds = array<i64: 2, 1>, scalar_prefetch = 0 : i64, scratch_operands = 1 : i64, tpu.core_type = #tpu.core_type<tc>, window_params = [{transform_indices = @transform_0, window_bounds = array<i64: 1, 8, 32>}, {transform_indices = @transform_1, window_bounds = array<i64: 1, 1, 32>}, {transform_indices = @transform_2, window_bounds = array<i64: 1, 1, 32>}, {transform_indices = @transform_3, window_bounds = array<i64: 32, 128>}, {transform_indices = @transform_4, window_bounds = array<i64: 1, 128>}, {transform_indices = @transform_5, window_bounds = array<i64: 1, 8, 128>}]} {
    %c0_i32 = arith.constant 0 : i32
    %0 = arith.cmpi eq, %arg1, %c0_i32 : i32
    %1 = arith.extui %0 : i1 to i32
    %c0_i32_0 = arith.constant 0 : i32
    %2 = arith.cmpi ne, %1, %c0_i32_0 : i32
    scf.if %2 {
      %c0_9 = arith.constant 0 : index
      %c0_10 = arith.constant 0 : index
      %c0_11 = arith.constant 0 : index
      %13 = vector.load %arg2[%c0_9, %c0_10, %c0_11] : memref<1x8x32xbf16, #tpu.memory_space<vmem>>, vector<1x8x32xbf16>
      %14 = vector.shape_cast %13 : vector<1x8x32xbf16> to vector<8x32xbf16>
      %15 = arith.extf %14 : vector<8x32xbf16> to vector<8x32xf32>
      %cst_12 = arith.constant dense<0.000000e+00> : vector<8xf32>
      %16 = vector.multi_reduction <add>, %15, %cst_12 [1] : vector<8x32xf32> to vector<8xf32>
      %17 = vector.shape_cast %16 : vector<8xf32> to vector<8x1xf32>
      %cst_13 = arith.constant 3.200000e+01 : f32
      %18 = vector.broadcast %cst_13 : f32 to vector<8x1xf32>
      %19 = arith.divf %17, %18 : vector<8x1xf32>
      %20 = vector.broadcast %19 : vector<8x1xf32> to vector<8x32xf32>
      %21 = arith.subf %15, %20 : vector<8x32xf32>
      %22 = arith.mulf %21, %21 : vector<8x32xf32>
      %cst_14 = arith.constant dense<0.000000e+00> : vector<8xf32>
      %23 = vector.multi_reduction <add>, %22, %cst_14 [1] : vector<8x32xf32> to vector<8xf32>
      %24 = vector.shape_cast %23 : vector<8xf32> to vector<8x1xf32>
      %cst_15 = arith.constant 3.200000e+01 : f32
      %25 = vector.broadcast %cst_15 : f32 to vector<8x1xf32>
      %26 = arith.divf %24, %25 : vector<8x1xf32>
      %27 = vector.broadcast %19 : vector<8x1xf32> to vector<8x32xf32>
      %28 = arith.subf %15, %27 : vector<8x32xf32>
      %cst_16 = arith.constant 9.99999974E-6 : f32
      %29 = vector.broadcast %cst_16 : f32 to vector<8x1xf32>
      %30 = arith.addf %26, %29 : vector<8x1xf32>
      %31 = math.rsqrt %30 : vector<8x1xf32>
      %32 = vector.broadcast %31 : vector<8x1xf32> to vector<8x32xf32>
      %33 = arith.mulf %28, %32 : vector<8x32xf32>
      %c0_17 = arith.constant 0 : index
      %c0_18 = arith.constant 0 : index
      %c0_19 = arith.constant 0 : index
      %34 = vector.load %arg3[%c0_17, %c0_18, %c0_19] : memref<1x1x32xf32, #tpu.memory_space<vmem>>, vector<1x1x32xf32>
      %35 = vector.shape_cast %34 : vector<1x1x32xf32> to vector<1x32xf32>
      %36 = vector.broadcast %35 : vector<1x32xf32> to vector<8x32xf32>
      %37 = arith.mulf %33, %36 : vector<8x32xf32>
      %c0_20 = arith.constant 0 : index
      %c0_21 = arith.constant 0 : index
      %c0_22 = arith.constant 0 : index
      %38 = vector.load %arg4[%c0_20, %c0_21, %c0_22] : memref<1x1x32xf32, #tpu.memory_space<vmem>>, vector<1x1x32xf32>
      %39 = vector.shape_cast %38 : vector<1x1x32xf32> to vector<1x32xf32>
      %40 = vector.broadcast %39 : vector<1x32xf32> to vector<8x32xf32>
      %41 = arith.addf %37, %40 : vector<8x32xf32>
      %42 = arith.truncf %41 : vector<8x32xf32> to vector<8x32xbf16>
      %c0_23 = arith.constant 0 : index
      %c0_24 = arith.constant 0 : index
      %43 = vector.load %arg8[%c0_23, %c0_24] : memref<8x32xbf16, #tpu.memory_space<vmem>>, vector<8x32xbf16>
      tpu.vector_store %arg8[%c0_23, %c0_24], %42 {strides = array<i32>} : memref<8x32xbf16, #tpu.memory_space<vmem>>, vector<8x32xbf16>,
    } else {
    }
    %c0 = arith.constant 0 : index
    %c0_1 = arith.constant 0 : index
    %3 = vector.load %arg8[%c0, %c0_1] : memref<8x32xbf16, #tpu.memory_space<vmem>>, vector<8x32xbf16>
    %c0_2 = arith.constant 0 : index
    %c0_3 = arith.constant 0 : index
    %4 = vector.load %arg5[%c0_2, %c0_3] : memref<32x128xbf16, #tpu.memory_space<vmem>>, vector<32x128xbf16>
    %cst = arith.constant dense<0.000000e+00> : vector<8x128xf32>
    %5 = tpu.matmul %3, %4, %cst {dimension_numbers = #tpu.dot_dimension_numbers<[1], [0], [0], [1], [0, 0, 1, 1], [], []>} : vector<8x32xbf16>, vector<32x128xbf16>, vector<8x128xf32> -> vector<8x128xf32>
    %c0_4 = arith.constant 0 : index
    %c0_5 = arith.constant 0 : index
    %6 = vector.load %arg6[%c0_4, %c0_5] : memref<1x128xf32, #tpu.memory_space<vmem>>, vector<1x128xf32>
    %7 = vector.broadcast %6 : vector<1x128xf32> to vector<8x128xf32>
    %8 = arith.addf %5, %7 : vector<8x128xf32>
    %9 = arith.truncf %8 : vector<8x128xf32> to vector<8x128xbf16>
    %c0_6 = arith.constant 0 : index
    %c0_7 = arith.constant 0 : index
    %c0_8 = arith.constant 0 : index
    %10 = vector.load %arg7[%c0_6, %c0_7, %c0_8] : memref<1x8x128xbf16, #tpu.memory_space<vmem>>, vector<1x8x128xbf16>
    %11 = vector.shape_cast %10 : vector<1x8x128xbf16> to vector<8x128xbf16>
    %12 = vector.shape_cast %9 : vector<8x128xbf16> to vector<1x8x128xbf16>
    tpu.vector_store %arg7[%c0_6, %c0_7, %c0_8], %12 {strides = array<i32>} : memref<1x8x128xbf16, #tpu.memory_space<vmem>>, vector<1x8x128xbf16>,
    return
  }
  func.func @transform_0(%arg0: i32, %arg1: i32) -> (i32, i32, i32) {
    %c0_i32 = arith.constant 0 : i32
    %c0_i32_0 = arith.constant 0 : i32
    %c0_i32_1 = arith.constant 0 : i32
    return %arg0, %c0_i32, %c0_i32_0 : i32, i32, i32
  }
  func.func @transform_1(%arg0: i32, %arg1: i32) -> (i32, i32, i32) {
    %c0_i32 = arith.constant 0 : i32
    %c0_i32_0 = arith.constant 0 : i32
    %c0_i32_1 = arith.constant 0 : i32
    return %arg0, %c0_i32, %c0_i32_0 : i32, i32, i32
  }
  func.func @transform_2(%arg0: i32, %arg1: i32) -> (i32, i32, i32) {
    %c0_i32 = arith.constant 0 : i32
    %c0_i32_0 = arith.constant 0 : i32
    %c0_i32_1 = arith.constant 0 : i32
    return %arg0, %c0_i32, %c0_i32_0 : i32, i32, i32
  }
  func.func @transform_3(%arg0: i32, %arg1: i32) -> (i32, i32) {
    %c0_i32 = arith.constant 0 : i32
    %c0_i32_0 = arith.constant 0 : i32
    return %c0_i32, %arg1 : i32, i32
  }
  func.func @transform_4(%arg0: i32, %arg1: i32) -> (i32, i32) {
    %c0_i32 = arith.constant 0 : i32
    %c0_i32_0 = arith.constant 0 : i32
    return %c0_i32, %arg1 : i32, i32
  }
  func.func @transform_5(%arg0: i32, %arg1: i32) -> (i32, i32, i32) {
    %c0_i32 = arith.constant 0 : i32
    %c0_i32_0 = arith.constant 0 : i32
    return %arg0, %c0_i32, %arg1 : i32, i32, i32
  }
}

module attributes {stable_mosaic.version = 11 : i64} {
  func.func @_attn_self_kernel(%arg0: i32, %arg1: i32, %arg2: memref<1x8x1xf32, #tpu.memory_space<vmem>>, %arg3: memref<1x1x8xf32, #tpu.memory_space<vmem>>, %arg4: memref<1x4x8x8xbf16, #tpu.memory_space<vmem>>, %arg5: memref<1x4x8x8xbf16, #tpu.memory_space<vmem>>, %arg6: memref<1x4x8x8xbf16, #tpu.memory_space<vmem>>, %arg7: memref<32x32xbf16, #tpu.memory_space<vmem>>, %arg8: memref<1x32xf32, #tpu.memory_space<vmem>>, %arg9: memref<1x8x32xbf16, #tpu.memory_space<vmem>>, %arg10: memref<1x8x32xbf16, #tpu.memory_space<vmem>>) attributes {dimension_semantics = [#tpu.dimension_semantics<parallel>, #tpu.dimension_semantics<parallel>], iteration_bounds = array<i64: 2, 1>, scalar_prefetch = 0 : i64, scratch_operands = 0 : i64, tpu.core_type = #tpu.core_type<tc>, window_params = [{transform_indices = @transform_0, window_bounds = array<i64: 1, 8, 1>}, {transform_indices = @transform_1, window_bounds = array<i64: 1, 1, 8>}, {transform_indices = @transform_2, window_bounds = array<i64: 1, 4, 8, 8>}, {transform_indices = @transform_3, window_bounds = array<i64: 1, 4, 8, 8>}, {transform_indices = @transform_4, window_bounds = array<i64: 1, 4, 8, 8>}, {pipeline_mode = #tpu.pipeline_mode<synchronous>, transform_indices = @transform_5, window_bounds = array<i64: 32, 32>}, {pipeline_mode = #tpu.pipeline_mode<synchronous>, transform_indices = @transform_6, window_bounds = array<i64: 1, 32>}, {transform_indices = @transform_7, window_bounds = array<i64: 1, 8, 32>}, {transform_indices = @transform_8, window_bounds = array<i64: 1, 8, 32>}]} {
    %c0 = arith.constant 0 : index
    %c0_0 = arith.constant 0 : index
    %c0_1 = arith.constant 0 : index
    %0 = vector.load %arg3[%c0, %c0_0, %c0_1] : memref<1x1x8xf32, #tpu.memory_space<vmem>>, vector<1x1x8xf32>
    %1 = vector.shape_cast %0 : vector<1x1x8xf32> to vector<1x8xf32>
    %cst = arith.constant -1.000000e+30 : f32
    %2 = vector.broadcast %cst : f32 to vector<1x8xf32>
    %3 = arith.mulf %1, %2 : vector<1x8xf32>
    %c0_2 = arith.constant 0 : index
    %c0_3 = arith.constant 0 : index
    %c0_4 = arith.constant 0 : index
    %c0_5 = arith.constant 0 : index
    %4 = vector.load %arg4[%c0_2, %c0_3, %c0_4, %c0_5] : memref<1x4x8x8xbf16, #tpu.memory_space<vmem>>, vector<1x1x8x8xbf16>
    %5 = vector.shape_cast %4 : vector<1x1x8x8xbf16> to vector<8x8xbf16>
    %c0_6 = arith.constant 0 : index
    %c0_7 = arith.constant 0 : index
    %c0_8 = arith.constant 0 : index
    %c0_9 = arith.constant 0 : index
    %6 = vector.load %arg5[%c0_6, %c0_7, %c0_8, %c0_9] : memref<1x4x8x8xbf16, #tpu.memory_space<vmem>>, vector<1x1x8x8xbf16>
    %7 = vector.shape_cast %6 : vector<1x1x8x8xbf16> to vector<8x8xbf16>
    %cst_10 = arith.constant dense<0.000000e+00> : vector<8x8xf32>
    %8 = tpu.matmul %5, %7, %cst_10 {dimension_numbers = #tpu.dot_dimension_numbers<[1], [1], [0], [0], [0, 0, 1, 0], [], []>} : vector<8x8xbf16>, vector<8x8xbf16>, vector<8x8xf32> -> vector<8x8xf32>
    %9 = vector.broadcast %3 : vector<1x8xf32> to vector<8x8xf32>
    %10 = arith.addf %8, %9 : vector<8x8xf32>
    %cst_11 = arith.constant dense<0xFF800000> : vector<8xf32>
    %11 = vector.multi_reduction <maximumf>, %10, %cst_11 [1] : vector<8x8xf32> to vector<8xf32>
    %12 = vector.shape_cast %11 : vector<8xf32> to vector<8x1xf32>
    %13 = vector.broadcast %12 : vector<8x1xf32> to vector<8x8xf32>
    %14 = arith.subf %10, %13 : vector<8x8xf32>
    %15 = math.exp %14 : vector<8x8xf32>
    %cst_12 = arith.constant dense<0.000000e+00> : vector<8xf32>
    %16 = vector.multi_reduction <add>, %15, %cst_12 [1] : vector<8x8xf32> to vector<8xf32>
    %17 = vector.shape_cast %16 : vector<8xf32> to vector<8x1xf32>
    %18 = tpu.reciprocal %17 {approx = true} : vector<8x1xf32> -> vector<8x1xf32>
    %19 = vector.broadcast %18 : vector<8x1xf32> to vector<8x8xf32>
    %20 = arith.mulf %15, %19 : vector<8x8xf32>
    %21 = arith.truncf %20 : vector<8x8xf32> to vector<8x8xbf16>
    %c0_13 = arith.constant 0 : index
    %c0_14 = arith.constant 0 : index
    %c0_15 = arith.constant 0 : index
    %c0_16 = arith.constant 0 : index
    %22 = vector.load %arg6[%c0_13, %c0_14, %c0_15, %c0_16] : memref<1x4x8x8xbf16, #tpu.memory_space<vmem>>, vector<1x1x8x8xbf16>
    %23 = vector.shape_cast %22 : vector<1x1x8x8xbf16> to vector<8x8xbf16>
    %cst_17 = arith.constant dense<0.000000e+00> : vector<8x8xf32>
    %24 = tpu.matmul %21, %23, %cst_17 {dimension_numbers = #tpu.dot_dimension_numbers<[1], [0], [0], [1], [0, 0, 1, 1], [], []>} : vector<8x8xbf16>, vector<8x8xbf16>, vector<8x8xf32> -> vector<8x8xf32>
    %25 = arith.truncf %24 : vector<8x8xf32> to vector<8x8xbf16>
    %c0_18 = arith.constant 0 : index
    %c1 = arith.constant 1 : index
    %c0_19 = arith.constant 0 : index
    %c0_20 = arith.constant 0 : index
    %26 = vector.load %arg4[%c0_18, %c1, %c0_19, %c0_20] : memref<1x4x8x8xbf16, #tpu.memory_space<vmem>>, vector<1x1x8x8xbf16>
    %27 = vector.shape_cast %26 : vector<1x1x8x8xbf16> to vector<8x8xbf16>
    %c0_21 = arith.constant 0 : index
    %c1_22 = arith.constant 1 : index
    %c0_23 = arith.constant 0 : index
    %c0_24 = arith.constant 0 : index
    %28 = vector.load %arg5[%c0_21, %c1_22, %c0_23, %c0_24] : memref<1x4x8x8xbf16, #tpu.memory_space<vmem>>, vector<1x1x8x8xbf16>
    %29 = vector.shape_cast %28 : vector<1x1x8x8xbf16> to vector<8x8xbf16>
    %cst_25 = arith.constant dense<0.000000e+00> : vector<8x8xf32>
    %30 = tpu.matmul %27, %29, %cst_25 {dimension_numbers = #tpu.dot_dimension_numbers<[1], [1], [0], [0], [0, 0, 1, 0], [], []>} : vector<8x8xbf16>, vector<8x8xbf16>, vector<8x8xf32> -> vector<8x8xf32>
    %31 = vector.broadcast %3 : vector<1x8xf32> to vector<8x8xf32>
    %32 = arith.addf %30, %31 : vector<8x8xf32>
    %cst_26 = arith.constant dense<0xFF800000> : vector<8xf32>
    %33 = vector.multi_reduction <maximumf>, %32, %cst_26 [1] : vector<8x8xf32> to vector<8xf32>
    %34 = vector.shape_cast %33 : vector<8xf32> to vector<8x1xf32>
    %35 = vector.broadcast %34 : vector<8x1xf32> to vector<8x8xf32>
    %36 = arith.subf %32, %35 : vector<8x8xf32>
    %37 = math.exp %36 : vector<8x8xf32>
    %cst_27 = arith.constant dense<0.000000e+00> : vector<8xf32>
    %38 = vector.multi_reduction <add>, %37, %cst_27 [1] : vector<8x8xf32> to vector<8xf32>
    %39 = vector.shape_cast %38 : vector<8xf32> to vector<8x1xf32>
    %40 = tpu.reciprocal %39 {approx = true} : vector<8x1xf32> -> vector<8x1xf32>
    %41 = vector.broadcast %40 : vector<8x1xf32> to vector<8x8xf32>
    %42 = arith.mulf %37, %41 : vector<8x8xf32>
    %43 = arith.truncf %42 : vector<8x8xf32> to vector<8x8xbf16>
    %c0_28 = arith.constant 0 : index
    %c1_29 = arith.constant 1 : index
    %c0_30 = arith.constant 0 : index
    %c0_31 = arith.constant 0 : index
    %44 = vector.load %arg6[%c0_28, %c1_29, %c0_30, %c0_31] : memref<1x4x8x8xbf16, #tpu.memory_space<vmem>>, vector<1x1x8x8xbf16>
    %45 = vector.shape_cast %44 : vector<1x1x8x8xbf16> to vector<8x8xbf16>
    %cst_32 = arith.constant dense<0.000000e+00> : vector<8x8xf32>
    %46 = tpu.matmul %43, %45, %cst_32 {dimension_numbers = #tpu.dot_dimension_numbers<[1], [0], [0], [1], [0, 0, 1, 1], [], []>} : vector<8x8xbf16>, vector<8x8xbf16>, vector<8x8xf32> -> vector<8x8xf32>
    %47 = arith.truncf %46 : vector<8x8xf32> to vector<8x8xbf16>
    %c0_33 = arith.constant 0 : index
    %c2 = arith.constant 2 : index
    %c0_34 = arith.constant 0 : index
    %c0_35 = arith.constant 0 : index
    %48 = vector.load %arg4[%c0_33, %c2, %c0_34, %c0_35] : memref<1x4x8x8xbf16, #tpu.memory_space<vmem>>, vector<1x1x8x8xbf16>
    %49 = vector.shape_cast %48 : vector<1x1x8x8xbf16> to vector<8x8xbf16>
    %c0_36 = arith.constant 0 : index
    %c2_37 = arith.constant 2 : index
    %c0_38 = arith.constant 0 : index
    %c0_39 = arith.constant 0 : index
    %50 = vector.load %arg5[%c0_36, %c2_37, %c0_38, %c0_39] : memref<1x4x8x8xbf16, #tpu.memory_space<vmem>>, vector<1x1x8x8xbf16>
    %51 = vector.shape_cast %50 : vector<1x1x8x8xbf16> to vector<8x8xbf16>
    %cst_40 = arith.constant dense<0.000000e+00> : vector<8x8xf32>
    %52 = tpu.matmul %49, %51, %cst_40 {dimension_numbers = #tpu.dot_dimension_numbers<[1], [1], [0], [0], [0, 0, 1, 0], [], []>} : vector<8x8xbf16>, vector<8x8xbf16>, vector<8x8xf32> -> vector<8x8xf32>
    %53 = vector.broadcast %3 : vector<1x8xf32> to vector<8x8xf32>
    %54 = arith.addf %52, %53 : vector<8x8xf32>
    %cst_41 = arith.constant dense<0xFF800000> : vector<8xf32>
    %55 = vector.multi_reduction <maximumf>, %54, %cst_41 [1] : vector<8x8xf32> to vector<8xf32>
    %56 = vector.shape_cast %55 : vector<8xf32> to vector<8x1xf32>
    %57 = vector.broadcast %56 : vector<8x1xf32> to vector<8x8xf32>
    %58 = arith.subf %54, %57 : vector<8x8xf32>
    %59 = math.exp %58 : vector<8x8xf32>
    %cst_42 = arith.constant dense<0.000000e+00> : vector<8xf32>
    %60 = vector.multi_reduction <add>, %59, %cst_42 [1] : vector<8x8xf32> to vector<8xf32>
    %61 = vector.shape_cast %60 : vector<8xf32> to vector<8x1xf32>
    %62 = tpu.reciprocal %61 {approx = true} : vector<8x1xf32> -> vector<8x1xf32>
    %63 = vector.broadcast %62 : vector<8x1xf32> to vector<8x8xf32>
    %64 = arith.mulf %59, %63 : vector<8x8xf32>
    %65 = arith.truncf %64 : vector<8x8xf32> to vector<8x8xbf16>
    %c0_43 = arith.constant 0 : index
    %c2_44 = arith.constant 2 : index
    %c0_45 = arith.constant 0 : index
    %c0_46 = arith.constant 0 : index
    %66 = vector.load %arg6[%c0_43, %c2_44, %c0_45, %c0_46] : memref<1x4x8x8xbf16, #tpu.memory_space<vmem>>, vector<1x1x8x8xbf16>
    %67 = vector.shape_cast %66 : vector<1x1x8x8xbf16> to vector<8x8xbf16>
    %cst_47 = arith.constant dense<0.000000e+00> : vector<8x8xf32>
    %68 = tpu.matmul %65, %67, %cst_47 {dimension_numbers = #tpu.dot_dimension_numbers<[1], [0], [0], [1], [0, 0, 1, 1], [], []>} : vector<8x8xbf16>, vector<8x8xbf16>, vector<8x8xf32> -> vector<8x8xf32>
    %69 = arith.truncf %68 : vector<8x8xf32> to vector<8x8xbf16>
    %c0_48 = arith.constant 0 : index
    %c3 = arith.constant 3 : index
    %c0_49 = arith.constant 0 : index
    %c0_50 = arith.constant 0 : index
    %70 = vector.load %arg4[%c0_48, %c3, %c0_49, %c0_50] : memref<1x4x8x8xbf16, #tpu.memory_space<vmem>>, vector<1x1x8x8xbf16>
    %71 = vector.shape_cast %70 : vector<1x1x8x8xbf16> to vector<8x8xbf16>
    %c0_51 = arith.constant 0 : index
    %c3_52 = arith.constant 3 : index
    %c0_53 = arith.constant 0 : index
    %c0_54 = arith.constant 0 : index
    %72 = vector.load %arg5[%c0_51, %c3_52, %c0_53, %c0_54] : memref<1x4x8x8xbf16, #tpu.memory_space<vmem>>, vector<1x1x8x8xbf16>
    %73 = vector.shape_cast %72 : vector<1x1x8x8xbf16> to vector<8x8xbf16>
    %cst_55 = arith.constant dense<0.000000e+00> : vector<8x8xf32>
    %74 = tpu.matmul %71, %73, %cst_55 {dimension_numbers = #tpu.dot_dimension_numbers<[1], [1], [0], [0], [0, 0, 1, 0], [], []>} : vector<8x8xbf16>, vector<8x8xbf16>, vector<8x8xf32> -> vector<8x8xf32>
    %75 = vector.broadcast %3 : vector<1x8xf32> to vector<8x8xf32>
    %76 = arith.addf %74, %75 : vector<8x8xf32>
    %cst_56 = arith.constant dense<0xFF800000> : vector<8xf32>
    %77 = vector.multi_reduction <maximumf>, %76, %cst_56 [1] : vector<8x8xf32> to vector<8xf32>
    %78 = vector.shape_cast %77 : vector<8xf32> to vector<8x1xf32>
    %79 = vector.broadcast %78 : vector<8x1xf32> to vector<8x8xf32>
    %80 = arith.subf %76, %79 : vector<8x8xf32>
    %81 = math.exp %80 : vector<8x8xf32>
    %cst_57 = arith.constant dense<0.000000e+00> : vector<8xf32>
    %82 = vector.multi_reduction <add>, %81, %cst_57 [1] : vector<8x8xf32> to vector<8xf32>
    %83 = vector.shape_cast %82 : vector<8xf32> to vector<8x1xf32>
    %84 = tpu.reciprocal %83 {approx = true} : vector<8x1xf32> -> vector<8x1xf32>
    %85 = vector.broadcast %84 : vector<8x1xf32> to vector<8x8xf32>
    %86 = arith.mulf %81, %85 : vector<8x8xf32>
    %87 = arith.truncf %86 : vector<8x8xf32> to vector<8x8xbf16>
    %c0_58 = arith.constant 0 : index
    %c3_59 = arith.constant 3 : index
    %c0_60 = arith.constant 0 : index
    %c0_61 = arith.constant 0 : index
    %88 = vector.load %arg6[%c0_58, %c3_59, %c0_60, %c0_61] : memref<1x4x8x8xbf16, #tpu.memory_space<vmem>>, vector<1x1x8x8xbf16>
    %89 = vector.shape_cast %88 : vector<1x1x8x8xbf16> to vector<8x8xbf16>
    %cst_62 = arith.constant dense<0.000000e+00> : vector<8x8xf32>
    %90 = tpu.matmul %87, %89, %cst_62 {dimension_numbers = #tpu.dot_dimension_numbers<[1], [0], [0], [1], [0, 0, 1, 1], [], []>} : vector<8x8xbf16>, vector<8x8xbf16>, vector<8x8xf32> -> vector<8x8xf32>
    %91 = arith.truncf %90 : vector<8x8xf32> to vector<8x8xbf16>
    %92 = tpu.concatenate %25, %47, %69, %91 in 1 : vector<8x8xbf16>, vector<8x8xbf16>, vector<8x8xbf16>, vector<8x8xbf16> -> vector<8x32xbf16>
    %c0_63 = arith.constant 0 : index
    %c0_64 = arith.constant 0 : index
    %93 = vector.load %arg7[%c0_63, %c0_64] : memref<32x32xbf16, #tpu.memory_space<vmem>>, vector<32x32xbf16>
    %cst_65 = arith.constant dense<0.000000e+00> : vector<8x32xf32>
    %94 = tpu.matmul %92, %93, %cst_65 {dimension_numbers = #tpu.dot_dimension_numbers<[1], [0], [0], [1], [0, 0, 1, 1], [], []>} : vector<8x32xbf16>, vector<32x32xbf16>, vector<8x32xf32> -> vector<8x32xf32>
    %c0_66 = arith.constant 0 : index
    %c0_67 = arith.constant 0 : index
    %95 = vector.load %arg8[%c0_66, %c0_67] : memref<1x32xf32, #tpu.memory_space<vmem>>, vector<1x32xf32>
    %96 = vector.broadcast %95 : vector<1x32xf32> to vector<8x32xf32>
    %97 = arith.addf %94, %96 : vector<8x32xf32>
    %c0_68 = arith.constant 0 : index
    %c0_69 = arith.constant 0 : index
    %c0_70 = arith.constant 0 : index
    %98 = vector.load %arg2[%c0_68, %c0_69, %c0_70] : memref<1x8x1xf32, #tpu.memory_space<vmem>>, vector<1x8x1xf32>
    %99 = vector.shape_cast %98 : vector<1x8x1xf32> to vector<8x1xf32>
    %cst_71 = arith.constant 1.000000e+00 : f32
    %100 = vector.broadcast %cst_71 : f32 to vector<8x1xf32>
    %101 = arith.subf %100, %99 : vector<8x1xf32>
    %102 = vector.broadcast %101 : vector<8x1xf32> to vector<8x32xf32>
    %103 = arith.mulf %97, %102 : vector<8x32xf32>
    %c0_72 = arith.constant 0 : index
    %c0_73 = arith.constant 0 : index
    %c0_74 = arith.constant 0 : index
    %104 = vector.load %arg9[%c0_72, %c0_73, %c0_74] : memref<1x8x32xbf16, #tpu.memory_space<vmem>>, vector<1x8x32xbf16>
    %105 = vector.shape_cast %104 : vector<1x8x32xbf16> to vector<8x32xbf16>
    %106 = arith.extf %105 : vector<8x32xbf16> to vector<8x32xf32>
    %107 = arith.addf %106, %103 : vector<8x32xf32>
    %108 = arith.truncf %107 : vector<8x32xf32> to vector<8x32xbf16>
    %c0_75 = arith.constant 0 : index
    %c0_76 = arith.constant 0 : index
    %c0_77 = arith.constant 0 : index
    %109 = vector.load %arg10[%c0_75, %c0_76, %c0_77] : memref<1x8x32xbf16, #tpu.memory_space<vmem>>, vector<1x8x32xbf16>
    %110 = vector.shape_cast %109 : vector<1x8x32xbf16> to vector<8x32xbf16>
    %111 = vector.shape_cast %108 : vector<8x32xbf16> to vector<1x8x32xbf16>
    tpu.vector_store %arg10[%c0_75, %c0_76, %c0_77], %111 {strides = array<i32>} : memref<1x8x32xbf16, #tpu.memory_space<vmem>>, vector<1x8x32xbf16>,
    return
  }
  func.func @transform_0(%arg0: i32, %arg1: i32) -> (i32, i32, i32) {
    %c0_i32 = arith.constant 0 : i32
    %c0_i32_0 = arith.constant 0 : i32
    return %arg0, %arg1, %c0_i32 : i32, i32, i32
  }
  func.func @transform_1(%arg0: i32, %arg1: i32) -> (i32, i32, i32) {
    %c0_i32 = arith.constant 0 : i32
    %c0_i32_0 = arith.constant 0 : i32
    %c0_i32_1 = arith.constant 0 : i32
    return %arg0, %c0_i32, %c0_i32_0 : i32, i32, i32
  }
  func.func @transform_2(%arg0: i32, %arg1: i32) -> (i32, i32, i32, i32) {
    %c0_i32 = arith.constant 0 : i32
    %c0_i32_0 = arith.constant 0 : i32
    %c0_i32_1 = arith.constant 0 : i32
    return %arg0, %c0_i32, %arg1, %c0_i32_0 : i32, i32, i32, i32
  }
  func.func @transform_3(%arg0: i32, %arg1: i32) -> (i32, i32, i32, i32) {
    %c0_i32 = arith.constant 0 : i32
    %c0_i32_0 = arith.constant 0 : i32
    %c0_i32_1 = arith.constant 0 : i32
    %c0_i32_2 = arith.constant 0 : i32
    return %arg0, %c0_i32, %c0_i32_0, %c0_i32_1 : i32, i32, i32, i32
  }
  func.func @transform_4(%arg0: i32, %arg1: i32) -> (i32, i32, i32, i32) {
    %c0_i32 = arith.constant 0 : i32
    %c0_i32_0 = arith.constant 0 : i32
    %c0_i32_1 = arith.constant 0 : i32
    %c0_i32_2 = arith.constant 0 : i32
    return %arg0, %c0_i32, %c0_i32_0, %c0_i32_1 : i32, i32, i32, i32
  }
  func.func @transform_5(%arg0: i32, %arg1: i32) -> (i32, i32) {
    %c0_i32 = arith.constant 0 : i32
    %c0_i32_0 = arith.constant 0 : i32
    %c0_i32_1 = arith.constant 0 : i32
    return %c0_i32, %c0_i32_0 : i32, i32
  }
  func.func @transform_6(%arg0: i32, %arg1: i32) -> (i32, i32) {
    %c0_i32 = arith.constant 0 : i32
    %c0_i32_0 = arith.constant 0 : i32
    %c0_i32_1 = arith.constant 0 : i32
    return %c0_i32, %c0_i32_0 : i32, i32
  }
  func.func @transform_7(%arg0: i32, %arg1: i32) -> (i32, i32, i32) {
    %c0_i32 = arith.constant 0 : i32
    %c0_i32_0 = arith.constant 0 : i32
    return %arg0, %arg1, %c0_i32 : i32, i32, i32
  }
  func.func @transform_8(%arg0: i32, %arg1: i32) -> (i32, i32, i32) {
    %c0_i32 = arith.constant 0 : i32
    %c0_i32_0 = arith.constant 0 : i32
    return %arg0, %arg1, %c0_i32 : i32, i32, i32
  }
}

module attributes {stable_mosaic.version = 11 : i64} {
  func.func @_matmul_kernel(%arg0: i32, %arg1: i32, %arg2: i32, %arg3: memref<40x128xbf16, #tpu.memory_space<vmem>>, %arg4: memref<128x128xbf16, #tpu.memory_space<vmem>>, %arg5: memref<1x128xf32, #tpu.memory_space<vmem>>, %arg6: memref<40x128xbf16, #tpu.memory_space<vmem>>, %arg7: memref<40x128xf32, #tpu.memory_space<vmem>>) attributes {dimension_semantics = [#tpu.dimension_semantics<parallel>, #tpu.dimension_semantics<parallel>, #tpu.dimension_semantics<arbitrary>], iteration_bounds = array<i64: 1, 1, 1>, scalar_prefetch = 0 : i64, scratch_operands = 1 : i64, tpu.core_type = #tpu.core_type<tc>, window_params = [{transform_indices = @transform_0, window_bounds = array<i64: 40, 128>}, {transform_indices = @transform_1, window_bounds = array<i64: 128, 128>}, {transform_indices = @transform_2, window_bounds = array<i64: 1, 128>}, {transform_indices = @transform_3, window_bounds = array<i64: 40, 128>}]} {
    %c0_i32 = arith.constant 0 : i32
    %0 = arith.cmpi eq, %arg2, %c0_i32 : i32
    %1 = arith.extui %0 : i1 to i32
    %c0_i32_0 = arith.constant 0 : i32
    %2 = arith.cmpi ne, %1, %c0_i32_0 : i32
    scf.if %2 {
      %cst_10 = arith.constant 0.000000e+00 : f32
      %12 = vector.broadcast %cst_10 : f32 to vector<40x128xf32>
      %c0_11 = arith.constant 0 : index
      %c0_12 = arith.constant 0 : index
      %13 = vector.load %arg7[%c0_11, %c0_12] : memref<40x128xf32, #tpu.memory_space<vmem>>, vector<40x128xf32>
      tpu.vector_store %arg7[%c0_11, %c0_12], %12 {strides = array<i32>} : memref<40x128xf32, #tpu.memory_space<vmem>>, vector<40x128xf32>,
    } else {
    }
    %c0 = arith.constant 0 : index
    %c0_1 = arith.constant 0 : index
    %3 = vector.load %arg7[%c0, %c0_1] : memref<40x128xf32, #tpu.memory_space<vmem>>, vector<40x128xf32>
    %c0_2 = arith.constant 0 : index
    %c0_3 = arith.constant 0 : index
    %4 = vector.load %arg3[%c0_2, %c0_3] : memref<40x128xbf16, #tpu.memory_space<vmem>>, vector<40x128xbf16>
    %c0_4 = arith.constant 0 : index
    %c0_5 = arith.constant 0 : index
    %5 = vector.load %arg4[%c0_4, %c0_5] : memref<128x128xbf16, #tpu.memory_space<vmem>>, vector<128x128xbf16>
    %cst = arith.constant dense<0.000000e+00> : vector<40x128xf32>
    %6 = tpu.matmul %4, %5, %cst {dimension_numbers = #tpu.dot_dimension_numbers<[1], [0], [0], [1], [0, 0, 1, 1], [], []>} : vector<40x128xbf16>, vector<128x128xbf16>, vector<40x128xf32> -> vector<40x128xf32>
    %7 = arith.addf %3, %6 : vector<40x128xf32>
    %c0_6 = arith.constant 0 : index
    %c0_7 = arith.constant 0 : index
    %8 = vector.load %arg7[%c0_6, %c0_7] : memref<40x128xf32, #tpu.memory_space<vmem>>, vector<40x128xf32>
    tpu.vector_store %arg7[%c0_6, %c0_7], %7 {strides = array<i32>} : memref<40x128xf32, #tpu.memory_space<vmem>>, vector<40x128xf32>,
    %c0_i32_8 = arith.constant 0 : i32
    %9 = arith.cmpi eq, %arg2, %c0_i32_8 : i32
    %10 = arith.extui %9 : i1 to i32
    %c0_i32_9 = arith.constant 0 : i32
    %11 = arith.cmpi ne, %10, %c0_i32_9 : i32
    scf.if %11 {
      %c0_10 = arith.constant 0 : index
      %c0_11 = arith.constant 0 : index
      %12 = vector.load %arg7[%c0_10, %c0_11] : memref<40x128xf32, #tpu.memory_space<vmem>>, vector<40x128xf32>
      %c0_12 = arith.constant 0 : index
      %c0_13 = arith.constant 0 : index
      %13 = vector.load %arg5[%c0_12, %c0_13] : memref<1x128xf32, #tpu.memory_space<vmem>>, vector<1x128xf32>
      %14 = vector.broadcast %13 : vector<1x128xf32> to vector<40x128xf32>
      %15 = arith.addf %12, %14 : vector<40x128xf32>
      %16 = arith.truncf %15 : vector<40x128xf32> to vector<40x128xbf16>
      %c0_14 = arith.constant 0 : index
      %c0_15 = arith.constant 0 : index
      %17 = vector.load %arg6[%c0_14, %c0_15] : memref<40x128xbf16, #tpu.memory_space<vmem>>, vector<40x128xbf16>
      tpu.vector_store %arg6[%c0_14, %c0_15], %16 {strides = array<i32>} : memref<40x128xbf16, #tpu.memory_space<vmem>>, vector<40x128xbf16>,
    } else {
    }
    return
  }
  func.func @transform_0(%arg0: i32, %arg1: i32, %arg2: i32) -> (i32, i32) {
    %c0_i32 = arith.constant 0 : i32
    return %arg0, %arg2 : i32, i32
  }
  func.func @transform_1(%arg0: i32, %arg1: i32, %arg2: i32) -> (i32, i32) {
    %c0_i32 = arith.constant 0 : i32
    return %arg2, %arg1 : i32, i32
  }
  func.func @transform_2(%arg0: i32, %arg1: i32, %arg2: i32) -> (i32, i32) {
    %c0_i32 = arith.constant 0 : i32
    %c0_i32_0 = arith.constant 0 : i32
    return %c0_i32, %arg1 : i32, i32
  }
  func.func @transform_3(%arg0: i32, %arg1: i32, %arg2: i32) -> (i32, i32) {
    %c0_i32 = arith.constant 0 : i32
    return %arg0, %arg1 : i32, i32
  }
}

module attributes {stable_mosaic.version = 11 : i64} {
  func.func @_attn_cross_kernel(%arg0: i32, %arg1: i32, %arg2: memref<1x8x1xf32, #tpu.memory_space<vmem>>, %arg3: memref<1x4x8x8xbf16, #tpu.memory_space<vmem>>, %arg4: memref<1x4x19x8xbf16, #tpu.memory_space<vmem>>, %arg5: memref<1x4x19x8xbf16, #tpu.memory_space<vmem>>, %arg6: memref<32x32xbf16, #tpu.memory_space<vmem>>, %arg7: memref<1x32xf32, #tpu.memory_space<vmem>>, %arg8: memref<1x8x32xbf16, #tpu.memory_space<vmem>>, %arg9: memref<1x8x32xbf16, #tpu.memory_space<vmem>>) attributes {dimension_semantics = [#tpu.dimension_semantics<parallel>, #tpu.dimension_semantics<parallel>], iteration_bounds = array<i64: 2, 1>, scalar_prefetch = 0 : i64, scratch_operands = 0 : i64, tpu.core_type = #tpu.core_type<tc>, window_params = [{transform_indices = @transform_0, window_bounds = array<i64: 1, 8, 1>}, {transform_indices = @transform_1, window_bounds = array<i64: 1, 4, 8, 8>}, {transform_indices = @transform_2, window_bounds = array<i64: 1, 4, 19, 8>}, {transform_indices = @transform_3, window_bounds = array<i64: 1, 4, 19, 8>}, {pipeline_mode = #tpu.pipeline_mode<synchronous>, transform_indices = @transform_4, window_bounds = array<i64: 32, 32>}, {pipeline_mode = #tpu.pipeline_mode<synchronous>, transform_indices = @transform_5, window_bounds = array<i64: 1, 32>}, {transform_indices = @transform_6, window_bounds = array<i64: 1, 8, 32>}, {transform_indices = @transform_7, window_bounds = array<i64: 1, 8, 32>}]} {
    %c0 = arith.constant 0 : index
    %c0_0 = arith.constant 0 : index
    %c0_1 = arith.constant 0 : index
    %c0_2 = arith.constant 0 : index
    %0 = vector.load %arg3[%c0, %c0_0, %c0_1, %c0_2] : memref<1x4x8x8xbf16, #tpu.memory_space<vmem>>, vector<1x1x8x8xbf16>
    %1 = vector.shape_cast %0 : vector<1x1x8x8xbf16> to vector<8x8xbf16>
    %c0_3 = arith.constant 0 : index
    %c0_4 = arith.constant 0 : index
    %c0_5 = arith.constant 0 : index
    %c0_6 = arith.constant 0 : index
    %2 = vector.load %arg4[%c0_3, %c0_4, %c0_5, %c0_6] : memref<1x4x19x8xbf16, #tpu.memory_space<vmem>>, vector<1x1x19x8xbf16>
    %3 = vector.shape_cast %2 : vector<1x1x19x8xbf16> to vector<19x8xbf16>
    %cst = arith.constant dense<0.000000e+00> : vector<8x19xf32>
    %4 = tpu.matmul %1, %3, %cst {dimension_numbers = #tpu.dot_dimension_numbers<[1], [1], [0], [0], [0, 0, 1, 0], [], []>} : vector<8x8xbf16>, vector<19x8xbf16>, vector<8x19xf32> -> vector<8x19xf32>
    %cst_7 = arith.constant dense<0xFF800000> : vector<8xf32>
    %5 = vector.multi_reduction <maximumf>, %4, %cst_7 [1] : vector<8x19xf32> to vector<8xf32>
    %6 = vector.shape_cast %5 : vector<8xf32> to vector<8x1xf32>
    %7 = vector.broadcast %6 : vector<8x1xf32> to vector<8x19xf32>
    %8 = arith.subf %4, %7 : vector<8x19xf32>
    %9 = math.exp %8 : vector<8x19xf32>
    %cst_8 = arith.constant dense<0.000000e+00> : vector<8xf32>
    %10 = vector.multi_reduction <add>, %9, %cst_8 [1] : vector<8x19xf32> to vector<8xf32>
    %11 = vector.shape_cast %10 : vector<8xf32> to vector<8x1xf32>
    %12 = tpu.reciprocal %11 {approx = true} : vector<8x1xf32> -> vector<8x1xf32>
    %13 = vector.broadcast %12 : vector<8x1xf32> to vector<8x19xf32>
    %14 = arith.mulf %9, %13 : vector<8x19xf32>
    %15 = arith.truncf %14 : vector<8x19xf32> to vector<8x19xbf16>
    %c0_9 = arith.constant 0 : index
    %c0_10 = arith.constant 0 : index
    %c0_11 = arith.constant 0 : index
    %c0_12 = arith.constant 0 : index
    %16 = vector.load %arg5[%c0_9, %c0_10, %c0_11, %c0_12] : memref<1x4x19x8xbf16, #tpu.memory_space<vmem>>, vector<1x1x19x8xbf16>
    %17 = vector.shape_cast %16 : vector<1x1x19x8xbf16> to vector<19x8xbf16>
    %cst_13 = arith.constant dense<0.000000e+00> : vector<8x8xf32>
    %18 = tpu.matmul %15, %17, %cst_13 {dimension_numbers = #tpu.dot_dimension_numbers<[1], [0], [0], [1], [0, 0, 1, 1], [], []>} : vector<8x19xbf16>, vector<19x8xbf16>, vector<8x8xf32> -> vector<8x8xf32>
    %19 = arith.truncf %18 : vector<8x8xf32> to vector<8x8xbf16>
    %c0_14 = arith.constant 0 : index
    %c1 = arith.constant 1 : index
    %c0_15 = arith.constant 0 : index
    %c0_16 = arith.constant 0 : index
    %20 = vector.load %arg3[%c0_14, %c1, %c0_15, %c0_16] : memref<1x4x8x8xbf16, #tpu.memory_space<vmem>>, vector<1x1x8x8xbf16>
    %21 = vector.shape_cast %20 : vector<1x1x8x8xbf16> to vector<8x8xbf16>
    %c0_17 = arith.constant 0 : index
    %c1_18 = arith.constant 1 : index
    %c0_19 = arith.constant 0 : index
    %c0_20 = arith.constant 0 : index
    %22 = vector.load %arg4[%c0_17, %c1_18, %c0_19, %c0_20] : memref<1x4x19x8xbf16, #tpu.memory_space<vmem>>, vector<1x1x19x8xbf16>
    %23 = vector.shape_cast %22 : vector<1x1x19x8xbf16> to vector<19x8xbf16>
    %cst_21 = arith.constant dense<0.000000e+00> : vector<8x19xf32>
    %24 = tpu.matmul %21, %23, %cst_21 {dimension_numbers = #tpu.dot_dimension_numbers<[1], [1], [0], [0], [0, 0, 1, 0], [], []>} : vector<8x8xbf16>, vector<19x8xbf16>, vector<8x19xf32> -> vector<8x19xf32>
    %cst_22 = arith.constant dense<0xFF800000> : vector<8xf32>
    %25 = vector.multi_reduction <maximumf>, %24, %cst_22 [1] : vector<8x19xf32> to vector<8xf32>
    %26 = vector.shape_cast %25 : vector<8xf32> to vector<8x1xf32>
    %27 = vector.broadcast %26 : vector<8x1xf32> to vector<8x19xf32>
    %28 = arith.subf %24, %27 : vector<8x19xf32>
    %29 = math.exp %28 : vector<8x19xf32>
    %cst_23 = arith.constant dense<0.000000e+00> : vector<8xf32>
    %30 = vector.multi_reduction <add>, %29, %cst_23 [1] : vector<8x19xf32> to vector<8xf32>
    %31 = vector.shape_cast %30 : vector<8xf32> to vector<8x1xf32>
    %32 = tpu.reciprocal %31 {approx = true} : vector<8x1xf32> -> vector<8x1xf32>
    %33 = vector.broadcast %32 : vector<8x1xf32> to vector<8x19xf32>
    %34 = arith.mulf %29, %33 : vector<8x19xf32>
    %35 = arith.truncf %34 : vector<8x19xf32> to vector<8x19xbf16>
    %c0_24 = arith.constant 0 : index
    %c1_25 = arith.constant 1 : index
    %c0_26 = arith.constant 0 : index
    %c0_27 = arith.constant 0 : index
    %36 = vector.load %arg5[%c0_24, %c1_25, %c0_26, %c0_27] : memref<1x4x19x8xbf16, #tpu.memory_space<vmem>>, vector<1x1x19x8xbf16>
    %37 = vector.shape_cast %36 : vector<1x1x19x8xbf16> to vector<19x8xbf16>
    %cst_28 = arith.constant dense<0.000000e+00> : vector<8x8xf32>
    %38 = tpu.matmul %35, %37, %cst_28 {dimension_numbers = #tpu.dot_dimension_numbers<[1], [0], [0], [1], [0, 0, 1, 1], [], []>} : vector<8x19xbf16>, vector<19x8xbf16>, vector<8x8xf32> -> vector<8x8xf32>
    %39 = arith.truncf %38 : vector<8x8xf32> to vector<8x8xbf16>
    %c0_29 = arith.constant 0 : index
    %c2 = arith.constant 2 : index
    %c0_30 = arith.constant 0 : index
    %c0_31 = arith.constant 0 : index
    %40 = vector.load %arg3[%c0_29, %c2, %c0_30, %c0_31] : memref<1x4x8x8xbf16, #tpu.memory_space<vmem>>, vector<1x1x8x8xbf16>
    %41 = vector.shape_cast %40 : vector<1x1x8x8xbf16> to vector<8x8xbf16>
    %c0_32 = arith.constant 0 : index
    %c2_33 = arith.constant 2 : index
    %c0_34 = arith.constant 0 : index
    %c0_35 = arith.constant 0 : index
    %42 = vector.load %arg4[%c0_32, %c2_33, %c0_34, %c0_35] : memref<1x4x19x8xbf16, #tpu.memory_space<vmem>>, vector<1x1x19x8xbf16>
    %43 = vector.shape_cast %42 : vector<1x1x19x8xbf16> to vector<19x8xbf16>
    %cst_36 = arith.constant dense<0.000000e+00> : vector<8x19xf32>
    %44 = tpu.matmul %41, %43, %cst_36 {dimension_numbers = #tpu.dot_dimension_numbers<[1], [1], [0], [0], [0, 0, 1, 0], [], []>} : vector<8x8xbf16>, vector<19x8xbf16>, vector<8x19xf32> -> vector<8x19xf32>
    %cst_37 = arith.constant dense<0xFF800000> : vector<8xf32>
    %45 = vector.multi_reduction <maximumf>, %44, %cst_37 [1] : vector<8x19xf32> to vector<8xf32>
    %46 = vector.shape_cast %45 : vector<8xf32> to vector<8x1xf32>
    %47 = vector.broadcast %46 : vector<8x1xf32> to vector<8x19xf32>
    %48 = arith.subf %44, %47 : vector<8x19xf32>
    %49 = math.exp %48 : vector<8x19xf32>
    %cst_38 = arith.constant dense<0.000000e+00> : vector<8xf32>
    %50 = vector.multi_reduction <add>, %49, %cst_38 [1] : vector<8x19xf32> to vector<8xf32>
    %51 = vector.shape_cast %50 : vector<8xf32> to vector<8x1xf32>
    %52 = tpu.reciprocal %51 {approx = true} : vector<8x1xf32> -> vector<8x1xf32>
    %53 = vector.broadcast %52 : vector<8x1xf32> to vector<8x19xf32>
    %54 = arith.mulf %49, %53 : vector<8x19xf32>
    %55 = arith.truncf %54 : vector<8x19xf32> to vector<8x19xbf16>
    %c0_39 = arith.constant 0 : index
    %c2_40 = arith.constant 2 : index
    %c0_41 = arith.constant 0 : index
    %c0_42 = arith.constant 0 : index
    %56 = vector.load %arg5[%c0_39, %c2_40, %c0_41, %c0_42] : memref<1x4x19x8xbf16, #tpu.memory_space<vmem>>, vector<1x1x19x8xbf16>
    %57 = vector.shape_cast %56 : vector<1x1x19x8xbf16> to vector<19x8xbf16>
    %cst_43 = arith.constant dense<0.000000e+00> : vector<8x8xf32>
    %58 = tpu.matmul %55, %57, %cst_43 {dimension_numbers = #tpu.dot_dimension_numbers<[1], [0], [0], [1], [0, 0, 1, 1], [], []>} : vector<8x19xbf16>, vector<19x8xbf16>, vector<8x8xf32> -> vector<8x8xf32>
    %59 = arith.truncf %58 : vector<8x8xf32> to vector<8x8xbf16>
    %c0_44 = arith.constant 0 : index
    %c3 = arith.constant 3 : index
    %c0_45 = arith.constant 0 : index
    %c0_46 = arith.constant 0 : index
    %60 = vector.load %arg3[%c0_44, %c3, %c0_45, %c0_46] : memref<1x4x8x8xbf16, #tpu.memory_space<vmem>>, vector<1x1x8x8xbf16>
    %61 = vector.shape_cast %60 : vector<1x1x8x8xbf16> to vector<8x8xbf16>
    %c0_47 = arith.constant 0 : index
    %c3_48 = arith.constant 3 : index
    %c0_49 = arith.constant 0 : index
    %c0_50 = arith.constant 0 : index
    %62 = vector.load %arg4[%c0_47, %c3_48, %c0_49, %c0_50] : memref<1x4x19x8xbf16, #tpu.memory_space<vmem>>, vector<1x1x19x8xbf16>
    %63 = vector.shape_cast %62 : vector<1x1x19x8xbf16> to vector<19x8xbf16>
    %cst_51 = arith.constant dense<0.000000e+00> : vector<8x19xf32>
    %64 = tpu.matmul %61, %63, %cst_51 {dimension_numbers = #tpu.dot_dimension_numbers<[1], [1], [0], [0], [0, 0, 1, 0], [], []>} : vector<8x8xbf16>, vector<19x8xbf16>, vector<8x19xf32> -> vector<8x19xf32>
    %cst_52 = arith.constant dense<0xFF800000> : vector<8xf32>
    %65 = vector.multi_reduction <maximumf>, %64, %cst_52 [1] : vector<8x19xf32> to vector<8xf32>
    %66 = vector.shape_cast %65 : vector<8xf32> to vector<8x1xf32>
    %67 = vector.broadcast %66 : vector<8x1xf32> to vector<8x19xf32>
    %68 = arith.subf %64, %67 : vector<8x19xf32>
    %69 = math.exp %68 : vector<8x19xf32>
    %cst_53 = arith.constant dense<0.000000e+00> : vector<8xf32>
    %70 = vector.multi_reduction <add>, %69, %cst_53 [1] : vector<8x19xf32> to vector<8xf32>
    %71 = vector.shape_cast %70 : vector<8xf32> to vector<8x1xf32>
    %72 = tpu.reciprocal %71 {approx = true} : vector<8x1xf32> -> vector<8x1xf32>
    %73 = vector.broadcast %72 : vector<8x1xf32> to vector<8x19xf32>
    %74 = arith.mulf %69, %73 : vector<8x19xf32>
    %75 = arith.truncf %74 : vector<8x19xf32> to vector<8x19xbf16>
    %c0_54 = arith.constant 0 : index
    %c3_55 = arith.constant 3 : index
    %c0_56 = arith.constant 0 : index
    %c0_57 = arith.constant 0 : index
    %76 = vector.load %arg5[%c0_54, %c3_55, %c0_56, %c0_57] : memref<1x4x19x8xbf16, #tpu.memory_space<vmem>>, vector<1x1x19x8xbf16>
    %77 = vector.shape_cast %76 : vector<1x1x19x8xbf16> to vector<19x8xbf16>
    %cst_58 = arith.constant dense<0.000000e+00> : vector<8x8xf32>
    %78 = tpu.matmul %75, %77, %cst_58 {dimension_numbers = #tpu.dot_dimension_numbers<[1], [0], [0], [1], [0, 0, 1, 1], [], []>} : vector<8x19xbf16>, vector<19x8xbf16>, vector<8x8xf32> -> vector<8x8xf32>
    %79 = arith.truncf %78 : vector<8x8xf32> to vector<8x8xbf16>
    %80 = tpu.concatenate %19, %39, %59, %79 in 1 : vector<8x8xbf16>, vector<8x8xbf16>, vector<8x8xbf16>, vector<8x8xbf16> -> vector<8x32xbf16>
    %c0_59 = arith.constant 0 : index
    %c0_60 = arith.constant 0 : index
    %81 = vector.load %arg6[%c0_59, %c0_60] : memref<32x32xbf16, #tpu.memory_space<vmem>>, vector<32x32xbf16>
    %cst_61 = arith.constant dense<0.000000e+00> : vector<8x32xf32>
    %82 = tpu.matmul %80, %81, %cst_61 {dimension_numbers = #tpu.dot_dimension_numbers<[1], [0], [0], [1], [0, 0, 1, 1], [], []>} : vector<8x32xbf16>, vector<32x32xbf16>, vector<8x32xf32> -> vector<8x32xf32>
    %c0_62 = arith.constant 0 : index
    %c0_63 = arith.constant 0 : index
    %83 = vector.load %arg7[%c0_62, %c0_63] : memref<1x32xf32, #tpu.memory_space<vmem>>, vector<1x32xf32>
    %84 = vector.broadcast %83 : vector<1x32xf32> to vector<8x32xf32>
    %85 = arith.addf %82, %84 : vector<8x32xf32>
    %c0_64 = arith.constant 0 : index
    %c0_65 = arith.constant 0 : index
    %c0_66 = arith.constant 0 : index
    %86 = vector.load %arg2[%c0_64, %c0_65, %c0_66] : memref<1x8x1xf32, #tpu.memory_space<vmem>>, vector<1x8x1xf32>
    %87 = vector.shape_cast %86 : vector<1x8x1xf32> to vector<8x1xf32>
    %cst_67 = arith.constant 1.000000e+00 : f32
    %88 = vector.broadcast %cst_67 : f32 to vector<8x1xf32>
    %89 = arith.subf %88, %87 : vector<8x1xf32>
    %90 = vector.broadcast %89 : vector<8x1xf32> to vector<8x32xf32>
    %91 = arith.mulf %85, %90 : vector<8x32xf32>
    %c0_68 = arith.constant 0 : index
    %c0_69 = arith.constant 0 : index
    %c0_70 = arith.constant 0 : index
    %92 = vector.load %arg8[%c0_68, %c0_69, %c0_70] : memref<1x8x32xbf16, #tpu.memory_space<vmem>>, vector<1x8x32xbf16>
    %93 = vector.shape_cast %92 : vector<1x8x32xbf16> to vector<8x32xbf16>
    %94 = arith.extf %93 : vector<8x32xbf16> to vector<8x32xf32>
    %95 = arith.addf %94, %91 : vector<8x32xf32>
    %96 = arith.truncf %95 : vector<8x32xf32> to vector<8x32xbf16>
    %c0_71 = arith.constant 0 : index
    %c0_72 = arith.constant 0 : index
    %c0_73 = arith.constant 0 : index
    %97 = vector.load %arg9[%c0_71, %c0_72, %c0_73] : memref<1x8x32xbf16, #tpu.memory_space<vmem>>, vector<1x8x32xbf16>
    %98 = vector.shape_cast %97 : vector<1x8x32xbf16> to vector<8x32xbf16>
    %99 = vector.shape_cast %96 : vector<8x32xbf16> to vector<1x8x32xbf16>
    tpu.vector_store %arg9[%c0_71, %c0_72, %c0_73], %99 {strides = array<i32>} : memref<1x8x32xbf16, #tpu.memory_space<vmem>>, vector<1x8x32xbf16>,
    return
  }
  func.func @transform_0(%arg0: i32, %arg1: i32) -> (i32, i32, i32) {
    %c0_i32 = arith.constant 0 : i32
    %c0_i32_0 = arith.constant 0 : i32
    return %arg0, %arg1, %c0_i32 : i32, i32, i32
  }
  func.func @transform_1(%arg0: i32, %arg1: i32) -> (i32, i32, i32, i32) {
    %c0_i32 = arith.constant 0 : i32
    %c0_i32_0 = arith.constant 0 : i32
    %c0_i32_1 = arith.constant 0 : i32
    return %arg0, %c0_i32, %arg1, %c0_i32_0 : i32, i32, i32, i32
  }
  func.func @transform_2(%arg0: i32, %arg1: i32) -> (i32, i32, i32, i32) {
    %c0_i32 = arith.constant 0 : i32
    %c0_i32_0 = arith.constant 0 : i32
    %c0_i32_1 = arith.constant 0 : i32
    %c0_i32_2 = arith.constant 0 : i32
    return %arg0, %c0_i32, %c0_i32_0, %c0_i32_1 : i32, i32, i32, i32
  }
  func.func @transform_3(%arg0: i32, %arg1: i32) -> (i32, i32, i32, i32) {
    %c0_i32 = arith.constant 0 : i32
    %c0_i32_0 = arith.constant 0 : i32
    %c0_i32_1 = arith.constant 0 : i32
    %c0_i32_2 = arith.constant 0 : i32
    return %arg0, %c0_i32, %c0_i32_0, %c0_i32_1 : i32, i32, i32, i32
  }
  func.func @transform_4(%arg0: i32, %arg1: i32) -> (i32, i32) {
    %c0_i32 = arith.constant 0 : i32
    %c0_i32_0 = arith.constant 0 : i32
    %c0_i32_1 = arith.constant 0 : i32
    return %c0_i32, %c0_i32_0 : i32, i32
  }
  func.func @transform_5(%arg0: i32, %arg1: i32) -> (i32, i32) {
    %c0_i32 = arith.constant 0 : i32
    %c0_i32_0 = arith.constant 0 : i32
    %c0_i32_1 = arith.constant 0 : i32
    return %c0_i32, %c0_i32_0 : i32, i32
  }
  func.func @transform_6(%arg0: i32, %arg1: i32) -> (i32, i32, i32) {
    %c0_i32 = arith.constant 0 : i32
    %c0_i32_0 = arith.constant 0 : i32
    return %arg0, %arg1, %c0_i32 : i32, i32, i32
  }
  func.func @transform_7(%arg0: i32, %arg1: i32) -> (i32, i32, i32) {
    %c0_i32 = arith.constant 0 : i32
    %c0_i32_0 = arith.constant 0 : i32
    return %arg0, %arg1, %c0_i32 : i32, i32, i32
  }
}

module attributes {stable_mosaic.version = 11 : i64} {
  func.func @_ln_matmul_kernel(%arg0: i32, %arg1: i32, %arg2: memref<1x8x32xbf16, #tpu.memory_space<vmem>>, %arg3: memref<1x1x32xf32, #tpu.memory_space<vmem>>, %arg4: memref<1x1x32xf32, #tpu.memory_space<vmem>>, %arg5: memref<32x128xbf16, #tpu.memory_space<vmem>>, %arg6: memref<1x128xf32, #tpu.memory_space<vmem>>, %arg7: memref<1x8x128xbf16, #tpu.memory_space<vmem>>, %arg8: memref<8x32xbf16, #tpu.memory_space<vmem>>) attributes {dimension_semantics = [#tpu.dimension_semantics<parallel>, #tpu.dimension_semantics<arbitrary>], iteration_bounds = array<i64: 2, 1>, scalar_prefetch = 0 : i64, scratch_operands = 1 : i64, tpu.core_type = #tpu.core_type<tc>, window_params = [{transform_indices = @transform_0, window_bounds = array<i64: 1, 8, 32>}, {transform_indices = @transform_1, window_bounds = array<i64: 1, 1, 32>}, {transform_indices = @transform_2, window_bounds = array<i64: 1, 1, 32>}, {transform_indices = @transform_3, window_bounds = array<i64: 32, 128>}, {transform_indices = @transform_4, window_bounds = array<i64: 1, 128>}, {transform_indices = @transform_5, window_bounds = array<i64: 1, 8, 128>}]} {
    %c0_i32 = arith.constant 0 : i32
    %0 = arith.cmpi eq, %arg1, %c0_i32 : i32
    %1 = arith.extui %0 : i1 to i32
    %c0_i32_0 = arith.constant 0 : i32
    %2 = arith.cmpi ne, %1, %c0_i32_0 : i32
    scf.if %2 {
      %c0_12 = arith.constant 0 : index
      %c0_13 = arith.constant 0 : index
      %c0_14 = arith.constant 0 : index
      %21 = vector.load %arg2[%c0_12, %c0_13, %c0_14] : memref<1x8x32xbf16, #tpu.memory_space<vmem>>, vector<1x8x32xbf16>
      %22 = vector.shape_cast %21 : vector<1x8x32xbf16> to vector<8x32xbf16>
      %23 = arith.extf %22 : vector<8x32xbf16> to vector<8x32xf32>
      %cst_15 = arith.constant dense<0.000000e+00> : vector<8xf32>
      %24 = vector.multi_reduction <add>, %23, %cst_15 [1] : vector<8x32xf32> to vector<8xf32>
      %25 = vector.shape_cast %24 : vector<8xf32> to vector<8x1xf32>
      %cst_16 = arith.constant 3.200000e+01 : f32
      %26 = vector.broadcast %cst_16 : f32 to vector<8x1xf32>
      %27 = arith.divf %25, %26 : vector<8x1xf32>
      %28 = vector.broadcast %27 : vector<8x1xf32> to vector<8x32xf32>
      %29 = arith.subf %23, %28 : vector<8x32xf32>
      %30 = arith.mulf %29, %29 : vector<8x32xf32>
      %cst_17 = arith.constant dense<0.000000e+00> : vector<8xf32>
      %31 = vector.multi_reduction <add>, %30, %cst_17 [1] : vector<8x32xf32> to vector<8xf32>
      %32 = vector.shape_cast %31 : vector<8xf32> to vector<8x1xf32>
      %cst_18 = arith.constant 3.200000e+01 : f32
      %33 = vector.broadcast %cst_18 : f32 to vector<8x1xf32>
      %34 = arith.divf %32, %33 : vector<8x1xf32>
      %35 = vector.broadcast %27 : vector<8x1xf32> to vector<8x32xf32>
      %36 = arith.subf %23, %35 : vector<8x32xf32>
      %cst_19 = arith.constant 9.99999974E-6 : f32
      %37 = vector.broadcast %cst_19 : f32 to vector<8x1xf32>
      %38 = arith.addf %34, %37 : vector<8x1xf32>
      %39 = math.rsqrt %38 : vector<8x1xf32>
      %40 = vector.broadcast %39 : vector<8x1xf32> to vector<8x32xf32>
      %41 = arith.mulf %36, %40 : vector<8x32xf32>
      %c0_20 = arith.constant 0 : index
      %c0_21 = arith.constant 0 : index
      %c0_22 = arith.constant 0 : index
      %42 = vector.load %arg3[%c0_20, %c0_21, %c0_22] : memref<1x1x32xf32, #tpu.memory_space<vmem>>, vector<1x1x32xf32>
      %43 = vector.shape_cast %42 : vector<1x1x32xf32> to vector<1x32xf32>
      %44 = vector.broadcast %43 : vector<1x32xf32> to vector<8x32xf32>
      %45 = arith.mulf %41, %44 : vector<8x32xf32>
      %c0_23 = arith.constant 0 : index
      %c0_24 = arith.constant 0 : index
      %c0_25 = arith.constant 0 : index
      %46 = vector.load %arg4[%c0_23, %c0_24, %c0_25] : memref<1x1x32xf32, #tpu.memory_space<vmem>>, vector<1x1x32xf32>
      %47 = vector.shape_cast %46 : vector<1x1x32xf32> to vector<1x32xf32>
      %48 = vector.broadcast %47 : vector<1x32xf32> to vector<8x32xf32>
      %49 = arith.addf %45, %48 : vector<8x32xf32>
      %50 = arith.truncf %49 : vector<8x32xf32> to vector<8x32xbf16>
      %c0_26 = arith.constant 0 : index
      %c0_27 = arith.constant 0 : index
      %51 = vector.load %arg8[%c0_26, %c0_27] : memref<8x32xbf16, #tpu.memory_space<vmem>>, vector<8x32xbf16>
      tpu.vector_store %arg8[%c0_26, %c0_27], %50 {strides = array<i32>} : memref<8x32xbf16, #tpu.memory_space<vmem>>, vector<8x32xbf16>,
    } else {
    }
    %c0 = arith.constant 0 : index
    %c0_1 = arith.constant 0 : index
    %3 = vector.load %arg8[%c0, %c0_1] : memref<8x32xbf16, #tpu.memory_space<vmem>>, vector<8x32xbf16>
    %c0_2 = arith.constant 0 : index
    %c0_3 = arith.constant 0 : index
    %4 = vector.load %arg5[%c0_2, %c0_3] : memref<32x128xbf16, #tpu.memory_space<vmem>>, vector<32x128xbf16>
    %cst = arith.constant dense<0.000000e+00> : vector<8x128xf32>
    %5 = tpu.matmul %3, %4, %cst {dimension_numbers = #tpu.dot_dimension_numbers<[1], [0], [0], [1], [0, 0, 1, 1], [], []>} : vector<8x32xbf16>, vector<32x128xbf16>, vector<8x128xf32> -> vector<8x128xf32>
    %c0_4 = arith.constant 0 : index
    %c0_5 = arith.constant 0 : index
    %6 = vector.load %arg6[%c0_4, %c0_5] : memref<1x128xf32, #tpu.memory_space<vmem>>, vector<1x128xf32>
    %7 = vector.broadcast %6 : vector<1x128xf32> to vector<8x128xf32>
    %8 = arith.addf %5, %7 : vector<8x128xf32>
    %cst_6 = arith.constant -1.702000e+00 : f32
    %9 = vector.broadcast %cst_6 : f32 to vector<8x128xf32>
    %10 = arith.mulf %9, %8 : vector<8x128xf32>
    %11 = math.exp %10 : vector<8x128xf32>
    %cst_7 = arith.constant 1.000000e+00 : f32
    %12 = vector.broadcast %cst_7 : f32 to vector<8x128xf32>
    %13 = arith.addf %12, %11 : vector<8x128xf32>
    %cst_8 = arith.constant 1.000000e+00 : f32
    %14 = vector.broadcast %cst_8 : f32 to vector<8x128xf32>
    %15 = arith.divf %14, %13 : vector<8x128xf32>
    %16 = arith.mulf %8, %15 : vector<8x128xf32>
    %17 = arith.truncf %16 : vector<8x128xf32> to vector<8x128xbf16>
    %c0_9 = arith.constant 0 : index
    %c0_10 = arith.constant 0 : index
    %c0_11 = arith.constant 0 : index
    %18 = vector.load %arg7[%c0_9, %c0_10, %c0_11] : memref<1x8x128xbf16, #tpu.memory_space<vmem>>, vector<1x8x128xbf16>
    %19 = vector.shape_cast %18 : vector<1x8x128xbf16> to vector<8x128xbf16>
    %20 = vector.shape_cast %17 : vector<8x128xbf16> to vector<1x8x128xbf16>
    tpu.vector_store %arg7[%c0_9, %c0_10, %c0_11], %20 {strides = array<i32>} : memref<1x8x128xbf16, #tpu.memory_space<vmem>>, vector<1x8x128xbf16>,
    return
  }
  func.func @transform_0(%arg0: i32, %arg1: i32) -> (i32, i32, i32) {
    %c0_i32 = arith.constant 0 : i32
    %c0_i32_0 = arith.constant 0 : i32
    %c0_i32_1 = arith.constant 0 : i32
    return %arg0, %c0_i32, %c0_i32_0 : i32, i32, i32
  }
  func.func @transform_1(%arg0: i32, %arg1: i32) -> (i32, i32, i32) {
    %c0_i32 = arith.constant 0 : i32
    %c0_i32_0 = arith.constant 0 : i32
    %c0_i32_1 = arith.constant 0 : i32
    return %arg0, %c0_i32, %c0_i32_0 : i32, i32, i32
  }
  func.func @transform_2(%arg0: i32, %arg1: i32) -> (i32, i32, i32) {
    %c0_i32 = arith.constant 0 : i32
    %c0_i32_0 = arith.constant 0 : i32
    %c0_i32_1 = arith.constant 0 : i32
    return %arg0, %c0_i32, %c0_i32_0 : i32, i32, i32
  }
  func.func @transform_3(%arg0: i32, %arg1: i32) -> (i32, i32) {
    %c0_i32 = arith.constant 0 : i32
    %c0_i32_0 = arith.constant 0 : i32
    return %c0_i32, %arg1 : i32, i32
  }
  func.func @transform_4(%arg0: i32, %arg1: i32) -> (i32, i32) {
    %c0_i32 = arith.constant 0 : i32
    %c0_i32_0 = arith.constant 0 : i32
    return %c0_i32, %arg1 : i32, i32
  }
  func.func @transform_5(%arg0: i32, %arg1: i32) -> (i32, i32, i32) {
    %c0_i32 = arith.constant 0 : i32
    %c0_i32_0 = arith.constant 0 : i32
    return %arg0, %c0_i32, %arg1 : i32, i32, i32
  }
}

module attributes {stable_mosaic.version = 11 : i64} {
  func.func @_matmul_resid_kernel(%arg0: i32, %arg1: i32, %arg2: i32, %arg3: memref<16x128xbf16, #tpu.memory_space<vmem>>, %arg4: memref<128x128xbf16, #tpu.memory_space<vmem>>, %arg5: memref<1x128xf32, #tpu.memory_space<vmem>>, %arg6: memref<16x128xbf16, #tpu.memory_space<vmem>>, %arg7: memref<16x1xf32, #tpu.memory_space<vmem>>, %arg8: memref<16x128xbf16, #tpu.memory_space<vmem>>, %arg9: memref<16x128xf32, #tpu.memory_space<vmem>>) attributes {dimension_semantics = [#tpu.dimension_semantics<parallel>, #tpu.dimension_semantics<parallel>, #tpu.dimension_semantics<arbitrary>], iteration_bounds = array<i64: 1, 1, 1>, scalar_prefetch = 0 : i64, scratch_operands = 1 : i64, tpu.core_type = #tpu.core_type<tc>, window_params = [{transform_indices = @transform_0, window_bounds = array<i64: 16, 128>}, {transform_indices = @transform_1, window_bounds = array<i64: 128, 128>}, {transform_indices = @transform_2, window_bounds = array<i64: 1, 128>}, {transform_indices = @transform_3, window_bounds = array<i64: 16, 128>}, {transform_indices = @transform_4, window_bounds = array<i64: 16, 1>}, {transform_indices = @transform_5, window_bounds = array<i64: 16, 128>}]} {
    %c0_i32 = arith.constant 0 : i32
    %0 = arith.cmpi eq, %arg2, %c0_i32 : i32
    %1 = arith.extui %0 : i1 to i32
    %c0_i32_0 = arith.constant 0 : i32
    %2 = arith.cmpi ne, %1, %c0_i32_0 : i32
    scf.if %2 {
      %cst_10 = arith.constant 0.000000e+00 : f32
      %12 = vector.broadcast %cst_10 : f32 to vector<16x128xf32>
      %c0_11 = arith.constant 0 : index
      %c0_12 = arith.constant 0 : index
      %13 = vector.load %arg9[%c0_11, %c0_12] : memref<16x128xf32, #tpu.memory_space<vmem>>, vector<16x128xf32>
      tpu.vector_store %arg9[%c0_11, %c0_12], %12 {strides = array<i32>} : memref<16x128xf32, #tpu.memory_space<vmem>>, vector<16x128xf32>,
    } else {
    }
    %c0 = arith.constant 0 : index
    %c0_1 = arith.constant 0 : index
    %3 = vector.load %arg9[%c0, %c0_1] : memref<16x128xf32, #tpu.memory_space<vmem>>, vector<16x128xf32>
    %c0_2 = arith.constant 0 : index
    %c0_3 = arith.constant 0 : index
    %4 = vector.load %arg3[%c0_2, %c0_3] : memref<16x128xbf16, #tpu.memory_space<vmem>>, vector<16x128xbf16>
    %c0_4 = arith.constant 0 : index
    %c0_5 = arith.constant 0 : index
    %5 = vector.load %arg4[%c0_4, %c0_5] : memref<128x128xbf16, #tpu.memory_space<vmem>>, vector<128x128xbf16>
    %cst = arith.constant dense<0.000000e+00> : vector<16x128xf32>
    %6 = tpu.matmul %4, %5, %cst {dimension_numbers = #tpu.dot_dimension_numbers<[1], [0], [0], [1], [0, 0, 1, 1], [], []>} : vector<16x128xbf16>, vector<128x128xbf16>, vector<16x128xf32> -> vector<16x128xf32>
    %7 = arith.addf %3, %6 : vector<16x128xf32>
    %c0_6 = arith.constant 0 : index
    %c0_7 = arith.constant 0 : index
    %8 = vector.load %arg9[%c0_6, %c0_7] : memref<16x128xf32, #tpu.memory_space<vmem>>, vector<16x128xf32>
    tpu.vector_store %arg9[%c0_6, %c0_7], %7 {strides = array<i32>} : memref<16x128xf32, #tpu.memory_space<vmem>>, vector<16x128xf32>,
    %c0_i32_8 = arith.constant 0 : i32
    %9 = arith.cmpi eq, %arg2, %c0_i32_8 : i32
    %10 = arith.extui %9 : i1 to i32
    %c0_i32_9 = arith.constant 0 : i32
    %11 = arith.cmpi ne, %10, %c0_i32_9 : i32
    scf.if %11 {
      %c0_10 = arith.constant 0 : index
      %c0_11 = arith.constant 0 : index
      %12 = vector.load %arg9[%c0_10, %c0_11] : memref<16x128xf32, #tpu.memory_space<vmem>>, vector<16x128xf32>
      %c0_12 = arith.constant 0 : index
      %c0_13 = arith.constant 0 : index
      %13 = vector.load %arg5[%c0_12, %c0_13] : memref<1x128xf32, #tpu.memory_space<vmem>>, vector<1x128xf32>
      %14 = vector.broadcast %13 : vector<1x128xf32> to vector<16x128xf32>
      %15 = arith.addf %12, %14 : vector<16x128xf32>
      %c0_14 = arith.constant 0 : index
      %c0_15 = arith.constant 0 : index
      %16 = vector.load %arg6[%c0_14, %c0_15] : memref<16x128xbf16, #tpu.memory_space<vmem>>, vector<16x128xbf16>
      %17 = arith.extf %16 : vector<16x128xbf16> to vector<16x128xf32>
      %18 = arith.addf %17, %15 : vector<16x128xf32>
      %c0_16 = arith.constant 0 : index
      %c0_17 = arith.constant 0 : index
      %19 = vector.load %arg7[%c0_16, %c0_17] : memref<16x1xf32, #tpu.memory_space<vmem>>, vector<16x1xf32>
      %cst_18 = arith.constant 1.000000e+00 : f32
      %20 = vector.broadcast %cst_18 : f32 to vector<16x1xf32>
      %21 = arith.subf %20, %19 : vector<16x1xf32>
      %22 = vector.broadcast %21 : vector<16x1xf32> to vector<16x128xf32>
      %23 = arith.mulf %18, %22 : vector<16x128xf32>
      %24 = arith.truncf %23 : vector<16x128xf32> to vector<16x128xbf16>
      %c0_19 = arith.constant 0 : index
      %c0_20 = arith.constant 0 : index
      %25 = vector.load %arg8[%c0_19, %c0_20] : memref<16x128xbf16, #tpu.memory_space<vmem>>, vector<16x128xbf16>
      tpu.vector_store %arg8[%c0_19, %c0_20], %24 {strides = array<i32>} : memref<16x128xbf16, #tpu.memory_space<vmem>>, vector<16x128xbf16>,
    } else {
    }
    return
  }
  func.func @transform_0(%arg0: i32, %arg1: i32, %arg2: i32) -> (i32, i32) {
    %c0_i32 = arith.constant 0 : i32
    return %arg0, %arg2 : i32, i32
  }
  func.func @transform_1(%arg0: i32, %arg1: i32, %arg2: i32) -> (i32, i32) {
    %c0_i32 = arith.constant 0 : i32
    return %arg2, %arg1 : i32, i32
  }
  func.func @transform_2(%arg0: i32, %arg1: i32, %arg2: i32) -> (i32, i32) {
    %c0_i32 = arith.constant 0 : i32
    %c0_i32_0 = arith.constant 0 : i32
    return %c0_i32, %arg1 : i32, i32
  }
  func.func @transform_3(%arg0: i32, %arg1: i32, %arg2: i32) -> (i32, i32) {
    %c0_i32 = arith.constant 0 : i32
    return %arg0, %arg1 : i32, i32
  }
  func.func @transform_4(%arg0: i32, %arg1: i32, %arg2: i32) -> (i32, i32) {
    %c0_i32 = arith.constant 0 : i32
    %c0_i32_0 = arith.constant 0 : i32
    return %arg0, %c0_i32 : i32, i32
  }
  func.func @transform_5(%arg0: i32, %arg1: i32, %arg2: i32) -> (i32, i32) {
    %c0_i32 = arith.constant 0 : i32
    return %arg0, %arg1 : i32, i32
  }
}

module attributes {stable_mosaic.version = 11 : i64} {
  func.func @_conv3x3_kernel(%arg0: i32, %arg1: i32, %arg2: memref<1x4x8x192xbf16, #tpu.memory_space<vmem>>, %arg3: memref<3x192x128xbf16, #tpu.memory_space<vmem>>, %arg4: memref<1x128xf32, #tpu.memory_space<vmem>>, %arg5: memref<1x2x8x128xbf16, #tpu.memory_space<vmem>>) attributes {dimension_semantics = [#tpu.dimension_semantics<parallel>, #tpu.dimension_semantics<parallel>], iteration_bounds = array<i64: 2, 1>, scalar_prefetch = 0 : i64, scratch_operands = 0 : i64, tpu.core_type = #tpu.core_type<tc>, window_params = [{transform_indices = @transform_0, window_bounds = array<i64: 1, 4, 8, 192>}, {transform_indices = @transform_1, window_bounds = array<i64: 3, 192, 128>}, {transform_indices = @transform_2, window_bounds = array<i64: 1, 128>}, {transform_indices = @transform_3, window_bounds = array<i64: 1, 2, 8, 128>}]} {
    %cst = arith.constant 0.000000e+00 : f32
    %0 = vector.broadcast %cst : f32 to vector<16x128xf32>
    %c0 = arith.constant 0 : index
    %c0_0 = arith.constant 0 : index
    %c0_1 = arith.constant 0 : index
    %c0_2 = arith.constant 0 : index
    %1 = vector.load %arg2[%c0, %c0_0, %c0_1, %c0_2] : memref<1x4x8x192xbf16, #tpu.memory_space<vmem>>, vector<1x2x8x192xbf16>
    %2 = vector.shape_cast %1 : vector<1x2x8x192xbf16> to vector<2x8x192xbf16>
    %3 = vector.shape_cast %2 : vector<2x8x192xbf16> to vector<16x192xbf16>
    %c0_3 = arith.constant 0 : index
    %c0_4 = arith.constant 0 : index
    %c0_5 = arith.constant 0 : index
    %4 = vector.load %arg3[%c0_3, %c0_4, %c0_5] : memref<3x192x128xbf16, #tpu.memory_space<vmem>>, vector<1x192x128xbf16>
    %5 = vector.shape_cast %4 : vector<1x192x128xbf16> to vector<192x128xbf16>
    %cst_6 = arith.constant dense<0.000000e+00> : vector<16x128xf32>
    %6 = tpu.matmul %3, %5, %cst_6 {dimension_numbers = #tpu.dot_dimension_numbers<[1], [0], [0], [1], [0, 0, 1, 1], [], []>} : vector<16x192xbf16>, vector<192x128xbf16>, vector<16x128xf32> -> vector<16x128xf32>
    %7 = arith.addf %0, %6 : vector<16x128xf32>
    %c0_7 = arith.constant 0 : index
    %c1 = arith.constant 1 : index
    %c0_8 = arith.constant 0 : index
    %c0_9 = arith.constant 0 : index
    %8 = vector.load %arg2[%c0_7, %c1, %c0_8, %c0_9] : memref<1x4x8x192xbf16, #tpu.memory_space<vmem>>, vector<1x2x8x192xbf16>
    %9 = vector.shape_cast %8 : vector<1x2x8x192xbf16> to vector<2x8x192xbf16>
    %10 = vector.shape_cast %9 : vector<2x8x192xbf16> to vector<16x192xbf16>
    %c1_10 = arith.constant 1 : index
    %c0_11 = arith.constant 0 : index
    %c0_12 = arith.constant 0 : index
    %11 = vector.load %arg3[%c1_10, %c0_11, %c0_12] : memref<3x192x128xbf16, #tpu.memory_space<vmem>>, vector<1x192x128xbf16>
    %12 = vector.shape_cast %11 : vector<1x192x128xbf16> to vector<192x128xbf16>
    %cst_13 = arith.constant dense<0.000000e+00> : vector<16x128xf32>
    %13 = tpu.matmul %10, %12, %cst_13 {dimension_numbers = #tpu.dot_dimension_numbers<[1], [0], [0], [1], [0, 0, 1, 1], [], []>} : vector<16x192xbf16>, vector<192x128xbf16>, vector<16x128xf32> -> vector<16x128xf32>
    %14 = arith.addf %7, %13 : vector<16x128xf32>
    %c0_14 = arith.constant 0 : index
    %c2 = arith.constant 2 : index
    %c0_15 = arith.constant 0 : index
    %c0_16 = arith.constant 0 : index
    %15 = vector.load %arg2[%c0_14, %c2, %c0_15, %c0_16] : memref<1x4x8x192xbf16, #tpu.memory_space<vmem>>, vector<1x2x8x192xbf16>
    %16 = vector.shape_cast %15 : vector<1x2x8x192xbf16> to vector<2x8x192xbf16>
    %17 = vector.shape_cast %16 : vector<2x8x192xbf16> to vector<16x192xbf16>
    %c2_17 = arith.constant 2 : index
    %c0_18 = arith.constant 0 : index
    %c0_19 = arith.constant 0 : index
    %18 = vector.load %arg3[%c2_17, %c0_18, %c0_19] : memref<3x192x128xbf16, #tpu.memory_space<vmem>>, vector<1x192x128xbf16>
    %19 = vector.shape_cast %18 : vector<1x192x128xbf16> to vector<192x128xbf16>
    %cst_20 = arith.constant dense<0.000000e+00> : vector<16x128xf32>
    %20 = tpu.matmul %17, %19, %cst_20 {dimension_numbers = #tpu.dot_dimension_numbers<[1], [0], [0], [1], [0, 0, 1, 1], [], []>} : vector<16x192xbf16>, vector<192x128xbf16>, vector<16x128xf32> -> vector<16x128xf32>
    %21 = arith.addf %14, %20 : vector<16x128xf32>
    %c0_21 = arith.constant 0 : index
    %c0_22 = arith.constant 0 : index
    %22 = vector.load %arg4[%c0_21, %c0_22] : memref<1x128xf32, #tpu.memory_space<vmem>>, vector<1x128xf32>
    %23 = vector.broadcast %22 : vector<1x128xf32> to vector<16x128xf32>
    %24 = arith.addf %21, %23 : vector<16x128xf32>
    %cst_23 = arith.constant 0.000000e+00 : f32
    %25 = vector.broadcast %cst_23 : f32 to vector<16x128xf32>
    %26 = arith.maximumf %24, %25 : vector<16x128xf32>
    %27 = vector.shape_cast %26 : vector<16x128xf32> to vector<2x8x128xf32>
    %28 = arith.truncf %27 : vector<2x8x128xf32> to vector<2x8x128xbf16>
    %c0_24 = arith.constant 0 : index
    %c0_25 = arith.constant 0 : index
    %c0_26 = arith.constant 0 : index
    %c0_27 = arith.constant 0 : index
    %29 = vector.load %arg5[%c0_24, %c0_25, %c0_26, %c0_27] : memref<1x2x8x128xbf16, #tpu.memory_space<vmem>>, vector<1x2x8x128xbf16>
    %30 = vector.shape_cast %29 : vector<1x2x8x128xbf16> to vector<2x8x128xbf16>
    %31 = vector.shape_cast %28 : vector<2x8x128xbf16> to vector<1x2x8x128xbf16>
    tpu.vector_store %arg5[%c0_24, %c0_25, %c0_26, %c0_27], %31 {strides = array<i32>} : memref<1x2x8x128xbf16, #tpu.memory_space<vmem>>, vector<1x2x8x128xbf16>,
    return
  }
  func.func @transform_0(%arg0: i32, %arg1: i32) -> (i32, i32, i32, i32) {
    %c0_i32 = arith.constant 0 : i32
    %c0_i32_0 = arith.constant 0 : i32
    %c0_i32_1 = arith.constant 0 : i32
    %c0_i32_2 = arith.constant 0 : i32
    return %arg0, %c0_i32, %c0_i32_0, %c0_i32_1 : i32, i32, i32, i32
  }
  func.func @transform_1(%arg0: i32, %arg1: i32) -> (i32, i32, i32) {
    %c0_i32 = arith.constant 0 : i32
    %c0_i32_0 = arith.constant 0 : i32
    %c0_i32_1 = arith.constant 0 : i32
    return %c0_i32, %c0_i32_0, %arg1 : i32, i32, i32
  }
  func.func @transform_2(%arg0: i32, %arg1: i32) -> (i32, i32) {
    %c0_i32 = arith.constant 0 : i32
    %c0_i32_0 = arith.constant 0 : i32
    return %c0_i32, %arg1 : i32, i32
  }
  func.func @transform_3(%arg0: i32, %arg1: i32) -> (i32, i32, i32, i32) {
    %c0_i32 = arith.constant 0 : i32
    %c0_i32_0 = arith.constant 0 : i32
    %c0_i32_1 = arith.constant 0 : i32
    return %arg0, %c0_i32, %c0_i32_0, %arg1 : i32, i32, i32, i32
  }
}

module attributes {stable_mosaic.version = 11 : i64} {
  func.func @_bmm_kernel(%arg0: i32, %arg1: i32, %arg2: i32, %arg3: memref<1x16x32xbf16, #tpu.memory_space<vmem>>, %arg4: memref<1x32x128xbf16, #tpu.memory_space<vmem>>, %arg5: memref<1x16x128xf32, #tpu.memory_space<vmem>>) attributes {dimension_semantics = [#tpu.dimension_semantics<parallel>, #tpu.dimension_semantics<parallel>, #tpu.dimension_semantics<parallel>], iteration_bounds = array<i64: 2, 1, 1>, scalar_prefetch = 0 : i64, scratch_operands = 0 : i64, tpu.core_type = #tpu.core_type<tc>, window_params = [{transform_indices = @transform_0, window_bounds = array<i64: 1, 16, 32>}, {transform_indices = @transform_1, window_bounds = array<i64: 1, 32, 128>}, {transform_indices = @transform_2, window_bounds = array<i64: 1, 16, 128>}]} {
    %c0 = arith.constant 0 : index
    %c0_0 = arith.constant 0 : index
    %c0_1 = arith.constant 0 : index
    %0 = vector.load %arg3[%c0, %c0_0, %c0_1] : memref<1x16x32xbf16, #tpu.memory_space<vmem>>, vector<1x16x32xbf16>
    %1 = vector.shape_cast %0 : vector<1x16x32xbf16> to vector<16x32xbf16>
    %c0_2 = arith.constant 0 : index
    %c0_3 = arith.constant 0 : index
    %c0_4 = arith.constant 0 : index
    %2 = vector.load %arg4[%c0_2, %c0_3, %c0_4] : memref<1x32x128xbf16, #tpu.memory_space<vmem>>, vector<1x32x128xbf16>
    %3 = vector.shape_cast %2 : vector<1x32x128xbf16> to vector<32x128xbf16>
    %cst = arith.constant dense<0.000000e+00> : vector<16x128xf32>
    %4 = tpu.matmul %1, %3, %cst {dimension_numbers = #tpu.dot_dimension_numbers<[1], [0], [0], [1], [0, 0, 1, 1], [], []>} : vector<16x32xbf16>, vector<32x128xbf16>, vector<16x128xf32> -> vector<16x128xf32>
    %c0_5 = arith.constant 0 : index
    %c0_6 = arith.constant 0 : index
    %c0_7 = arith.constant 0 : index
    %5 = vector.load %arg5[%c0_5, %c0_6, %c0_7] : memref<1x16x128xf32, #tpu.memory_space<vmem>>, vector<1x16x128xf32>
    %6 = vector.shape_cast %5 : vector<1x16x128xf32> to vector<16x128xf32>
    %7 = vector.shape_cast %4 : vector<16x128xf32> to vector<1x16x128xf32>
    tpu.vector_store %arg5[%c0_5, %c0_6, %c0_7], %7 {strides = array<i32>} : memref<1x16x128xf32, #tpu.memory_space<vmem>>, vector<1x16x128xf32>,
    return
  }
  func.func @transform_0(%arg0: i32, %arg1: i32, %arg2: i32) -> (i32, i32, i32) {
    %c0_i32 = arith.constant 0 : i32
    %c0_i32_0 = arith.constant 0 : i32
    return %arg0, %arg1, %c0_i32 : i32, i32, i32
  }
  func.func @transform_1(%arg0: i32, %arg1: i32, %arg2: i32) -> (i32, i32, i32) {
    %c0_i32 = arith.constant 0 : i32
    %c0_i32_0 = arith.constant 0 : i32
    return %arg0, %c0_i32, %arg2 : i32, i32, i32
  }
  func.func @transform_2(%arg0: i32, %arg1: i32, %arg2: i32) -> (i32, i32, i32) {
    %c0_i32 = arith.constant 0 : i32
    return %arg0, %arg1, %arg2 : i32, i32, i32
  }
}

</mosaic_0001>

<bundles_post_ra>
// kernel: text2image_forward.23
= control target key start
LH: loop header
LB: loop body
LE: loop exit
PB: predicated region body
PF: predicated region fallthrough
CT: control target
= control target key end

     0   :  { %s832_s12 = smov 0   ;;  %s834_s13 = smov 0   ;;  %s957_s0 = inlined_call_operand.vmem [shape: bf16[2,3,8,96], index: 0, kind: input, shape index: {}]   ;;  %s958_s1 = inlined_call_operand.vmem [shape: bf16[3,96,128], index: 1, kind: input, shape index: {}]   ;;  %s959_s2 = inlined_call_operand.vmem [shape: f32[1,128], index: 2, kind: input, shape index: {}]   ;;  %s960_s3 = inlined_call_operand.vmem [shape: bf16[2,1,8,128], index: 3, kind: output, shape index: {}]  }
   0x1   :  { %s836_s14 = smov 0  }
   0x2 LB: > { %s25_s15 = sadd.s32 1, %s804_s13  ;;  %p619_p0 = scmp.ge.s32.totalorder %s808_s14, 1  ;;  %s808_s14 = sphi %s836_s14, %s13_s14   ;;  %s804_s13 = sphi %s834_s13, %s962_s13   ;;  %s800_s12 = sphi %s832_s12, %s961_s12  }
   0x3   : > { %p27_p1 = scmp.ge.s32.totalorder %s25_s15, 2  ;;  %p168_p2 = scmp.lt.s32.totalorder %s808_s14, 3 }
   0x5   : > { %s964_s15 = smov (%p27_p1, %s25_s15), 0  ;;  %p169_p3 = pnand %p619_p0, %p168_p2 }
   0x6   : > { %p201_p4 = scmp.lt.s32.totalorder (!%p169_p3), %s800_s12, 1 }
   0x7   : > { %172 = sbr.rel (%p169_p3) target bundleno = 263 (0x107), region = 32 }
   0xc   : > { %v768_v0 = vld [vmem:[%s958_s1 + $0x58] sm:$0xff]   ;;  %v810_v1 = vmov 0.0   ;;  %v769_v2 = vld [vmem:[%s958_s1 + $0x28] sm:$0xff]   ;;  %v770_v3 = vld [vmem:[%s958_s1 + $0x50] sm:$0xff]   ;;  %vm811_vm0 = vmmov 0   ;;  %s966_s12 = smov (!%p201_p4, %s800_s12), 1 }
   0xd   : > { %693 = vmatprep.subr.bf16.mxu0 %v810_v1  ;;  %709 = vmatprep.subr.bf16.mxu1 %v810_v1  ;;  %v771_v4 = vld [vmem:[%s958_s1 + $0x20] sm:$0xff]   ;;  %v772_v5 = vld [vmem:[%s958_s1 + $0x48] sm:$0xff]   ;;  %v773_v6 = vld [vmem:[%s958_s1 + $0x18] sm:$0xff]   ;;  %s741_s9 = smul.u32 12, %s966_s12  ;;  %vm285_vm1 = vcmask 785408   ;;  %s621_s8 = sshll.u32 %s966_s12, 2 }
   0xe   : > { %694 = vmatpush3.bf16.msra.mxu0 %v768_v0  ;;  %705 = vmatprep.mubr.msk.bf16.mxu0 %vm811_vm0, %v810_v1  ;;  %v774_v7 = vld [vmem:[%s958_s1 + $0x40] sm:$0xff]   ;;  %v775_v8 = vld [vmem:[%s958_s1 + $0x10] sm:$0xff]   ;;  %v776_v9 = vld [vmem:[%s958_s1 + $0x38] sm:$0xff]   ;;  %s219_s11 = scalar_lea.vmem %s960_s3, %s621_s8 }
   0xf   : > { %710 = vmatpush3.bf16.msra.mxu1 %v769_v2  ;;  %695 = vmatprep.subr.bf16.mxu0 %v810_v1  ;;  %v777_v10 = vld [vmem:[%s958_s1 + $0x8] sm:$0xff]   ;;  %v778_v11 = vld [vmem:[%s958_s1 + $0x30] sm:$0xff]   ;;  %v779_v12 = vld [vmem:[%s958_s1] sm:$0xff]   ;;  %s205_s20 = scalar_lea.vmem %s957_s0, %s741_s9 }
  0x10   : > { %711 = vmatprep.subr.bf16.mxu1 %v810_v1  ;;  %721 = vmatprep.mubr.msk.bf16.mxu1 %vm811_vm0, %v810_v1  ;;  %v622_v13 = vld [vmem:[%s205_s20 + $0x4] sm:$0xf]  ;;  %v780_v14 = vld [vmem:[%s958_s1 + $0x88] sm:$0xff]   ;;  %v221_v15 = vld [vmem:[%s205_s20] sm:$0xf] }
  0x11   : > { %v781_v16 = vld [vmem:[%s958_s1 + $0x80] sm:$0xff]   ;;  %v782_v17 = vld [vmem:[%s958_s1 + $0x78] sm:$0xff]   ;;  %v783_v18 = vld [vmem:[%s958_s1 + $0x70] sm:$0xff]  }
  0x12   : > { %696 = vmatpush3.bf16.msra.mxu0 %v770_v3  ;;  %v784_v19 = vld [vmem:[%s958_s1 + $0x68] sm:$0xff]   ;;  %v785_v20 = vld [vmem:[%s958_s1 + $0x60] sm:$0xff]  }
  0x13   : > { %712 = vmatpush3.bf16.msra.mxu1 %v771_v4  ;;  %697 = vmatprep.subr.bf16.mxu0 %v810_v1  ;;  %v649_v21 = vld [vmem:[%s205_s20 + $0x8] sm:$0xf]  ;;  %v669_v32 = vld [vmem:[%s959_s2] ss:$0 sm:$0xff] }
  0x14   : > { %713 = vmatprep.subr.bf16.mxu1 %v810_v1 }
  0x16   : > { %698 = vmatpush3.bf16.msra.mxu0 %v772_v5 }
  0x17   : > { %714 = vmatpush3.bf16.msra.mxu1 %v773_v6  ;;  %699 = vmatprep.subr.bf16.mxu0 %v810_v1 }
  0x18   : > { %715 = vmatprep.subr.bf16.mxu1 %v810_v1 }
  0x1a   : > { %700 = vmatpush3.bf16.msra.mxu0 %v774_v7 }
  0x1b   : > { %716 = vmatpush3.bf16.msra.mxu1 %v775_v8  ;;  %701 = vmatprep.subr.bf16.mxu0 %v810_v1 }
  0x1c   : > { %717 = vmatprep.subr.bf16.mxu1 %v810_v1 }
  0x1e   : > { %702 = vmatpush3.bf16.msra.mxu0 %v776_v9 }
  0x1f   : > { %718 = vmatpush3.bf16.msra.mxu1 %v777_v10  ;;  %703 = vmatprep.subr.bf16.mxu0 %v810_v1 }
  0x20   : > { %719 = vmatprep.subr.bf16.mxu1 %v810_v1 }
  0x22   : > { %704 = vmatpush3.bf16.msra.mxu0 %v778_v11 }
  0x23   : > { %720 = vmatpush3.bf16.msra.mxu1 %v779_v12  ;;  %725 = vmatprep.subr.bf16.mxu0 %v810_v1 }
  0x25   : > { %706 = vmatmul.mubr.msk.bf16.vlgmr.msra.gmra.mxu0 %vm285_vm1, %v622_v13 }
  0x26   : > { %722 = vmatmul.mubr.msk.bf16.vlgmr.msra.gmra.mxu1 %vm285_vm1, %v221_v15  ;;  %726 = vmatpush3.bf16.msra.mxu0 %v780_v14 }
  0x27   : > { %727 = vmatprep.subr.bf16.mxu0 %v810_v1  ;;  %737 = vmatprep.mubr.msk.bf16.mxu0 %vm811_vm0, %v810_v1 }
  0x2a   : > { %728 = vmatpush3.bf16.msra.mxu0 %v781_v16 }
  0x2b   : > { %729 = vmatprep.subr.bf16.mxu0 %v810_v1 }
  0x2e   : > { %730 = vmatpush3.bf16.msra.mxu0 %v782_v17 }
  0x2f   : > { %731 = vmatprep.subr.bf16.mxu0 %v810_v1 }
  0x32   : > { %732 = vmatpush3.bf16.msra.mxu0 %v783_v18 }
  0x33   : > { %733 = vmatprep.subr.bf16.mxu0 %v810_v1 }
  0x36   : > { %734 = vmatpush3.bf16.msra.mxu0 %v784_v19 }
  0x37   : > { %735 = vmatprep.subr.bf16.mxu0 %v810_v1 }
  0x3a   : > { %736 = vmatpush3.bf16.msra.mxu0 %v785_v20 }
  0x3d   : > { %738 = vmatmul.mubr.msk.bf16.vlgmr.msra.gmra.mxu0 %vm285_vm1, %v649_v21 }
  0xe5   : > { %v323_v22 = vpop.f32.mrf.mxu0 }
  0xe6   : > { %v402_v23 = vpop.f32.mrf.mxu1 }
  0xe7   : > { %v707_v24 = vpop.f32.mrf.mxu0  ;;  %v403_v30 = vadd.f32 %v402_v23, %v323_v22 }
  0xe8   : > { %v723_v25 = vpop.f32.mrf.mxu1 }
  0xe9   : > { %v326_v26 = vpop.f32.mrf.mxu0 }
  0xea   : > { %v405_v27 = vpop.f32.mrf.mxu1 }
  0xeb   : > { %v708_v28 = vpop.f32.mrf.mxu0 }
  0xec   : > { %v724_v29 = vpop.f32.mrf.mxu1 }
  0xfd   : > { %v496_v31 = vpop.f32.mrf.mxu0 }
  0xfe   : > { %v502_v33 = vadd.f32 %v496_v31, %v403_v30 }
  0xff   : > { %v739_v34 = vpop.f32.mrf.mxu0 }
 0x100   : > { %v510_v35 = vadd.f32 %v669_v32, %v502_v33 }
 0x101   : > { %v499_v36 = vpop.f32.mrf.mxu0 }
 0x102   : > { %v511_v37 = vmax.f32 %v510_v35, 0.0 }
 0x103   : > { %v740_v38 = vpop.f32.mrf.mxu0 }
 0x104   : > { %v512_v39 = vpack.c.bf16 %v511_v37, %v511_v37 }
 0x106   : > { %513 = vst [vmem:[%s219_s11] sm:$0xf] %v512_v39 }
 0x107 PF: > { %s13_s14 = sadd.s32 1, %s808_s14   ;;  %s961_s12 = smov %s804_s13 }
 0x108   : > { %p10_p5 = scmp.ge.s32.totalorder %s13_s14, 4   ;;  %s962_s13 = smov %s964_s15 }
 0x10a   :  { %12 = sbr.rel (!%p10_p5) target bundleno = 2 (0x2), region = 72 }

// kernel: text2image_forward.21
= control target key start
LH: loop header
LB: loop body
LE: loop exit
PB: predicated region body
PF: predicated region fallthrough
CT: control target
= control target key end

     0   :  { %s882_s12 = smov 0   ;;  %s884_s13 = smov 0   ;;  %s1008_s0 = inlined_call_operand.vmem [shape: bf16[2,4,8,96], index: 0, kind: input, shape index: {}]   ;;  %s1009_s1 = inlined_call_operand.vmem [shape: bf16[3,96,128], index: 1, kind: input, shape index: {}]   ;;  %s1010_s2 = inlined_call_operand.vmem [shape: f32[1,128], index: 2, kind: input, shape index: {}]   ;;  %s1011_s3 = inlined_call_operand.vmem [shape: bf16[2,2,8,128], index: 3, kind: output, shape index: {}]  }
   0x1   :  { %s886_s14 = smov 0  }
   0x2 LB: > { %s25_s15 = sadd.s32 1, %s854_s13  ;;  %p653_p0 = scmp.ge.s32.totalorder %s858_s14, 1  ;;  %s858_s14 = sphi %s886_s14, %s13_s14   ;;  %s854_s13 = sphi %s884_s13, %s1013_s13   ;;  %s850_s12 = sphi %s882_s12, %s1012_s12  }
   0x3   : > { %p27_p1 = scmp.ge.s32.totalorder %s25_s15, 2  ;;  %p168_p2 = scmp.lt.s32.totalorder %s858_s14, 3 }
   0x5   : > { %s1015_s15 = smov (%p27_p1, %s25_s15), 0  ;;  %p169_p3 = pnand %p653_p0, %p168_p2 }
   0x6   : > { %p202_p4 = scmp.lt.s32.totalorder (!%p169_p3), %s850_s12, 1 }
   0x7   : > { %172 = sbr.rel (%p169_p3) target bundleno = 267 (0x10b), region = 32 }
   0xc   : > { %v815_v0 = vld [vmem:[%s1009_s1 + $0x58] sm:$0xff]   ;;  %v860_v1 = vmov 0.0   ;;  %v816_v2 = vld [vmem:[%s1009_s1 + $0x28] sm:$0xff]   ;;  %v817_v3 = vld [vmem:[%s1009_s1 + $0x50] sm:$0xff]   ;;  %vm861_vm0 = vmmov 0   ;;  %s1017_s12 = smov (!%p202_p4, %s850_s12), 1 }
   0xd   : > { %741 = vmatprep.subr.bf16.mxu0 %v860_v1  ;;  %757 = vmatprep.subr.bf16.mxu1 %v860_v1  ;;  %v818_v4 = vld [vmem:[%s1009_s1 + $0x20] sm:$0xff]   ;;  %v819_v5 = vld [vmem:[%s1009_s1 + $0x48] sm:$0xff]   ;;  %v820_v6 = vld [vmem:[%s1009_s1 + $0x18] sm:$0xff]   ;;  %s713_s28 = sshll.u32 %s1017_s12, 4  ;;  %vm294_vm1 = vcmask 785408  }
   0xe   : > { %742 = vmatpush3.bf16.msra.mxu0 %v815_v0  ;;  %753 = vmatprep.mubr.msk.bf16.mxu0 %vm861_vm0, %v860_v1  ;;  %v821_v7 = vld [vmem:[%s1009_s1 + $0x40] sm:$0xff]   ;;  %v822_v8 = vld [vmem:[%s1009_s1 + $0x10] sm:$0xff]   ;;  %s941_s8 = scalar_lea.vmem %s1008_s0, %s713_s28  ;;  %v823_v9 = vld [vmem:[%s1009_s1 + $0x38] sm:$0xff]  }
   0xf   : > { %758 = vmatpush3.bf16.msra.mxu1 %v816_v2  ;;  %743 = vmatprep.subr.bf16.mxu0 %v860_v1  ;;  %v824_v10 = vld [vmem:[%s1009_s1 + $0x8] sm:$0xff]   ;;  %v825_v11 = vld [vmem:[%s1009_s1 + $0x30] sm:$0xff]   ;;  %v826_v12 = vld [vmem:[%s1009_s1] sm:$0xff]  }
  0x10   : > { %759 = vmatprep.subr.bf16.mxu1 %v860_v1  ;;  %769 = vmatprep.mubr.msk.bf16.mxu1 %vm861_vm0, %v860_v1  ;;  %v827_v13 = vld [vmem:[%s941_s8 + $0x4] sm:$0xff]   ;;  %v831_v17 = vld [vmem:[%s1009_s1 + $0x78] sm:$0xff]   ;;  %v832_v18 = vld [vmem:[%s1009_s1 + $0x70] sm:$0xff]  }
  0x11   : > { %v828_v14 = vld [vmem:[%s941_s8] sm:$0xff]   ;;  %v829_v15 = vld [vmem:[%s1009_s1 + $0x88] sm:$0xff]  }
  0x12   : > { %744 = vmatpush3.bf16.msra.mxu0 %v817_v3  ;;  %v830_v16 = vld [vmem:[%s1009_s1 + $0x80] sm:$0xff]   ;;  %v833_v19 = vld [vmem:[%s1009_s1 + $0x68] sm:$0xff]  }
  0x13   : > { %760 = vmatpush3.bf16.msra.mxu1 %v818_v4  ;;  %745 = vmatprep.subr.bf16.mxu0 %v860_v1  ;;  %v834_v20 = vld [vmem:[%s1009_s1 + $0x60] sm:$0xff]   ;;  %v835_v21 = vld [vmem:[%s941_s8 + $0x8] sm:$0xff]   ;;  %s714_s8 = sshll.u32 %s1017_s12, 3 }
  0x14   : > { %761 = vmatprep.subr.bf16.mxu1 %v860_v1  ;;  %v710_v33 = vld [vmem:[%s1010_s2] ss:$0 sm:$0xff]  ;;  %s221_s11 = scalar_lea.vmem %s1011_s3, %s714_s8 }
  0x16   : > { %746 = vmatpush3.bf16.msra.mxu0 %v819_v5 }
  0x17   : > { %762 = vmatpush3.bf16.msra.mxu1 %v820_v6  ;;  %747 = vmatprep.subr.bf16.mxu0 %v860_v1 }
  0x18   : > { %763 = vmatprep.subr.bf16.mxu1 %v860_v1 }
  0x1a   : > { %748 = vmatpush3.bf16.msra.mxu0 %v821_v7 }
  0x1b   : > { %764 = vmatpush3.bf16.msra.mxu1 %v822_v8  ;;  %749 = vmatprep.subr.bf16.mxu0 %v860_v1 }
  0x1c   : > { %765 = vmatprep.subr.bf16.mxu1 %v860_v1 }
  0x1e   : > { %750 = vmatpush3.bf16.msra.mxu0 %v823_v9 }
  0x1f   : > { %766 = vmatpush3.bf16.msra.mxu1 %v824_v10  ;;  %751 = vmatprep.subr.bf16.mxu0 %v860_v1 }
  0x20   : > { %767 = vmatprep.subr.bf16.mxu1 %v860_v1 }
  0x22   : > { %752 = vmatpush3.bf16.msra.mxu0 %v825_v11 }
  0x23   : > { %768 = vmatpush3.bf16.msra.mxu1 %v826_v12  ;;  %773 = vmatprep.subr.bf16.mxu0 %v860_v1 }
  0x25   : > { %754 = vmatmul.mubr.msk.bf16.vlgmr.msra.gmra.mxu0 %vm294_vm1, %v827_v13 }
  0x26   : > { %770 = vmatmul.mubr.msk.bf16.vlgmr.msra.gmra.mxu1 %vm294_vm1, %v828_v14  ;;  %774 = vmatpush3.bf16.msra.mxu0 %v829_v15 }
  0x27   : > { %775 = vmatprep.subr.bf16.mxu0 %v860_v1  ;;  %785 = vmatprep.mubr.msk.bf16.mxu0 %vm861_vm0, %v860_v1 }
  0x2a   : > { %776 = vmatpush3.bf16.msra.mxu0 %v830_v16 }
  0x2b   : > { %777 = vmatprep.subr.bf16.mxu0 %v860_v1 }
  0x2e   : > { %778 = vmatpush3.bf16.msra.mxu0 %v831_v17 }
  0x2f   : > { %779 = vmatprep.subr.bf16.mxu0 %v860_v1 }
  0x32   : > { %780 = vmatpush3.bf16.msra.mxu0 %v832_v18 }
  0x33   : > { %781 = vmatprep.subr.bf16.mxu0 %v860_v1 }
  0x36   : > { %782 = vmatpush3.bf16.msra.mxu0 %v833_v19 }
  0x37   : > { %783 = vmatprep.subr.bf16.mxu0 %v860_v1 }
  0x3a   : > { %784 = vmatpush3.bf16.msra.mxu0 %v834_v20 }
  0x3d   : > { %786 = vmatmul.mubr.msk.bf16.vlgmr.msra.gmra.mxu0 %vm294_vm1, %v835_v21 }
  0xe5   : > { %v332_v22 = vpop.f32.mrf.mxu0 }
  0xe6   : > { %v417_v23 = vpop.f32.mrf.mxu1 }
  0xe7   : > { %v755_v24 = vpop.f32.mrf.mxu0  ;;  %v418_v30 = vadd.f32 %v417_v23, %v332_v22 }
  0xe8   : > { %v771_v25 = vpop.f32.mrf.mxu1 }
  0xe9   : > { %v335_v26 = vpop.f32.mrf.mxu0 }
  0xea   : > { %v420_v27 = vpop.f32.mrf.mxu1 }
  0xeb   : > { %v756_v28 = vpop.f32.mrf.mxu0  ;;  %v421_v35 = vadd.f32 %v420_v27, %v335_v26 }
  0xec   : > { %v772_v29 = vpop.f32.mrf.mxu1 }
  0xfd   : > { %v518_v31 = vpop.f32.mrf.mxu0 }
  0xfe   : > { %v525_v32 = vadd.f32 %v518_v31, %v418_v30 }
  0xff   : > { %v787_v34 = vpop.f32.mrf.mxu0 }
 0x100   : > { %v534_v37 = vadd.f32 %v710_v33, %v525_v32 }
 0x101   : > { %v521_v36 = vpop.f32.mrf.mxu0 }
 0x102   : > { %v526_v38 = vadd.f32 %v521_v36, %v421_v35  ;;  %v536_v41 = vmax.f32 %v534_v37, 0.0 }
 0x103   : > { %v788_v39 = vpop.f32.mrf.mxu0 }
 0x104   : > { %v535_v40 = vadd.f32 %v710_v33, %v526_v38 }
 0x106   : > { %v537_v42 = vmax.f32 %v535_v40, 0.0 }
 0x108   : > { %v718_v43 = vpack.c.bf16 %v537_v42, %v536_v41 }
 0x10a   : > { %719 = vst [vmem:[%s221_s11] sm:$0xff] %v718_v43  }
 0x10b PF: > { %s13_s14 = sadd.s32 1, %s858_s14   ;;  %s1012_s12 = smov %s854_s13 }
 0x10c   : > { %p10_p5 = scmp.ge.s32.totalorder %s13_s14, 4   ;;  %s1013_s13 = smov %s1015_s15 }
 0x10e   :  { %12 = sbr.rel (!%p10_p5) target bundleno = 2 (0x2), region = 72 }

// kernel: text2image_forward.25
= control target key start
LH: loop header
LB: loop body
LE: loop exit
PB: predicated region body
PF: predicated region fallthrough
CT: control target
= control target key end

     0   :  { %s641_s18 = smov 0   ;;  %s643_s19 = smov 0   ;;  %s701_s0 = inlined_call_operand.vmem [shape: bf16[2,8,32], index: 0, kind: input, shape index: {}]   ;;  %s702_s1 = inlined_call_operand.vmem [shape: f32[2,1,32], index: 1, kind: input, shape index: {}]   ;;  %s703_s2 = inlined_call_operand.vmem [shape: f32[2,1,32], index: 2, kind: input, shape index: {}]   ;;  %s704_s3 = inlined_call_operand.vmem [shape: bf16[32,128], index: 3, kind: input, shape index: {}]   ;;  %s705_s4 = inlined_call_operand.vmem [shape: f32[1,128], index: 4, kind: input, shape index: {}]   ;;  %s706_s5 = inlined_call_operand.vmem [shape: bf16[2,8,128], index: 5, kind: output, shape index: {}]  }
   0x1   :  { %s645_s20 = smov 0  }
   0x2 LB: > { %s27_s21 = sadd.s32 1, %s603_s19  ;;  %p533_p0 = scmp.ge.s32.totalorder %s607_s20, 1  ;;  %s607_s20 = sphi %s645_s20, %s15_s20   ;;  %s603_s19 = sphi %s643_s19, %s708_s19   ;;  %s599_s18 = sphi %s641_s18, %s707_s18  }
   0x3   : > { %p29_p1 = scmp.ge.s32.totalorder %s27_s21, 2  ;;  %p233_p2 = scmp.lt.s32.totalorder %s607_s20, 3 }
   0x5   : > { %s710_s21 = smov (%p29_p1, %s27_s21), 0  ;;  %p234_p3 = pnand %p533_p0, %p233_p2 }
   0x6   : > { %p275_p4 = scmp.lt.s32.totalorder (!%p234_p3), %s599_s18, 1 }
   0x7   : > { %237 = sbr.rel (%p234_p3) target bundleno = 535 (0x217), region = 40 }
   0xc   : > { %s712_s18 = smov (!%p275_p4, %s599_s18), 1  ;;  %vm306_vm0 = vcmask 261120   ;;  %v581_v8 = vld [vmem:[%s704_s3 + $0x8] sm:$0xff]   ;;  %v609_v9 = vmov 0.0   ;;  %v582_v10 = vld [vmem:[%s704_s3] sm:$0xff]   ;;  %vm610_vm1 = vmmov 0  }
   0xd   : > { %s534_s22 = sshll.u32 %s712_s18, 2  ;;  %547 = vmatprep.subr.bf16.mxu0 %v609_v9  ;;  %551 = vmatprep.mubr.msk.bf16.mxu0 %vm610_vm1, %v609_v9  ;;  %s281_s7 = scalar_lea.vmem %s702_s1, %s712_s18  ;;  %vm338_vm2 = vcmask 257024   ;;  %v538_v22 = vld [vmem:[%s705_s4] ss:$0 sm:$0xff] }
   0xe   : > { %s278_s25 = scalar_lea.vmem %s701_s0, %s534_s22  ;;  %548 = vmatpush3.bf16.msra.mxu0 %v581_v8  ;;  %s284_s10 = scalar_lea.vmem %s703_s2, %s712_s18  ;;  %v536_v15 = vld [vmem:[%s281_s7] ss:$0 sm:$0xff] }
   0xf   : > { %v304_v0 = vld [vmem:[%s278_s25] sm:$0xf]  ;;  %549 = vmatprep.subr.bf16.mxu0 %v609_v9  ;;  %s298_s15 = scalar_lea.vmem %s706_s5, %s534_s22 }
  0x10   : > { %v305_v1 = vunpack.c.l.bf16 %v304_v0  ;;  %v537_v17 = vld [vmem:[%s284_s10] ss:$0 sm:$0xff] }
  0x12   : > { %v307_v2 = vsel %vm306_vm0, %v305_v1, 0.0  ;;  %550 = vmatpush3.bf16.msra.mxu0 %v582_v10 }
  0x13   : > { %308 = vadd.xlane.f32.xlu0 %v307_v2 }
  0x9c   : > { %v309_v3 = vpop.xlane.xlu0 %308 }
  0x9d   : > { %v311_v4 = vmul.f32 0.03125, %v309_v3 }
  0x9f   : > { %v312_v5 = vsub.f32 %v305_v1, %v311_v4 }
  0xa1   : > { %v313_v6 = vmul.f32 %v312_v5, %v312_v5 }
  0xa3   : > { %v314_v7 = vsel %vm306_vm0, %v313_v6, 0.0 }
  0xa4   : > { %315 = vadd.xlane.f32.xlu0 %v314_v7 }
 0x12d   : > { %v316_v11 = vpop.xlane.xlu0 %315 }
 0x12e   : > { %v317_v12 = vmul.f32 0.03125, %v316_v11 }
 0x130   : > { %v318_v13 = vadd.f32 1e-05, %v317_v12 }
 0x132   : > { %583 = vrsqrt.f32 %v318_v13 }
 0x13f   : > { %v584_v14 = vpop.eup %583 }
 0x140   : > { %v320_v16 = vmul.f32 %v584_v14, %v312_v5 }
 0x142   : > { %v328_v18 = vmul.f32 %v536_v15, %v320_v16 }
 0x144   : > { %v336_v19 = vadd.f32 %v537_v17, %v328_v18 }
 0x146   : > { %v337_v20 = vpack.c.bf16 %v336_v19, %v336_v19 }
 0x148   : > { %339 = vst.msk [vmem:[#allocation2] sm:$0xf] %vm338_vm2, %v337_v20 }
 0x14f   : > { %v340_v21 = vld [vmem:[#allocation2] sm:$0xf] }
 0x150   : > { %552 = vmatmul.mubr.msk.bf16.vlgmr.msra.gmra.mxu0 %vm306_vm0, %v340_v21 }
 0x210   : > { %v402_v23 = vpop.f32.mrf.mxu0 }
 0x211   : > { %v403_v24 = vadd.f32 %v538_v22, %v402_v23 }
 0x212   : > { %v553_v25 = vpop.f32.mrf.mxu0 }
 0x213   : > { %v408_v26 = vpack.c.bf16 %v403_v24, %v403_v24 }
 0x214   : > { %v405_v27 = vpop.f32.mrf.mxu0 }
 0x215   : > { %409 = vst [vmem:[%s298_s15] sm:$0xf] %v408_v26 }
 0x216   : > { %v554_v28 = vpop.f32.mrf.mxu0 }
 0x217 PF: > { %s15_s20 = sadd.s32 1, %s607_s20   ;;  %s707_s18 = smov %s603_s19 }
 0x218   : > { %p12_p5 = scmp.ge.s32.totalorder %s15_s20, 4   ;;  %s708_s19 = smov %s710_s21 }
 0x21a   :  { %14 = sbr.rel (!%p12_p5) target bundleno = 2 (0x2), region = 86 }

// kernel: text2image_forward.26
= control target key start
LH: loop header
LB: loop body
LE: loop exit
PB: predicated region body
PF: predicated region fallthrough
CT: control target
= control target key end

     0   :  { %s1375_s27 = smov 0   ;;  %s1377_s28 = smov 0   ;;  %s1524_s0 = inlined_call_operand.vmem [shape: f32[2,8,1], index: 0, kind: input, shape index: {}]   ;;  %s1525_s1 = inlined_call_operand.vmem [shape: f32[2,1,8], index: 1, kind: input, shape index: {}]   ;;  %s1526_s2 = inlined_call_operand.vmem [shape: bf16[2,4,8,8], index: 2, kind: input, shape index: {}]   ;;  %s1527_s3 = inlined_call_operand.vmem [shape: bf16[2,4,8,8], index: 3, kind: input, shape index: {}]   ;;  %s1528_s4 = inlined_call_operand.vmem [shape: bf16[2,4,8,8], index: 4, kind: input, shape index: {}]   ;;  %s1529_s5 = inlined_call_operand.vmem [shape: bf16[32,32], index: 5, kind: input, shape index: {}]   ;;  %s1530_s6 = inlined_call_operand.vmem [shape: f32[1,32], index: 6, kind: input, shape index: {}]   ;;  %s1531_s7 = inlined_call_operand.vmem [shape: bf16[2,8,32], index: 7, kind: input, shape index: {}]   ;;  %s1532_s8 = inlined_call_operand.vmem [shape: bf16[2,8,32], index: 8, kind: output, shape index: {}]  }
   0x1   :  { %s1379_s29 = smov 0  }
   0x2 LB: > { %s30_s30 = sadd.s32 1, %s1318_s28  ;;  %p1139_p0 = scmp.ge.s32.totalorder %s1322_s29, 1  ;;  %s1322_s29 = sphi %s1379_s29, %s18_s29   ;;  %s1318_s28 = sphi %s1377_s28, %s1534_s28   ;;  %s1314_s27 = sphi %s1375_s27, %s1533_s27  }
   0x3   : > { %p32_p1 = scmp.ge.s32.totalorder %s30_s30, 2  ;;  %p337_p2 = scmp.lt.s32.totalorder %s1322_s29, 3 }
   0x5   : > { %s1536_s30 = smov (%p32_p1, %s30_s30), 0  ;;  %p338_p3 = pnand %p1139_p0, %p337_p2 }
   0x6   : > { %p403_p4 = scmp.lt.s32.totalorder (!%p338_p3), %s1314_s27, 1  ;;  %s1326_s26 = smov (!%p338_p3), 8  }
   0x7   : > { %341 = sbr.rel (%p338_p3) target bundleno = 1579 (0x62b), region = 52  ;;  %s1328_s10 = smov (!%p338_p3), 16  }
   0x8   : > { %s1329_s14 = smov (!%p338_p3), 24  }
   0xc   : > { %v1324_v0 = vmov 0.0   ;;  %vm1325_vm0 = vmmov 0   ;;  %s1538_s27 = smov (!%p403_p4, %s1314_s27), 1  ;;  %vm456_vm1 = vcmask 64512   ;;  %v451_v4 = vlaneseq }
   0xd   : > { %1194 = vmatprep.subr.bf16.mxu0 %v1324_v0  ;;  %1196 = vmatprep.mubr.msk.bf16.mxu0 %vm1325_vm0, %v1324_v0  ;;  %s1402_s9 = sshll.u32 %s1538_s27, 4  ;;  %s412_s18 = scalar_lea.vmem %s1525_s1, %s1538_s27  ;;  %vm519_vm2 = vcmask 1043456   ;;  %vm909_vm3 = vcmask 130048   ;;  %vm912_vm4 = vcmask 195584   ;;  %vm938_vm5 = vcmask 261120  }
   0xe   : > { %1200 = vmatprep.subr.bf16.mxu1 %v1324_v0  ;;  %1202 = vmatprep.mubr.msk.bf16.mxu1 %vm1325_vm0, %v1324_v0  ;;  %s1408_s12 = scalar_lea.vmem %s1527_s3, %s1402_s9  ;;  %s1416_s15 = scalar_lea.vmem %s1526_s2, %s1402_s9  ;;  %v452_v5 = vshrl.u32 %v451_v4, 7  ;;  %v446_v6 = vld [vmem:[%s412_s18] sm:$0x1]  ;;  %vm993_vm6 = vcmask 257024  }
   0xf   : > { %v449_v1 = vld [vmem:[%s1408_s12] sm:$0xf]  ;;  %v447_v7 = vmul.f32 -1e+30, %v446_v6  ;;  %s1436_s21 = scalar_lea.vmem %s1528_s4, %s1402_s9  ;;  %v1152_v25 = vld [vmem:[%s1408_s12 + $0x4] sm:$0xf] }
  0x10   : > { %v461_v2 = vsel %vm456_vm1, %v449_v1, 0  ;;  %v448_v3 = vld [vmem:[%s1416_s15] sm:$0xf]  ;;  %v453_v8 = vsub.s32 0, %v452_v5  ;;  %v572_v28 = vsel %vm456_vm1, %v1152_v25, 0  ;;  %s1140_s9 = sshll.u32 %s1538_s27, 3 }
  0x11   : > { %1195 = vmatpush3.bf16.xpose.msra.mxu0 %v461_v2  ;;  %v515_v21 = vld [vmem:[%s1436_s21] sm:$0xf]  ;;  %v1157_v29 = vld [vmem:[%s1408_s12 + $0x8] sm:$0xf]  ;;  %v1151_v30 = vld [vmem:[%s1416_s15 + $0x4] sm:$0xf]  ;;  %s409_s13 = scalar_lea.vmem %s1524_s0, %s1140_s9 }
  0x12   : > { %1212 = vmatprep.subr.bf16.mxu0 %v1324_v0  ;;  %v1427_v9 = vrot.slane %v447_v7, %v453_v8  ;;  %v521_v22 = vsel %vm519_vm2, %v515_v21, 0  ;;  %v683_v31 = vsel %vm456_vm1, %v1157_v29, 0  ;;  %v1162_v32 = vld [vmem:[%s1408_s12 + $0xc] sm:$0xf]  ;;  %v1156_v33 = vld [vmem:[%s1416_s15 + $0x8] sm:$0xf] }
  0x13   : > { %1201 = vmatpush3.bf16.msra.mxu1 %v521_v22  ;;  %v794_v34 = vsel %vm456_vm1, %v1162_v32, 0  ;;  %v1161_v35 = vld [vmem:[%s1416_s15 + $0xc] sm:$0xf]  ;;  %s1147_s15 = sshll.u32 %s1538_s27, 2 }
  0x14   : > { %1206 = vmatprep.subr.bf16.mxu1 %v1324_v0  ;;  %v1164_v21 = vld [vmem:[%s1436_s21 + $0xc] sm:$0xf]  ;;  %s437_s18 = scalar_lea.vmem %s1531_s7, %s1147_s15  ;;  %s444_s27 = scalar_lea.vmem %s1532_s8, %s1147_s15 }
  0x18   : > { %1197 = vmatmul.mubr.msk.bf16.vlgmr.msra.gmra.mxu0 %vm456_vm1, %v448_v3 }
  0x19   : > { %1214 = vmatprep.mubr.msk.bf16.mxu0 %vm1325_vm0, %v1324_v0 }
  0xd8   : > { %v497_v10 = vpop.f32.mrf.mxu0 }
  0xd9   : > { %v498_v11 = vadd.f32 %v497_v10, %v1427_v9  ;;  %v1154_v10 = vld [vmem:[%s1436_s21 + $0x4] sm:$0xf] }
  0xda   : > { %v1198_v12 = vpop.f32.mrf.mxu0 }
  0xdb   : > { %v503_v13 = vsel %vm456_vm1, %v498_v11, -inf }
  0xdc   : > { %v500_v14 = vpop.f32.mrf.mxu0  ;;  %504 = vmax.xlane.f32.xlu0 %v503_v13 }
  0xde   : > { %v1199_v15 = vpop.f32.mrf.mxu0 }
  0xdf   : > { %v1159_v15 = vld [vmem:[%s1436_s21 + $0x8] sm:$0xf] }
 0x165   : > { %v505_v16 = vpop.xlane.xlu0 %504 }
 0x166   : > { %v506_v17 = vsub.f32 %v498_v11, %v505_v16  ;;  %v632_v11 = vsel %vm519_vm2, %v1154_v10, 0 }
 0x167   : > { %1213 = vmatpush3.bf16.msra.mxu0 %v632_v11 }
 0x168   : > { %v507_v18 = vmul.f32 1.442695, %v506_v17  ;;  %1224 = vmatprep.subr.bf16.mxu0 %v1324_v0 }
 0x16a   : > { %1284 = vpow2.f32 %v507_v18 }
 0x177   : > { %v1285_v19 = vpop.eup %1284 }
 0x178   : > { %v509_v20 = vsel %vm456_vm1, %v1285_v19, 0.0 }
 0x179   : > { %510 = vadd.xlane.f32.xlu0 %v509_v20 }
 0x202   : > { %v511_v23 = vpop.xlane.xlu0 %510 }
 0x203   : > { %1286 = vrcp.f32 %v511_v23 }
 0x210   : > { %v1287_v24 = vpop.eup %1286 }
 0x211   : > { %v513_v26 = vmul.f32 %v1287_v24, %v1285_v19  ;;  %v743_v19 = vsel %vm519_vm2, %v1159_v15, 0  ;;  %v854_v24 = vsel %vm519_vm2, %v1164_v21, 0 }
 0x213   : > { %v514_v27 = vpack.c.bf16 %v513_v26, %v513_v26 }
 0x215   : > { %1203 = vmatmul.mubr.msk.bf16.vlgmr.msra.gmra.mxu1 %vm456_vm1, %v514_v27 }
 0x216   : > { %1207 = vmatpush3.bf16.xpose.msra.mxu1 %v572_v28  ;;  %1208 = vmatprep.mubr.msk.bf16.mxu1 %vm1325_vm0, %v1324_v0  ;;  %v1282_v28 = vld [vmem:[%s1529_s5 + $0x8] sm:$0xff]  }
 0x217   : > { %1218 = vmatprep.subr.bf16.mxu1 %v1324_v0 }
 0x21d   : > { %1209 = vmatmul.mubr.msk.bf16.vlgmr.msra.gmra.mxu1 %vm456_vm1, %v1151_v30  ;;  %v1283_v30 = vld [vmem:[%s1529_s5] sm:$0xff]  }
 0x21e   : > { %1219 = vmatpush3.bf16.xpose.msra.mxu1 %v683_v31  ;;  %1220 = vmatprep.mubr.msk.bf16.mxu1 %vm1325_vm0, %v1324_v0 }
 0x21f   : > { %1230 = vmatprep.subr.bf16.mxu1 %v1324_v0 }
 0x225   : > { %1221 = vmatmul.mubr.msk.bf16.vlgmr.msra.gmra.mxu1 %vm456_vm1, %v1156_v33 }
 0x226   : > { %1231 = vmatpush3.bf16.xpose.msra.mxu1 %v794_v34  ;;  %1232 = vmatprep.mubr.msk.bf16.mxu1 %vm1325_vm0, %v1324_v0 }
 0x227   : > { %1242 = vmatprep.subr.bf16.mxu1 %v1324_v0 }
 0x22d   : > { %1233 = vmatmul.mubr.msk.bf16.vlgmr.msra.gmra.mxu1 %vm456_vm1, %v1161_v35 }
 0x22e   : > { %1246 = vmatprep.mubr.msk.bf16.mxu1 %vm1325_vm0, %v1324_v0  ;;  %1243 = vmatpush3.bf16.msra.mxu1 %v1282_v28 }
 0x22f   : > { %1244 = vmatprep.subr.bf16.mxu1 %v1324_v0 }
 0x232   : > { %1245 = vmatpush3.bf16.msra.mxu1 %v1283_v30 }
 0x2d5   : > { %v1465_v36 = vpop.f32.mrf.mxu1 }
 0x2d7   : > { %v1204_v37 = vpop.f32.mrf.mxu1 }
 0x2d8   : > { %v1327_v37 = vmov 0  }
 0x2d9   : > { %v560_v38 = vpop.f32.mrf.mxu1  ;;  %1280 = vset.pattern.permute.xlu1 %v1327_v37  ;;  %1281 = vset.pattern.permute.xlu0 %v1327_v37 }
 0x2db   : > { %v1205_v39 = vpop.f32.mrf.mxu1 }
 0x2dd   : > { %v608_v40 = vpop.f32.mrf.mxu1 }
 0x2de   : > { %v609_v41 = vadd.f32 %v608_v40, %v1427_v9 }
 0x2df   : > { %v1210_v42 = vpop.f32.mrf.mxu1 }
 0x2e0   : > { %v614_v43 = vsel %vm456_vm1, %v609_v41, -inf  ;;  %v981_v42 = vld [vmem:[%s409_s13] sm:$0xff] }
 0x2e1   : > { %615 = vmax.xlane.f32.xlu1 %v614_v43  ;;  %v611_v44 = vpop.f32.mrf.mxu1 }
 0x2e3   : > { %v1211_v45 = vpop.f32.mrf.mxu1 }
 0x2e4   : > { %v982_v45 = vsub.f32 1.0, %v981_v42 }
 0x2e5   : > { %v719_v46 = vpop.f32.mrf.mxu1 }
 0x2e6   : > { %v720_v47 = vadd.f32 %v719_v46, %v1427_v9 }
 0x2e7   : > { %v1222_v48 = vpop.f32.mrf.mxu1 }
 0x2e8   : > { %v725_v49 = vsel %vm456_vm1, %v720_v47, -inf }
 0x2e9   : > { %726 = vmax.xlane.f32.xlu1 %v725_v49  ;;  %v722_v50 = vpop.f32.mrf.mxu1 }
 0x2ea   : > { %v563_v50 = vpack.c.bf16 %v1465_v36, %v1465_v36 }
 0x2eb   : > { %v1223_v51 = vpop.f32.mrf.mxu1 }
 0x2ed   : > { %v830_v52 = vpop.f32.mrf.mxu1 }
 0x2ee   : > { %v831_v53 = vadd.f32 %v830_v52, %v1427_v9 }
 0x2ef   : > { %v1234_v54 = vpop.f32.mrf.mxu1 }
 0x2f0   : > { %v836_v55 = vsel %vm456_vm1, %v831_v53, -inf }
 0x2f1   : > { %837 = vmax.xlane.f32.xlu0 %v836_v55  ;;  %v833_v56 = vpop.f32.mrf.mxu1  ;;  %v1166_v55 = vld [vmem:[%s1530_s6] ss:$0 sm:$0xff] }
 0x2f2   : > { %v989_v56 = vld [vmem:[%s437_s18] sm:$0xf] }
 0x2f3   : > { %v1235_v57 = vpop.f32.mrf.mxu1 }
 0x36a   : > { %v616_v58 = vpop.xlane.xlu1 %615 }
 0x36b   : > { %v617_v59 = vsub.f32 %v609_v41, %v616_v58 }
 0x36d   : > { %v618_v60 = vmul.f32 1.442695, %v617_v59  ;;  %v990_v59 = vunpack.c.l.bf16 %v989_v56 }
 0x36f   : > { %1288 = vpow2.f32 %v618_v60 }
 0x372   : > { %v727_v61 = vpop.xlane.xlu1 %726 }
 0x373   : > { %v728_v62 = vsub.f32 %v720_v47, %v727_v61 }
 0x375   : > { %v729_v63 = vmul.f32 1.442695, %v728_v62 }
 0x377   : > { %1290 = vpow2.f32 %v729_v63 }
 0x37a   : > { %v838_v1 = vpop.xlane.xlu0 %837 }
 0x37b   : > { %v839_v2 = vsub.f32 %v831_v53, %v838_v1 }
 0x37c   : > { %v1289_v3 = vpop.eup %1288 }
 0x37d   : > { %v840_v4 = vmul.f32 1.442695, %v839_v2  ;;  %v620_v5 = vsel %vm456_vm1, %v1289_v3, 0.0 }
 0x37e   : > { %621 = vadd.xlane.f32.xlu1 %v620_v5 }
 0x37f   : > { %1292 = vpow2.f32 %v840_v4 }
 0x384   : > { %v1291_v6 = vpop.eup %1290 }
 0x385   : > { %v731_v7 = vsel %vm456_vm1, %v1291_v6, 0.0 }
 0x386   : > { %732 = vadd.xlane.f32.xlu0 %v731_v7 }
 0x38c   : > { %v1293_v8 = vpop.eup %1292 }
 0x38d   : > { %v842_v9 = vsel %vm456_vm1, %v1293_v8, 0.0 }
 0x38e   : > { %843 = vadd.xlane.f32.xlu1 %v842_v9 }
 0x407   : > { %v622_v12 = vpop.xlane.xlu1 %621 }
 0x408   : > { %1294 = vrcp.f32 %v622_v12 }
 0x40f   : > { %v733_v13 = vpop.xlane.xlu0 %732 }
 0x410   : > { %1296 = vrcp.f32 %v733_v13 }
 0x415   : > { %v1295_v14 = vpop.eup %1294 }
 0x416   : > { %v624_v16 = vmul.f32 %v1295_v14, %v1289_v3 }
 0x417   : > { %v844_v17 = vpop.xlane.xlu1 %843 }
 0x418   : > { %1298 = vrcp.f32 %v844_v17  ;;  %v625_v18 = vpack.c.bf16 %v624_v16, %v624_v16 }
 0x41a   : > { %1215 = vmatmul.mubr.msk.bf16.vlgmr.msra.gmra.mxu0 %vm456_vm1, %v625_v18 }
 0x41b   : > { %1225 = vmatpush3.bf16.msra.mxu0 %v743_v19  ;;  %1226 = vmatprep.mubr.msk.bf16.mxu0 %vm1325_vm0, %v1324_v0 }
 0x41c   : > { %1236 = vmatprep.subr.bf16.mxu0 %v1324_v0 }
 0x41d   : > { %v1297_v20 = vpop.eup %1296 }
 0x41e   : > { %v735_v22 = vmul.f32 %v1297_v20, %v1291_v6 }
 0x420   : > { %v736_v23 = vpack.c.bf16 %v735_v22, %v735_v22 }
 0x422   : > { %1227 = vmatmul.mubr.msk.bf16.vlgmr.msra.gmra.mxu0 %vm456_vm1, %v736_v23 }
 0x423   : > { %1237 = vmatpush3.bf16.msra.mxu0 %v854_v24  ;;  %1238 = vmatprep.mubr.msk.bf16.mxu0 %vm1325_vm0, %v1324_v0 }
 0x425   : > { %v1299_v25 = vpop.eup %1298 }
 0x426   : > { %v846_v26 = vmul.f32 %v1299_v25, %v1293_v8 }
 0x428   : > { %v847_v27 = vpack.c.bf16 %v846_v26, %v846_v26 }
 0x42a   : > { %1239 = vmatmul.mubr.msk.bf16.vlgmr.msra.gmra.mxu0 %vm456_vm1, %v847_v27 }
 0x4da   : > { %v668_v29 = vpop.f32.mrf.mxu0 }
 0x4db   : > { %v674_v31 = vpack.c.bf16 %v668_v29, %v668_v29 }
 0x4dc   : > { %v1216_v32 = vpop.f32.mrf.mxu0 }
 0x4dd   : > { %898 = vrot.lane.b32.xlu0 %v674_v31, %s1326_s26 }
 0x4de   : > { %v671_v33 = vpop.f32.mrf.mxu0 }
 0x4e0   : > { %v1217_v34 = vpop.f32.mrf.mxu0 }
 0x4e2   : > { %v779_v35 = vpop.f32.mrf.mxu0 }
 0x4e3   : > { %v785_v38 = vpack.c.bf16 %v779_v35, %v779_v35 }
 0x4e4   : > { %v1228_v39 = vpop.f32.mrf.mxu0 }
 0x4e5   : > { %901 = vrot.lane.b32.xlu1 %v785_v38, %s1328_s10 }
 0x4e6   : > { %v782_v40 = vpop.f32.mrf.mxu0 }
 0x4e8   : > { %v1229_v0 = vpop.f32.mrf.mxu0 }
 0x4ea   : > { %v890_v41 = vpop.f32.mrf.mxu0 }
 0x4eb   : > { %v896_v43 = vpack.c.bf16 %v890_v41, %v890_v41 }
 0x4ec   : > { %v1240_v44 = vpop.f32.mrf.mxu0 }
 0x4ed   : > { %904 = vrot.lane.b32.xlu1 %v896_v43, %s1329_s14 }
 0x4ee   : > { %v893_v46 = vpop.f32.mrf.mxu0 }
 0x4f0   : > { %v1241_v47 = vpop.f32.mrf.mxu0 }
 0x4f1   : > { %985 = vperm.xlu1 %1280, %v982_v45  }
 0x54f   : > { %v899_v48 = vpop.permute.xlu0 %898 }
 0x550   : > { %v908_v51 = vsel %vm456_vm1, %v563_v50, %v899_v48 }
 0x557   : > { %v902_v49 = vpop.permute.xlu1 %901 }
 0x558   : > { %v911_v52 = vsel %vm909_vm3, %v908_v51, %v902_v49 }
 0x55f   : > { %v905_v53 = vpop.permute.xlu1 %904 }
 0x560   : > { %v914_v54 = vsel %vm912_vm4, %v911_v52, %v905_v53 }
 0x561   : > { %1247 = vmatmul.mubr.msk.bf16.vlgmr.msra.gmra.mxu1 %vm938_vm5, %v914_v54 }
 0x56c   : > { %v986_v57 = vpop.permute.xlu1 %985 }
 0x621   : > { %v975_v36 = vpop.f32.mrf.mxu1 }
 0x622   : > { %v976_v58 = vadd.f32 %v1166_v55, %v975_v36 }
 0x623   : > { %v1248_v60 = vpop.f32.mrf.mxu1 }
 0x624   : > { %v988_v61 = vmul.f32 %v986_v57, %v976_v58 }
 0x625   : > { %v978_v62 = vpop.f32.mrf.mxu1 }
 0x626   : > { %v991_v63 = vadd.f32 %v990_v59, %v988_v61 }
 0x627   : > { %v1249_v1 = vpop.f32.mrf.mxu1 }
 0x628   : > { %v992_v2 = vpack.c.bf16 %v991_v63, %v991_v63 }
 0x62a   : > { %994 = vst.msk [vmem:[%s444_s27] sm:$0xf] %vm993_vm6, %v992_v2 }
 0x62b PF: > { %s18_s29 = sadd.s32 1, %s1322_s29   ;;  %s1533_s27 = smov %s1318_s28 }
 0x62c   : > { %p15_p5 = scmp.ge.s32.totalorder %s18_s29, 4   ;;  %s1534_s28 = smov %s1536_s30 }
 0x62e   :  { %17 = sbr.rel (!%p15_p5) target bundleno = 2 (0x2), region = 106 }

// kernel: text2image_forward.28
= control target key start
LH: loop header
LB: loop body
LE: loop exit
PB: predicated region body
PF: predicated region fallthrough
CT: control target
= control target key end

     0   :  { %v331_v0 = vmov 0.0   ;;  %vm332_vm0 = vmmov 0   ;;  %s401_s1 = inlined_call_operand.vmem [shape: bf16[128,128], index: 1, kind: input, shape index: {}]   ;;  %s402_s0 = inlined_call_operand.vmem [shape: bf16[40,128], index: 0, kind: input, shape index: {}]   ;;  %s403_s2 = inlined_call_operand.vmem [shape: f32[1,128], index: 2, kind: input, shape index: {}]   ;;  %s404_s3 = inlined_call_operand.vmem [shape: bf16[40,128], index: 3, kind: output, shape index: {}]  }
   0x1   :  { %274 = vmatprep.subr.bf16.mxu0 %v331_v0  ;;  %302 = vmatprep.subr.bf16.mxu1 %v331_v0  ;;  %v320_v1 = vld [vmem:[%s401_s1 + $0x38] sm:$0xff]   ;;  %v321_v2 = vld [vmem:[%s401_s1 + $0x30] sm:$0xff]   ;;  %v322_v3 = vld [vmem:[%s401_s1 + $0x28] sm:$0xff]  }
   0x2   :  { %290 = vmatprep.mubr.msk.bf16.mxu0 %vm332_vm0, %v331_v0  ;;  %294 = vmatprep.mubr.msk.bf16.mxu1 %vm332_vm0, %v331_v0  ;;  %v323_v4 = vld [vmem:[%s401_s1 + $0x20] sm:$0xff]   ;;  %v324_v5 = vld [vmem:[%s401_s1 + $0x18] sm:$0xff]   ;;  %v325_v6 = vld [vmem:[%s401_s1 + $0x10] sm:$0xff]  }
   0x3   :  { %275 = vmatpush3.bf16.msra.mxu0 %v320_v1  ;;  %310 = vmatpush3.bf16.msra.mxu1 %v320_v1  ;;  %v326_v7 = vld [vmem:[%s401_s1 + $0x8] sm:$0xff]   ;;  %v327_v8 = vld [vmem:[%s401_s1] sm:$0xff]   ;;  %v330_v11 = vld [vmem:[%s402_s0 + $0x10] ss:$0 sps:$4 sm:$0xff]  }
   0x4   :  { %276 = vmatprep.subr.bf16.mxu0 %v331_v0  ;;  %303 = vmatprep.subr.bf16.mxu1 %v331_v0  ;;  %v328_v9 = vld [vmem:[%s402_s0] sm:$0xff]   ;;  %v329_v10 = vld [vmem:[%s402_s0 + $0x8] sm:$0xff]  }
   0x5   :  { %v241_v14 = vld [vmem:[%s403_s2] ss:$0 sm:$0xff] }
   0x7   :  { %277 = vmatpush3.bf16.msra.mxu0 %v321_v2  ;;  %311 = vmatpush3.bf16.msra.mxu1 %v321_v2 }
   0x8   :  { %278 = vmatprep.subr.bf16.mxu0 %v331_v0  ;;  %304 = vmatprep.subr.bf16.mxu1 %v331_v0 }
   0xb   :  { %279 = vmatpush3.bf16.msra.mxu0 %v322_v3  ;;  %312 = vmatpush3.bf16.msra.mxu1 %v322_v3 }
   0xc   :  { %280 = vmatprep.subr.bf16.mxu0 %v331_v0  ;;  %305 = vmatprep.subr.bf16.mxu1 %v331_v0 }
   0xf   :  { %281 = vmatpush3.bf16.msra.mxu0 %v323_v4  ;;  %313 = vmatpush3.bf16.msra.mxu1 %v323_v4 }
  0x10   :  { %282 = vmatprep.subr.bf16.mxu0 %v331_v0  ;;  %306 = vmatprep.subr.bf16.mxu1 %v331_v0 }
  0x13   :  { %283 = vmatpush3.bf16.msra.mxu0 %v324_v5  ;;  %314 = vmatpush3.bf16.msra.mxu1 %v324_v5 }
  0x14   :  { %284 = vmatprep.subr.bf16.mxu0 %v331_v0  ;;  %307 = vmatprep.subr.bf16.mxu1 %v331_v0 }
  0x17   :  { %285 = vmatpush3.bf16.msra.mxu0 %v325_v6  ;;  %315 = vmatpush3.bf16.msra.mxu1 %v325_v6 }
  0x18   :  { %286 = vmatprep.subr.bf16.mxu0 %v331_v0  ;;  %308 = vmatprep.subr.bf16.mxu1 %v331_v0 }
  0x1b   :  { %287 = vmatpush3.bf16.msra.mxu0 %v326_v7  ;;  %316 = vmatpush3.bf16.msra.mxu1 %v326_v7 }
  0x1c   :  { %288 = vmatprep.subr.bf16.mxu0 %v331_v0  ;;  %309 = vmatprep.subr.bf16.mxu1 %v331_v0 }
  0x1f   :  { %289 = vmatpush3.bf16.msra.mxu0 %v327_v8  ;;  %317 = vmatpush3.bf16.msra.mxu1 %v327_v8 }
  0x22   :  { %291 = vmatmul.mubr.bf16.vlgmr.msra.gmra.mxu0 %v328_v9  ;;  %295 = vmatmul.mubr.bf16.vlgmr.msra.gmra.mxu1 %v329_v10 }
  0x23   :  { %298 = vmatprep.mubr.msk.bf16.mxu1 %vm332_vm0, %v331_v0 }
  0x2a   :  { %299 = vmatmul.mubr.bf16.gmra.mxu1 %v330_v11 }
  0xe2   :  { %v148_v12 = vpop.f32.mrf.mxu0  ;;  %v156_v13 = vpop.f32.mrf.mxu1 }
  0xe3   :  { %v195_v17 = vadd.f32 %v241_v14, %v148_v12  ;;  %v197_v20 = vadd.f32 %v241_v14, %v156_v13 }
  0xe4   :  { %v292_v15 = vpop.f32.mrf.mxu0  ;;  %v296_v16 = vpop.f32.mrf.mxu1 }
  0xe6   :  { %v151_v18 = vpop.f32.mrf.mxu0  ;;  %v159_v19 = vpop.f32.mrf.mxu1 }
  0xe7   :  { %v196_v21 = vadd.f32 %v241_v14, %v151_v18  ;;  %v198_v22 = vadd.f32 %v241_v14, %v159_v19 }
  0xe8   :  { %v293_v23 = vpop.f32.mrf.mxu0  ;;  %v297_v24 = vpop.f32.mrf.mxu1 }
  0xe9   :  { %v255_v25 = vpack.c.bf16 %v196_v21, %v195_v17  ;;  %v260_v26 = vpack.c.bf16 %v198_v22, %v197_v20 }
  0xea   :  { %v164_v27 = vpop.f32.mrf.mxu1 }
  0xeb   :  { %256 = vst [vmem:[%s404_s3] sm:$0xff] %v255_v25   ;;  %262 = vst [vmem:[%s404_s3 + $0x8] sm:$0xff] %v260_v26   ;;  %v199_v28 = vadd.f32 %v241_v14, %v164_v27 }
  0xec   :  { %v300_v29 = vpop.f32.mrf.mxu1 }
  0xed   :  { %v251_v30 = vpack.c.bf16 %v199_v28, %v199_v28 }
  0xee   :  { %v167_v31 = vpop.f32.mrf.mxu1 }
  0xef   :  { %225 = vst [vmem:[%s404_s3 + $0x10] sm:$0xf] %v251_v30 }
  0xf0   :  { %v301_v32 = vpop.f32.mrf.mxu1 }

// kernel: text2image_forward.30
= control target key start
LH: loop header
LB: loop body
LE: loop exit
PB: predicated region body
PF: predicated region fallthrough
CT: control target
= control target key end

     0   :  { %s652_s18 = smov 0   ;;  %s654_s19 = smov 0   ;;  %s712_s0 = inlined_call_operand.vmem [shape: bf16[2,8,32], index: 0, kind: input, shape index: {}]   ;;  %s713_s1 = inlined_call_operand.vmem [shape: f32[2,1,32], index: 1, kind: input, shape index: {}]   ;;  %s714_s2 = inlined_call_operand.vmem [shape: f32[2,1,32], index: 2, kind: input, shape index: {}]   ;;  %s715_s3 = inlined_call_operand.vmem [shape: bf16[32,128], index: 3, kind: input, shape index: {}]   ;;  %s716_s4 = inlined_call_operand.vmem [shape: f32[1,128], index: 4, kind: input, shape index: {}]   ;;  %s717_s5 = inlined_call_operand.vmem [shape: bf16[2,8,128], index: 5, kind: output, shape index: {}]  }
   0x1   :  { %s656_s20 = smov 0  }
   0x2 LB: > { %s27_s21 = sadd.s32 1, %s614_s19  ;;  %p540_p0 = scmp.ge.s32.totalorder %s618_s20, 1  ;;  %s618_s20 = sphi %s656_s20, %s15_s20   ;;  %s614_s19 = sphi %s654_s19, %s719_s19   ;;  %s610_s18 = sphi %s652_s18, %s718_s18  }
   0x3   : > { %p29_p1 = scmp.ge.s32.totalorder %s27_s21, 2  ;;  %p233_p2 = scmp.lt.s32.totalorder %s618_s20, 3 }
   0x5   : > { %s721_s21 = smov (%p29_p1, %s27_s21), 0  ;;  %p234_p3 = pnand %p540_p0, %p233_p2 }
   0x6   : > { %p275_p4 = scmp.lt.s32.totalorder (!%p234_p3), %s610_s18, 1 }
   0x7   : > { %237 = sbr.rel (%p234_p3) target bundleno = 570 (0x23a), region = 40 }
   0xc   : > { %s723_s18 = smov (!%p275_p4, %s610_s18), 1  ;;  %vm306_vm0 = vcmask 261120   ;;  %v588_v8 = vld [vmem:[%s715_s3 + $0x8] sm:$0xff]   ;;  %v620_v9 = vmov 0.0   ;;  %v589_v10 = vld [vmem:[%s715_s3] sm:$0xff]   ;;  %vm621_vm1 = vmmov 0  }
   0xd   : > { %s541_s22 = sshll.u32 %s723_s18, 2  ;;  %554 = vmatprep.subr.bf16.mxu0 %v620_v9  ;;  %558 = vmatprep.mubr.msk.bf16.mxu0 %vm621_vm1, %v620_v9  ;;  %s281_s7 = scalar_lea.vmem %s713_s1, %s723_s18  ;;  %vm338_vm2 = vcmask 257024   ;;  %v545_v22 = vld [vmem:[%s716_s4] ss:$0 sm:$0xff] }
   0xe   : > { %s278_s25 = scalar_lea.vmem %s712_s0, %s541_s22  ;;  %555 = vmatpush3.bf16.msra.mxu0 %v588_v8  ;;  %s284_s10 = scalar_lea.vmem %s714_s2, %s723_s18  ;;  %v543_v15 = vld [vmem:[%s281_s7] ss:$0 sm:$0xff] }
   0xf   : > { %v304_v0 = vld [vmem:[%s278_s25] sm:$0xf]  ;;  %556 = vmatprep.subr.bf16.mxu0 %v620_v9  ;;  %s298_s15 = scalar_lea.vmem %s717_s5, %s541_s22 }
  0x10   : > { %v305_v1 = vunpack.c.l.bf16 %v304_v0  ;;  %v544_v17 = vld [vmem:[%s284_s10] ss:$0 sm:$0xff] }
  0x12   : > { %v307_v2 = vsel %vm306_vm0, %v305_v1, 0.0  ;;  %557 = vmatpush3.bf16.msra.mxu0 %v589_v10 }
  0x13   : > { %308 = vadd.xlane.f32.xlu0 %v307_v2 }
  0x9c   : > { %v309_v3 = vpop.xlane.xlu0 %308 }
  0x9d   : > { %v311_v4 = vmul.f32 0.03125, %v309_v3 }
  0x9f   : > { %v312_v5 = vsub.f32 %v305_v1, %v311_v4 }
  0xa1   : > { %v313_v6 = vmul.f32 %v312_v5, %v312_v5 }
  0xa3   : > { %v314_v7 = vsel %vm306_vm0, %v313_v6, 0.0 }
  0xa4   : > { %315 = vadd.xlane.f32.xlu0 %v314_v7 }
 0x12d   : > { %v316_v11 = vpop.xlane.xlu0 %315 }
 0x12e   : > { %v317_v12 = vmul.f32 0.03125, %v316_v11 }
 0x130   : > { %v318_v13 = vadd.f32 1e-05, %v317_v12 }
 0x132   : > { %590 = vrsqrt.f32 %v318_v13 }
 0x13f   : > { %v591_v14 = vpop.eup %590 }
 0x140   : > { %v320_v16 = vmul.f32 %v591_v14, %v312_v5 }
 0x142   : > { %v328_v18 = vmul.f32 %v543_v15, %v320_v16 }
 0x144   : > { %v336_v19 = vadd.f32 %v544_v17, %v328_v18 }
 0x146   : > { %v337_v20 = vpack.c.bf16 %v336_v19, %v336_v19 }
 0x148   : > { %339 = vst.msk [vmem:[#allocation2] sm:$0xf] %vm338_vm2, %v337_v20 }
 0x14f   : > { %v340_v21 = vld [vmem:[#allocation2] sm:$0xf] }
 0x150   : > { %559 = vmatmul.mubr.msk.bf16.vlgmr.msra.gmra.mxu0 %vm306_vm0, %v340_v21 }
 0x210   : > { %v402_v23 = vpop.f32.mrf.mxu0 }
 0x211   : > { %v403_v24 = vadd.f32 %v545_v22, %v402_v23 }
 0x212   : > { %v560_v25 = vpop.f32.mrf.mxu0 }
 0x213   : > { %v408_v26 = vmul.f32 -1.702, %v403_v24 }
 0x214   : > { %v405_v27 = vpop.f32.mrf.mxu0 }
 0x215   : > { %v409_v28 = vmul.f32 1.442695, %v408_v26 }
 0x216   : > { %v561_v29 = vpop.f32.mrf.mxu0 }
 0x217   : > { %592 = vpow2.f32 %v409_v28 }
 0x224   : > { %v593_v30 = vpop.eup %592 }
 0x225   : > { %v411_v31 = vadd.f32 1.0, %v593_v30 }
 0x227   : > { %594 = vrcp.f32 %v411_v31 }
 0x234   : > { %v595_v32 = vpop.eup %594 }
 0x235   : > { %v414_v33 = vmul.f32 %v595_v32, %v403_v24 }
 0x237   : > { %v415_v34 = vpack.c.bf16 %v414_v33, %v414_v33 }
 0x239   : > { %416 = vst [vmem:[%s298_s15] sm:$0xf] %v415_v34 }
 0x23a PF: > { %s15_s20 = sadd.s32 1, %s618_s20   ;;  %s718_s18 = smov %s614_s19 }
 0x23b   : > { %p12_p5 = scmp.ge.s32.totalorder %s15_s20, 4   ;;  %s719_s19 = smov %s721_s21 }
 0x23d   :  { %14 = sbr.rel (!%p12_p5) target bundleno = 2 (0x2), region = 86 }

// kernel: text2image_forward.29
= control target key start
LH: loop header
LB: loop body
LE: loop exit
PB: predicated region body
PF: predicated region fallthrough
CT: control target
= control target key end

     0   :  { %s1479_s24 = smov 0   ;;  %s1481_s25 = smov 0   ;;  %s1640_s0 = inlined_call_operand.vmem [shape: f32[2,8,1], index: 0, kind: input, shape index: {}]   ;;  %s1641_s1 = inlined_call_operand.vmem [shape: bf16[2,4,8,8], index: 1, kind: input, shape index: {}]   ;;  %s1642_s2 = inlined_call_operand.vmem [shape: bf16[2,4,19,8], index: 2, kind: input, shape index: {}]   ;;  %s1643_s3 = inlined_call_operand.vmem [shape: bf16[2,4,19,8], index: 3, kind: input, shape index: {}]   ;;  %s1644_s4 = inlined_call_operand.vmem [shape: bf16[32,32], index: 4, kind: input, shape index: {}]   ;;  %s1645_s5 = inlined_call_operand.vmem [shape: f32[1,32], index: 5, kind: input, shape index: {}]   ;;  %s1646_s6 = inlined_call_operand.vmem [shape: bf16[2,8,32], index: 6, kind: input, shape index: {}]   ;;  %s1647_s7 = inlined_call_operand.vmem [shape: bf16[2,8,32], index: 7, kind: output, shape index: {}]  }
   0x1   :  { %s1483_s26 = smov 0  }
   0x2 LB: > { %s29_s27 = sadd.s32 1, %s1426_s25  ;;  %p1181_p0 = scmp.ge.s32.totalorder %s1430_s26, 1  ;;  %s1430_s26 = sphi %s1483_s26, %s17_s26   ;;  %s1426_s25 = sphi %s1481_s25, %s1649_s25   ;;  %s1422_s24 = sphi %s1479_s24, %s1648_s24  }
   0x3   : > { %p31_p1 = scmp.ge.s32.totalorder %s29_s27, 2  ;;  %p304_p2 = scmp.lt.s32.totalorder %s1430_s26, 3 }
   0x5   : > { %s1651_s27 = smov (%p31_p1, %s29_s27), 0  ;;  %p305_p3 = pnand %p1181_p0, %p304_p2 }
   0x6   : > { %p365_p4 = scmp.lt.s32.totalorder (!%p305_p3), %s1422_s24, 1  ;;  %s1435_s16 = smov (!%p305_p3), 8  }
   0x7   : > { %308 = sbr.rel (%p305_p3) target bundleno = 2622 (0xa3e), region = 48  ;;  %s1436_s17 = smov (!%p305_p3), 16  }
   0x8   : > { %s1438_s30 = smov (!%p305_p3), 24  }
   0xc   : > { %v1432_v0 = vmov 0.0   ;;  %vm1433_vm0 = vmmov 0   ;;  %s1653_s24 = smov (!%p365_p4, %s1422_s24), 1  ;;  %vm417_vm1 = vcmask 64512   ;;  %vm467_vm2 = vcmask 154624  }
   0xd   : > { %1268 = vmatprep.subr.bf16.mxu0 %v1432_v0  ;;  %1272 = vmatprep.mubr.msk.bf16.mxu0 %vm1433_vm0, %v1432_v0  ;;  %s1340_s28 = smul.u32 48, %s1653_s24  ;;  %s1240_s9 = sshll.u32 %s1653_s24, 4  ;;  %vm495_vm3 = vcmask 1040384   ;;  %vm496_vm4 = vcmask 1041408   ;;  %v1434_v17 = vmov 65535   ;;  %vm960_vm5 = vcmask 130048  }
   0xe   : > { %1276 = vmatprep.subr.bf16.mxu1 %v1432_v0  ;;  %1280 = vmatprep.mubr.msk.bf16.mxu1 %vm1433_vm0, %v1432_v0  ;;  %s1522_s12 = scalar_lea.vmem %s1641_s1, %s1240_s9  ;;  %v497_v18 = vsel %vm495_vm3, 4294967295, %v1434_v17  ;;  %s1182_s22 = sshll.u32 %s1653_s24, 3  ;;  %vm963_vm6 = vcmask 195584   ;;  %vm989_vm7 = vcmask 261120   ;;  %vm1044_vm8 = vcmask 257024  }
   0xf   : > { %s1511_s8 = scalar_lea.vmem %s1642_s2, %s1340_s28  ;;  %v405_v5 = vld [vmem:[%s1522_s12] sm:$0xf]  ;;  %s1536_s15 = scalar_lea.vmem %s1643_s3, %s1340_s28  ;;  %v1539_v19 = vsel %vm496_vm4, %v497_v18, 0  ;;  %v1195_v30 = vld [vmem:[%s1522_s12 + $0x4] sm:$0xf] }
  0x10   : > { %v1374_v1 = vld [vmem:[%s1511_s8 + $0x8] ss:$0 sps:$4 sm:$0x33]   ;;  %v1375_v3 = vld [vmem:[%s1511_s8] sm:$0xff]   ;;  %v1379_v28 = vld [vmem:[%s1511_s8 + $0xc] sm:$0xff]   ;;  %s371_s29 = scalar_lea.vmem %s1640_s0, %s1182_s22 }
  0x11   : > { %v425_v2 = vsel %vm417_vm1, %v1374_v1, 0  ;;  %v422_v4 = vsel %vm417_vm1, %v1375_v3, 0  ;;  %v1376_v16 = vld [vmem:[%s1536_s15 + $0x8] ss:$0 sps:$4 sm:$0x33]   ;;  %v1377_v21 = vld [vmem:[%s1536_s15] sm:$0xff]  }
  0x12   : > { %1269 = vmatpush3.bf16.xpose.msra.mxu0 %v425_v2  ;;  %v500_v20 = vand.u32 %v1376_v16, %v1539_v19  ;;  %v1378_v23 = vld [vmem:[%s1511_s8 + $0x14] ss:$0 sps:$4 sm:$0x33]   ;;  %v561_v29 = vsel %vm417_vm1, %v1379_v28, 0  ;;  %v1381_v47 = vld [vmem:[%s1536_s15 + $0xc] sm:$0xff]   ;;  %v1383_v54 = vld [vmem:[%s1511_s8 + $0x18] sm:$0xff]  }
  0x13   : > { %1270 = vmatprep.subr.bf16.mxu0 %v1432_v0  ;;  %v564_v27 = vsel %vm417_vm1, %v1378_v23, 0  ;;  %v1380_v45 = vld [vmem:[%s1536_s15 + $0x14] ss:$0 sps:$4 sm:$0x33]   ;;  %v696_v55 = vsel %vm417_vm1, %v1383_v54, 0  ;;  %v1387_v17 = vld [vmem:[%s1511_s8 + $0x24] sm:$0xff]  }
  0x14   : > { %1277 = vmatpush3.bf16.msra.mxu1 %v500_v20  ;;  %v635_v46 = vand.u32 %v1380_v45, %v1539_v19  ;;  %v1382_v49 = vld [vmem:[%s1511_s8 + $0x20] ss:$0 sps:$4 sm:$0x33]   ;;  %v1208_v56 = vld [vmem:[%s1522_s12 + $0x8] sm:$0xf]  ;;  %v831_v18 = vsel %vm417_vm1, %v1387_v17, 0 }
  0x15   : > { %1278 = vmatprep.subr.bf16.mxu1 %v1432_v0  ;;  %v699_v53 = vsel %vm417_vm1, %v1382_v49, 0  ;;  %v1221_v20 = vld [vmem:[%s1522_s12 + $0xc] sm:$0xf]  ;;  %v1391_v45 = vld [vmem:[%s1644_s4] sm:$0xff]  }
  0x18   : > { %1279 = vmatpush3.bf16.msra.mxu1 %v1377_v21 }
  0x19   : > { %1284 = vmatprep.subr.bf16.mxu1 %v1432_v0 }
  0x1a   : > { %1271 = vmatpush3.bf16.xpose.msra.mxu0 %v422_v4 }
  0x1b   : > { %1292 = vmatprep.subr.bf16.mxu0 %v1432_v0 }
  0x21   : > { %1273 = vmatmul.mubr.msk.bf16.vlgmr.msra.gmra.mxu0 %vm417_vm1, %v405_v5 }
  0x22   : > { %1296 = vmatprep.mubr.msk.bf16.mxu0 %vm1433_vm0, %v1432_v0  ;;  %1293 = vmatpush3.bf16.msra.mxu0 %v635_v46  ;;  %v1437_v46 = vmov 0  }
  0x23   : > { %1294 = vmatprep.subr.bf16.mxu0 %v1432_v0  ;;  %1372 = vset.pattern.permute.xlu1 %v1437_v46 }
  0x24   : > { %1373 = vset.pattern.permute.xlu0 %v1437_v46 }
  0x26   : > { %1295 = vmatpush3.bf16.msra.mxu0 %v1381_v47 }
  0x27   : > { %1300 = vmatprep.subr.bf16.mxu0 %v1432_v0 }
  0xe1   : > { %v461_v6 = vpop.f32.mrf.mxu0 }
  0xe2   : > { %v468_v7 = vsel %vm467_vm2, %v461_v6, -inf }
  0xe3   : > { %469 = vmax.xlane.f32.xlu0 %v468_v7  ;;  %v1274_v8 = vpop.f32.mrf.mxu0 }
  0xe4   : > { %v1384_v8 = vld [vmem:[%s1536_s15 + $0x20] ss:$0 sps:$4 sm:$0x33]  }
  0xe5   : > { %v464_v9 = vpop.f32.mrf.mxu0 }
  0xe6   : > { %v770_v9 = vand.u32 %v1384_v8, %v1539_v19 }
  0xe7   : > { %v1275_v10 = vpop.f32.mrf.mxu0 }
  0xe8   : > { %v1385_v10 = vld [vmem:[%s1536_s15 + $0x18] sm:$0xff]  }
 0x16c   : > { %v470_v11 = vpop.xlane.xlu0 %469 }
 0x16d   : > { %v471_v12 = vsub.f32 %v461_v6, %v470_v11 }
 0x16f   : > { %v472_v13 = vmul.f32 1.442695, %v471_v12  ;;  %v1386_v12 = vld [vmem:[%s1511_s8 + $0x2c] ss:$0 sps:$4 sm:$0x33]   ;;  %s1187_s8 = sshll.u32 %s1653_s24, 2 }
 0x170   : > { %v834_v16 = vsel %vm417_vm1, %v1386_v12, 0  ;;  %s396_s11 = scalar_lea.vmem %s1646_s6, %s1187_s8  ;;  %s403_s24 = scalar_lea.vmem %s1647_s7, %s1187_s8 }
 0x171   : > { %1392 = vpow2.f32 %v472_v13 }
 0x17e   : > { %v1393_v14 = vpop.eup %1392 }
 0x17f   : > { %v474_v15 = vsel %vm467_vm2, %v1393_v14, 0.0 }
 0x180   : > { %475 = vadd.xlane.f32.xlu0 %v474_v15 }
 0x209   : > { %v476_v22 = vpop.xlane.xlu0 %475 }
 0x20a   : > { %1394 = vrcp.f32 %v476_v22 }
 0x217   : > { %v1395_v24 = vpop.eup %1394 }
 0x218   : > { %v478_v25 = vmul.f32 %v1395_v24, %v1393_v14 }
 0x21a   : > { %v479_v26 = vpack.c.bf16 %v478_v25, %v478_v25 }
 0x21c   : > { %1281 = vmatmul.mubr.msk.bf16.vlgmr.msra.gmra.mxu1 %vm467_vm2, %v479_v26 }
 0x21d   : > { %1285 = vmatpush3.bf16.xpose.msra.mxu1 %v564_v27  ;;  %1288 = vmatprep.mubr.msk.bf16.mxu1 %vm1433_vm0, %v1432_v0 }
 0x21e   : > { %1286 = vmatprep.subr.bf16.mxu1 %v1432_v0 }
 0x225   : > { %1287 = vmatpush3.bf16.xpose.msra.mxu1 %v561_v29 }
 0x226   : > { %1308 = vmatprep.subr.bf16.mxu1 %v1432_v0 }
 0x22c   : > { %1289 = vmatmul.mubr.msk.bf16.vlgmr.msra.gmra.mxu1 %vm417_vm1, %v1195_v30 }
 0x22d   : > { %1312 = vmatprep.mubr.msk.bf16.mxu1 %vm1433_vm0, %v1432_v0  ;;  %1309 = vmatpush3.bf16.msra.mxu1 %v770_v9 }
 0x22e   : > { %1310 = vmatprep.subr.bf16.mxu1 %v1432_v0 }
 0x231   : > { %1311 = vmatpush3.bf16.msra.mxu1 %v1385_v10 }
 0x232   : > { %1316 = vmatprep.subr.bf16.mxu1 %v1432_v0 }
 0x2dc   : > { %v1558_v31 = vpop.f32.mrf.mxu1 }
 0x2de   : > { %v1282_v32 = vpop.f32.mrf.mxu1 }
 0x2e0   : > { %v539_v33 = vpop.f32.mrf.mxu1 }
 0x2e2   : > { %v1283_v34 = vpop.f32.mrf.mxu1 }
 0x2ec   : > { %v600_v35 = vpop.f32.mrf.mxu1 }
 0x2ed   : > { %v606_v36 = vsel %vm467_vm2, %v600_v35, -inf }
 0x2ee   : > { %607 = vmax.xlane.f32.xlu1 %v606_v36  ;;  %v1290_v37 = vpop.f32.mrf.mxu1 }
 0x2ef   : > { %v1388_v37 = vld [vmem:[%s1536_s15 + $0x2c] ss:$0 sps:$4 sm:$0x33]  }
 0x2f0   : > { %v603_v38 = vpop.f32.mrf.mxu1 }
 0x2f2   : > { %v1291_v39 = vpop.f32.mrf.mxu1 }
 0x2f3   : > { %v905_v39 = vand.u32 %v1388_v37, %v1539_v19  ;;  %v1390_v19 = vld [vmem:[%s1644_s4 + $0x8] sm:$0xff]  }
 0x377   : > { %v608_v40 = vpop.xlane.xlu1 %607 }
 0x378   : > { %v609_v41 = vsub.f32 %v600_v35, %v608_v40  ;;  %v1389_v40 = vld [vmem:[%s1536_s15 + $0x24] sm:$0xff]  }
 0x37a   : > { %v610_v42 = vmul.f32 1.442695, %v609_v41 }
 0x37c   : > { %1396 = vpow2.f32 %v610_v42 }
 0x389   : > { %v1397_v43 = vpop.eup %1396 }
 0x38a   : > { %v612_v44 = vsel %vm467_vm2, %v1397_v43, 0.0 }
 0x38b   : > { %613 = vadd.xlane.f32.xlu1 %v612_v44 }
 0x414   : > { %v614_v48 = vpop.xlane.xlu1 %613 }
 0x415   : > { %1398 = vrcp.f32 %v614_v48  ;;  %v1032_v48 = vld [vmem:[%s371_s29] sm:$0xff] }
 0x422   : > { %v1399_v50 = vpop.eup %1398 }
 0x423   : > { %v616_v51 = vmul.f32 %v1399_v50, %v1397_v43 }
 0x425   : > { %v617_v52 = vpack.c.bf16 %v616_v51, %v616_v51  ;;  %v1033_v51 = vsub.f32 1.0, %v1032_v48 }
 0x427   : > { %1297 = vmatmul.mubr.msk.bf16.vlgmr.msra.gmra.mxu0 %vm467_vm2, %v617_v52 }
 0x428   : > { %1301 = vmatpush3.bf16.xpose.msra.mxu0 %v699_v53  ;;  %1304 = vmatprep.mubr.msk.bf16.mxu0 %vm1433_vm0, %v1432_v0 }
 0x429   : > { %1302 = vmatprep.subr.bf16.mxu0 %v1432_v0 }
 0x430   : > { %1303 = vmatpush3.bf16.xpose.msra.mxu0 %v696_v55  ;;  %v542_v55 = vpack.c.bf16 %v1558_v31, %v1558_v31 }
 0x431   : > { %1324 = vmatprep.subr.bf16.mxu0 %v1432_v0 }
 0x437   : > { %1305 = vmatmul.mubr.msk.bf16.vlgmr.msra.gmra.mxu0 %vm417_vm1, %v1208_v56 }
 0x438   : > { %1328 = vmatprep.mubr.msk.bf16.mxu0 %vm1433_vm0, %v1432_v0  ;;  %1325 = vmatpush3.bf16.msra.mxu0 %v905_v39 }
 0x439   : > { %1326 = vmatprep.subr.bf16.mxu0 %v1432_v0 }
 0x43c   : > { %1327 = vmatpush3.bf16.msra.mxu0 %v1389_v40 }
 0x43d   : > { %1332 = vmatprep.subr.bf16.mxu0 %v1432_v0 }
 0x4e7   : > { %v671_v57 = vpop.f32.mrf.mxu0 }
 0x4e8   : > { %v677_v30 = vpack.c.bf16 %v671_v57, %v671_v57 }
 0x4e9   : > { %v1298_v58 = vpop.f32.mrf.mxu0 }
 0x4eb   : > { %v674_v59 = vpop.f32.mrf.mxu0 }
 0x4ed   : > { %v1299_v60 = vpop.f32.mrf.mxu0 }
 0x4ee   : > { %v1234_v60 = vld [vmem:[%s1645_s5] ss:$0 sm:$0xff] }
 0x4f7   : > { %v735_v61 = vpop.f32.mrf.mxu0 }
 0x4f8   : > { %v741_v62 = vsel %vm467_vm2, %v735_v61, -inf }
 0x4f9   : > { %742 = vmax.xlane.f32.xlu0 %v741_v62  ;;  %v1306_v63 = vpop.f32.mrf.mxu0 }
 0x4fb   : > { %v738_v1 = vpop.f32.mrf.mxu0 }
 0x4fd   : > { %v1307_v2 = vpop.f32.mrf.mxu0 }
 0x582   : > { %v743_v3 = vpop.xlane.xlu0 %742 }
 0x583   : > { %v744_v4 = vsub.f32 %v735_v61, %v743_v3  ;;  %v1040_v61 = vld [vmem:[%s396_s11] sm:$0xf] }
 0x584   : > { %v1041_v1 = vunpack.c.l.bf16 %v1040_v61 }
 0x585   : > { %v745_v5 = vmul.f32 1.442695, %v744_v4 }
 0x587   : > { %1400 = vpow2.f32 %v745_v5 }
 0x594   : > { %v1401_v6 = vpop.eup %1400 }
 0x595   : > { %v747_v7 = vsel %vm467_vm2, %v1401_v6, 0.0 }
 0x596   : > { %748 = vadd.xlane.f32.xlu1 %v747_v7 }
 0x61f   : > { %v749_v11 = vpop.xlane.xlu1 %748 }
 0x620   : > { %1402 = vrcp.f32 %v749_v11 }
 0x62d   : > { %v1403_v13 = vpop.eup %1402 }
 0x62e   : > { %v751_v14 = vmul.f32 %v1403_v13, %v1401_v6 }
 0x630   : > { %v752_v15 = vpack.c.bf16 %v751_v14, %v751_v14 }
 0x632   : > { %1313 = vmatmul.mubr.msk.bf16.vlgmr.msra.gmra.mxu1 %vm467_vm2, %v752_v15 }
 0x633   : > { %1317 = vmatpush3.bf16.xpose.msra.mxu1 %v834_v16  ;;  %1320 = vmatprep.mubr.msk.bf16.mxu1 %vm1433_vm0, %v1432_v0 }
 0x634   : > { %1318 = vmatprep.subr.bf16.mxu1 %v1432_v0 }
 0x63b   : > { %1319 = vmatpush3.bf16.xpose.msra.mxu1 %v831_v18 }
 0x642   : > { %1321 = vmatmul.mubr.msk.bf16.vlgmr.msra.gmra.mxu1 %vm417_vm1, %v1221_v20 }
 0x6f2   : > { %v806_v21 = vpop.f32.mrf.mxu1 }
 0x6f3   : > { %v812_v38 = vpack.c.bf16 %v806_v21, %v806_v21 }
 0x6f4   : > { %v1314_v22 = vpop.f32.mrf.mxu1 }
 0x6f6   : > { %v809_v23 = vpop.f32.mrf.mxu1 }
 0x6f8   : > { %v1315_v24 = vpop.f32.mrf.mxu1 }
 0x702   : > { %v870_v25 = vpop.f32.mrf.mxu1 }
 0x703   : > { %v876_v26 = vsel %vm467_vm2, %v870_v25, -inf }
 0x704   : > { %877 = vmax.xlane.f32.xlu0 %v876_v26  ;;  %v1322_v27 = vpop.f32.mrf.mxu1 }
 0x706   : > { %v873_v28 = vpop.f32.mrf.mxu1 }
 0x708   : > { %v1323_v29 = vpop.f32.mrf.mxu1 }
 0x71a   : > { %949 = vrot.lane.b32.xlu0 %v677_v30, %s1435_s16 }
 0x78d   : > { %v878_v32 = vpop.xlane.xlu0 %877 }
 0x78e   : > { %v879_v33 = vsub.f32 %v870_v25, %v878_v32 }
 0x790   : > { %v880_v34 = vmul.f32 1.442695, %v879_v33 }
 0x792   : > { %1404 = vpow2.f32 %v880_v34 }
 0x79f   : > { %v1405_v35 = vpop.eup %1404 }
 0x7a0   : > { %v882_v36 = vsel %vm467_vm2, %v1405_v35, 0.0 }
 0x7a1   : > { %883 = vadd.xlane.f32.xlu1 %v882_v36 }
 0x7b2   : > { %952 = vrot.lane.b32.xlu1 %v812_v38, %s1436_s17 }
 0x82a   : > { %v884_v41 = vpop.xlane.xlu1 %883 }
 0x82b   : > { %1406 = vrcp.f32 %v884_v41 }
 0x82e   : > { %v953_v54 = vpop.permute.xlu1 %952 }
 0x838   : > { %v1407_v42 = vpop.eup %1406 }
 0x839   : > { %v886_v43 = vmul.f32 %v1407_v42, %v1405_v35 }
 0x83b   : > { %v887_v44 = vpack.c.bf16 %v886_v43, %v886_v43 }
 0x83d   : > { %1329 = vmatmul.mubr.msk.bf16.vlgmr.msra.gmra.mxu0 %vm467_vm2, %v887_v44 }
 0x83e   : > { %1336 = vmatprep.mubr.msk.bf16.mxu0 %vm1433_vm0, %v1432_v0  ;;  %1333 = vmatpush3.bf16.msra.mxu0 %v1390_v19 }
 0x83f   : > { %1334 = vmatprep.subr.bf16.mxu0 %v1432_v0  ;;  %v950_v0 = vpop.permute.xlu0 %949 }
 0x840   : > { %v959_v56 = vsel %vm417_vm1, %v542_v55, %v950_v0 }
 0x841   : > { %v962_v57 = vsel %vm960_vm5, %v959_v56, %v953_v54 }
 0x842   : > { %1335 = vmatpush3.bf16.msra.mxu0 %v1391_v45 }
 0x8fd   : > { %v941_v47 = vpop.f32.mrf.mxu0 }
 0x8fe   : > { %v947_v49 = vpack.c.bf16 %v941_v47, %v941_v47 }
 0x8ff   : > { %v1330_v50 = vpop.f32.mrf.mxu0 }
 0x900   : > { %955 = vrot.lane.b32.xlu1 %v947_v49, %s1438_s30 }
 0x901   : > { %v944_v52 = vpop.f32.mrf.mxu0 }
 0x903   : > { %v1331_v53 = vpop.f32.mrf.mxu0 }
 0x904   : > { %1036 = vperm.xlu1 %1372, %v1033_v51  }
 0x972   : > { %v956_v58 = vpop.permute.xlu1 %955 }
 0x973   : > { %v965_v59 = vsel %vm963_vm6, %v962_v57, %v956_v58 }
 0x974   : > { %1337 = vmatmul.mubr.msk.bf16.vlgmr.msra.gmra.mxu0 %vm989_vm7, %v965_v59 }
 0x97f   : > { %v1037_v62 = vpop.permute.xlu1 %1036 }
 0xa34   : > { %v1026_v31 = vpop.f32.mrf.mxu0 }
 0xa35   : > { %v1027_v63 = vadd.f32 %v1234_v60, %v1026_v31 }
 0xa36   : > { %v1338_v2 = vpop.f32.mrf.mxu0 }
 0xa37   : > { %v1039_v3 = vmul.f32 %v1037_v62, %v1027_v63 }
 0xa38   : > { %v1029_v4 = vpop.f32.mrf.mxu0 }
 0xa39   : > { %v1042_v5 = vadd.f32 %v1041_v1, %v1039_v3 }
 0xa3a   : > { %v1339_v6 = vpop.f32.mrf.mxu0 }
 0xa3b   : > { %v1043_v7 = vpack.c.bf16 %v1042_v5, %v1042_v5 }
 0xa3d   : > { %1045 = vst.msk [vmem:[%s403_s24] sm:$0xf] %vm1044_vm8, %v1043_v7 }
 0xa3e PF: > { %s17_s26 = sadd.s32 1, %s1430_s26   ;;  %s1648_s24 = smov %s1426_s25 }
 0xa3f   : > { %p14_p5 = scmp.ge.s32.totalorder %s17_s26, 4   ;;  %s1649_s25 = smov %s1651_s27 }
 0xa41   :  { %16 = sbr.rel (!%p14_p5) target bundleno = 2 (0x2), region = 99 }

// kernel: text2image_forward.31
= control target key start
LH: loop header
LB: loop body
LE: loop exit
PB: predicated region body
PF: predicated region fallthrough
CT: control target
= control target key end

     0   :  { %v261_v0 = vmov 0.0   ;;  %vm262_vm0 = vmmov 0   ;;  %v263_v2 = vmov 0   ;;  %s336_s1 = inlined_call_operand.vmem [shape: bf16[128,128], index: 1, kind: input, shape index: {}]   ;;  %s337_s4 = inlined_call_operand.vmem [shape: f32[16,1], index: 4, kind: input, shape index: {}]   ;;  %s338_s0 = inlined_call_operand.vmem [shape: bf16[16,128], index: 0, kind: input, shape index: {}]   ;;  %s339_s2 = inlined_call_operand.vmem [shape: f32[1,128], index: 2, kind: input, shape index: {}]   ;;  %s340_s3 = inlined_call_operand.vmem [shape: bf16[16,128], index: 3, kind: input, shape index: {}]   ;;  %s341_s5 = inlined_call_operand.vmem [shape: bf16[16,128], index: 5, kind: output, shape index: {}]  }
   0x1   :  { %228 = vmatprep.subr.bf16.mxu0 %v261_v0  ;;  %v252_v1 = vld [vmem:[%s336_s1 + $0x38] sm:$0xff]   ;;  %244 = vmatprep.mubr.msk.bf16.mxu0 %vm262_vm0, %v261_v0  ;;  %v253_v3 = vld [vmem:[%s336_s1 + $0x30] sm:$0xff]   ;;  %v254_v4 = vld [vmem:[%s336_s1 + $0x28] sm:$0xff]  }
   0x2   :  { %251 = vset.pattern.permute.xlu0 %v263_v2  ;;  %229 = vmatpush3.bf16.msra.mxu0 %v252_v1  ;;  %v166_v5 = vld [vmem:[%s337_s4] sm:$0xff]  ;;  %v167_v6 = vld [vmem:[%s337_s4 + $0x8] sm:$0xff]  ;;  %v256_v10 = vld [vmem:[%s336_s1 + $0x18] sm:$0xff]  }
   0x3   :  { %230 = vmatprep.subr.bf16.mxu0 %v261_v0  ;;  %v255_v7 = vld [vmem:[%s336_s1 + $0x20] sm:$0xff]   ;;  %v168_v8 = vsub.f32 1.0, %v166_v5  ;;  %v169_v9 = vsub.f32 1.0, %v167_v6  ;;  %v257_v11 = vld [vmem:[%s336_s1 + $0x10] sm:$0xff]   ;;  %v258_v12 = vld [vmem:[%s336_s1 + $0x8] sm:$0xff]  }
   0x4   :  { %v259_v13 = vld [vmem:[%s336_s1] sm:$0xff]  }
   0x5   :  { %172 = vperm.xlu0 %251, %v168_v8   ;;  %v260_v14 = vld [vmem:[%s338_s0] sm:$0xff]  }
   0x6   :  { %231 = vmatpush3.bf16.msra.mxu0 %v253_v3  ;;  %v205_v15 = vld [vmem:[%s339_s2] ss:$0 sm:$0xff] }
   0x7   :  { %232 = vmatprep.subr.bf16.mxu0 %v261_v0  ;;  %v211_v16 = vld [vmem:[%s340_s3] sm:$0xff]  }
   0x8   :  { %v212_v19 = vunpack.c.l.bf16 %v211_v16  ;;  %v213_v22 = vunpack.c.h.bf16 %v211_v16 }
   0x9   :  { %177 = vperm.xlu0 %251, %v169_v9  }
   0xa   :  { %233 = vmatpush3.bf16.msra.mxu0 %v254_v4 }
   0xb   :  { %234 = vmatprep.subr.bf16.mxu0 %v261_v0 }
   0xe   :  { %235 = vmatpush3.bf16.msra.mxu0 %v255_v7 }
   0xf   :  { %236 = vmatprep.subr.bf16.mxu0 %v261_v0 }
  0x12   :  { %237 = vmatpush3.bf16.msra.mxu0 %v256_v10 }
  0x13   :  { %238 = vmatprep.subr.bf16.mxu0 %v261_v0 }
  0x16   :  { %239 = vmatpush3.bf16.msra.mxu0 %v257_v11 }
  0x17   :  { %240 = vmatprep.subr.bf16.mxu0 %v261_v0 }
  0x1a   :  { %241 = vmatpush3.bf16.msra.mxu0 %v258_v12 }
  0x1b   :  { %242 = vmatprep.subr.bf16.mxu0 %v261_v0 }
  0x1e   :  { %243 = vmatpush3.bf16.msra.mxu0 %v259_v13 }
  0x21   :  { %245 = vmatmul.mubr.bf16.vlgmr.msra.gmra.mxu0 %v260_v14 }
  0x80   :  { %v173_v20 = vpop.permute.xlu0 %172 }
  0x84   :  { %v178_v28 = vpop.permute.xlu0 %177 }
  0xe1   :  { %v135_v17 = vpop.f32.mrf.mxu0 }
  0xe2   :  { %v158_v18 = vadd.f32 %v205_v15, %v135_v17 }
  0xe3   :  { %v246_v21 = vpop.f32.mrf.mxu0 }
  0xe4   :  { %v164_v24 = vadd.f32 %v212_v19, %v158_v18 }
  0xe5   :  { %v138_v23 = vpop.f32.mrf.mxu0 }
  0xe6   :  { %v159_v25 = vadd.f32 %v205_v15, %v138_v23  ;;  %v180_v29 = vmul.f32 %v173_v20, %v164_v24 }
  0xe7   :  { %v247_v26 = vpop.f32.mrf.mxu0 }
  0xe8   :  { %v165_v27 = vadd.f32 %v213_v22, %v159_v25 }
  0xea   :  { %v181_v30 = vmul.f32 %v178_v28, %v165_v27 }
  0xec   :  { %v217_v31 = vpack.c.bf16 %v181_v30, %v180_v29 }
  0xee   :  { %218 = vst [vmem:[%s341_s5] sm:$0xff] %v217_v31  }

// kernel: text2image_forward.41
= control target key start
LH: loop header
LB: loop body
LE: loop exit
PB: predicated region body
PF: predicated region fallthrough
CT: control target
= control target key end

     0   :  { %s519_s9 = smov 0   ;;  %s521_s10 = smov 0   ;;  %s555_s0 = inlined_call_operand.vmem [shape: bf16[2,16,32], index: 0, kind: input, shape index: {}]   ;;  %s556_s1 = inlined_call_operand.vmem [shape: bf16[2,32,128], index: 1, kind: input, shape index: {}]   ;;  %s557_s2 = inlined_call_operand.vmem [shape: f32[2,16,128], index: 2, kind: output, shape index: {}]  }
   0x1   :  { %s523_s11 = smov 0  }
   0x2 LB: > { %s31_s12 = sadd.s32 1, %s496_s10  ;;  %p422_p0 = scmp.ge.s32.totalorder %s500_s11, 1  ;;  %s500_s11 = sphi %s523_s11, %s12_s11   ;;  %s496_s10 = sphi %s521_s10, %s559_s10   ;;  %s492_s9 = sphi %s519_s9, %s558_s9  }
   0x3   : > { %p33_p1 = scmp.ge.s32.totalorder %s31_s12, 2  ;;  %p157_p2 = scmp.lt.s32.totalorder %s500_s11, 3 }
   0x5   : > { %s561_s12 = smov (%p33_p1, %s31_s12), 0  ;;  %p158_p3 = pnand %p422_p0, %p157_p2 }
   0x6   : > { %p199_p4 = scmp.lt.s32.totalorder (!%p158_p3), %s492_s9, 1 }
   0x7   : > { %161 = sbr.rel (%p158_p3) target bundleno = 222 (0xde), region = 28 }
   0xc   : > { %v502_v0 = vmov 0.0   ;;  %vm503_vm0 = vmmov 0   ;;  %s563_s9 = smov (!%p199_p4, %s492_s9), 1  ;;  %vm253_vm1 = vcmask 261120  }
   0xd   : > { %441 = vmatprep.subr.bf16.mxu0 %v502_v0  ;;  %445 = vmatprep.mubr.msk.bf16.mxu0 %vm503_vm0, %v502_v0  ;;  %s436_s13 = sshll.u32 %s563_s9, 4  ;;  %s435_s14 = sshll.u32 %s563_s9, 3 }
   0xe   : > { %s215_s17 = scalar_lea.vmem %s556_s1, %s436_s13  ;;  %s206_s20 = scalar_lea.vmem %s555_s0, %s435_s14 }
   0xf   : > { %v475_v1 = vld [vmem:[%s215_s17 + $0x8] sm:$0xff]   ;;  %v476_v2 = vld [vmem:[%s215_s17] sm:$0xff]   ;;  %s227_s23 = scalar_lea.vmem %s557_s2, %s436_s13 }
  0x10   : > { %442 = vmatpush3.bf16.msra.mxu0 %v475_v1  ;;  %v477_v3 = vld [vmem:[%s206_s20] sm:$0xff]  }
  0x11   : > { %443 = vmatprep.subr.bf16.mxu0 %v502_v0 }
  0x14   : > { %444 = vmatpush3.bf16.msra.mxu0 %v476_v2 }
  0x17   : > { %446 = vmatmul.mubr.msk.bf16.vlgmr.msra.gmra.mxu0 %vm253_vm1, %v477_v3 }
  0xd7   : > { %v291_v4 = vpop.f32.mrf.mxu0 }
  0xd8   : > { %298 = vst [vmem:[%s227_s23] sm:$0xff] %v291_v4 }
  0xd9   : > { %v447_v5 = vpop.f32.mrf.mxu0 }
  0xdb   : > { %v294_v6 = vpop.f32.mrf.mxu0 }
  0xdc   : > { %299 = vst [vmem:[%s227_s23 + $0x8] sm:$0xff] %v294_v6 }
  0xdd   : > { %v448_v7 = vpop.f32.mrf.mxu0 }
  0xde PF: > { %s12_s11 = sadd.s32 1, %s500_s11   ;;  %s558_s9 = smov %s496_s10 }
  0xdf   : > { %p9_p5 = scmp.ge.s32.totalorder %s12_s11, 4   ;;  %s559_s10 = smov %s561_s12 }
  0xe1   :  { %11 = sbr.rel (!%p9_p5) target bundleno = 2 (0x2), region = 61 }

// kernel: text2image_forward.39
= control target key start
LH: loop header
LB: loop body
LE: loop exit
PB: predicated region body
PF: predicated region fallthrough
CT: control target
= control target key end

     0   :  { %s1033_s12 = smov 0   ;;  %s1035_s13 = smov 0   ;;  %s1236_s0 = inlined_call_operand.vmem [shape: bf16[2,4,8,192], index: 0, kind: input, shape index: {}]   ;;  %s1237_s1 = inlined_call_operand.vmem [shape: bf16[3,192,128], index: 1, kind: input, shape index: {}]   ;;  %s1238_s2 = inlined_call_operand.vmem [shape: f32[1,128], index: 2, kind: input, shape index: {}]   ;;  %s1239_s3 = inlined_call_operand.vmem [shape: bf16[2,2,8,128], index: 3, kind: output, shape index: {}]  }
   0x1   :  { %s1037_s14 = smov 0  }
   0x2 LB: > { %s25_s15 = sadd.s32 1, %s1006_s13  ;;  %p809_p0 = scmp.ge.s32.totalorder %s1010_s14, 1  ;;  %s1010_s14 = sphi %s1037_s14, %s13_s14   ;;  %s1006_s13 = sphi %s1035_s13, %s1241_s13   ;;  %s1002_s12 = sphi %s1033_s12, %s1240_s12  }
   0x3   : > { %p27_p1 = scmp.ge.s32.totalorder %s25_s15, 2  ;;  %p168_p2 = scmp.lt.s32.totalorder %s1010_s14, 3 }
   0x5   : > { %s1243_s15 = smov (%p27_p1, %s25_s15), 0  ;;  %p169_p3 = pnand %p809_p0, %p168_p2 }
   0x6   : > { %p202_p4 = scmp.lt.s32.totalorder (!%p169_p3), %s1002_s12, 1 }
   0x7   : > { %172 = sbr.rel (%p169_p3) target bundleno = 315 (0x13b), region = 32 }
   0xc   : > { %v946_v0 = vld [vmem:[%s1237_s1 + $0x98] sm:$0xff]   ;;  %v1012_v1 = vmov 0   ;;  %v948_v3 = vld [vmem:[%s1237_s1 + $0x90] sm:$0xff]   ;;  %v950_v5 = vld [vmem:[%s1237_s1 + $0x88] sm:$0xff]   ;;  %s1245_s12 = smov (!%p202_p4, %s1002_s12), 1  ;;  %vm358_vm0 = vcmask 523264  }
   0xd   : > { %362 = vmatprep.subr.bf16.mxu0 %v1012_v1  ;;  %487 = vmatprep.subr.bf16.mxu1 %v1012_v1  ;;  %v947_v2 = vld [vmem:[%s1237_s1 + $0x38] sm:$0xff]   ;;  %v949_v4 = vld [vmem:[%s1237_s1 + $0x30] sm:$0xff]   ;;  %v951_v6 = vld [vmem:[%s1237_s1 + $0x28] sm:$0xff]   ;;  %s914_s11 = sshll.u32 %s1245_s12, 5  ;;  %s915_s26 = sshll.u32 %s1245_s12, 3 }
   0xe   : > { %363 = vmatpush1.bf16.msra.mxu0 %v946_v0  ;;  %488 = vmatpush1.bf16.msra.mxu1 %v947_v2  ;;  %v952_v7 = vld [vmem:[%s1237_s1 + $0x80] sm:$0xff]   ;;  %v954_v9 = vld [vmem:[%s1237_s1 + $0x78] sm:$0xff]   ;;  %v956_v11 = vld [vmem:[%s1237_s1 + $0x70] sm:$0xff]   ;;  %s1109_s20 = scalar_lea.vmem %s1236_s0, %s914_s11  ;;  %s221_s28 = scalar_lea.vmem %s1239_s3, %s915_s26 }
   0xf   : > { %364 = vmatprep.subr.bf16.mxu0 %v1012_v1  ;;  %489 = vmatprep.subr.bf16.mxu1 %v1012_v1  ;;  %v953_v8 = vld [vmem:[%s1237_s1 + $0x20] sm:$0xff]   ;;  %v955_v10 = vld [vmem:[%s1237_s1 + $0x18] sm:$0xff]   ;;  %v957_v12 = vld [vmem:[%s1237_s1 + $0x10] sm:$0xff]  }
  0x10   : > { %v958_v13 = vld [vmem:[%s1237_s1 + $0x68] sm:$0xff]   ;;  %v1121_v16 = vld [vmem:[%s1109_s20 + $0x10] sm:$0xff]  ;;  %v223_v17 = vld [vmem:[%s1109_s20] sm:$0xff] }
  0x11   : > { %v959_v14 = vld [vmem:[%s1237_s1 + $0x8] sm:$0xff]   ;;  %v960_v20 = vld [vmem:[%s1237_s1 + $0x60] sm:$0xff]   ;;  %v962_v22 = vld [vmem:[%s1237_s1 + $0xb8] sm:$0xff]  }
  0x12   : > { %365 = vmatpush1.bf16.msra.mxu0 %v948_v3  ;;  %490 = vmatpush1.bf16.msra.mxu1 %v949_v4  ;;  %v814_v15 = vld [vmem:[%s1109_s20 + $0x8] sm:$0xff]  ;;  %v961_v21 = vld [vmem:[%s1237_s1] sm:$0xff]   ;;  %v963_v23 = vld [vmem:[%s1237_s1 + $0x58] sm:$0xff]  }
  0x13   : > { %366 = vmatprep.subr.bf16.mxu0 %v1012_v1  ;;  %491 = vmatprep.subr.bf16.mxu1 %v1012_v1  ;;  %v841_v18 = vcombine.high %v814_v15, %v1121_v16  ;;  %v856_v19 = vcombine.high %v223_v17, %v814_v15  ;;  %v964_v24 = vld [vmem:[%s1237_s1 + $0xb0] sm:$0xff]   ;;  %v966_v26 = vld [vmem:[%s1237_s1 + $0xa8] sm:$0xff]   ;;  %v968_v28 = vld [vmem:[%s1237_s1 + $0xa0] sm:$0xff]   ;;  %v840_v31 = vcombine.low %v814_v15, %v1121_v16 }
  0x14   : > { %v965_v25 = vld [vmem:[%s1237_s1 + $0x50] sm:$0xff]   ;;  %v967_v27 = vld [vmem:[%s1237_s1 + $0x48] sm:$0xff]   ;;  %v969_v29 = vld [vmem:[%s1237_s1 + $0x40] sm:$0xff]   ;;  %v855_v32 = vcombine.low %v223_v17, %v814_v15 }
  0x15   : > { %854 = vmatprep.mubr.msk.bf16.mxu0 %vm358_vm0, %v841_v18  ;;  %869 = vmatprep.mubr.msk.bf16.mxu1 %vm358_vm0, %v856_v19  ;;  %v871_v30 = vld [vmem:[%s1109_s20 + $0x18] sm:$0xff]  ;;  %v975_v35 = vld [vmem:[%s1237_s1 + $0xf0] sm:$0xff]   ;;  %v976_v36 = vld [vmem:[%s1237_s1 + $0xe8] sm:$0xff]  }
  0x16   : > { %367 = vmatpush1.bf16.msra.mxu0 %v950_v5  ;;  %492 = vmatpush1.bf16.msra.mxu1 %v951_v6  ;;  %v974_v33 = vld [vmem:[%s1237_s1 + $0xf8] sm:$0xff]   ;;  %v897_v34 = vcombine.high %v1121_v16, %v871_v30  ;;  %v977_v37 = vld [vmem:[%s1237_s1 + $0xe0] sm:$0xff]   ;;  %v979_v39 = vld [vmem:[%s1237_s1 + $0xd0] sm:$0xff]   ;;  %v896_v46 = vcombine.low %v1121_v16, %v871_v30 }
  0x17   : > { %368 = vmatprep.subr.bf16.mxu0 %v1012_v1  ;;  %493 = vmatprep.subr.bf16.mxu1 %v1012_v1  ;;  %v978_v38 = vld [vmem:[%s1237_s1 + $0xd8] sm:$0xff]   ;;  %v980_v40 = vld [vmem:[%s1237_s1 + $0xc8] sm:$0xff]   ;;  %v981_v41 = vld [vmem:[%s1237_s1 + $0xc0] sm:$0xff]  }
  0x18   : > { %v982_v42 = vld [vmem:[%s1237_s1 + $0x118] sm:$0xff]   ;;  %v983_v43 = vld [vmem:[%s1237_s1 + $0x110] sm:$0xff]   ;;  %v984_v44 = vld [vmem:[%s1237_s1 + $0x108] sm:$0xff]  }
  0x19   : > { %v985_v45 = vld [vmem:[%s1237_s1 + $0x100] sm:$0xff]  }
  0x1a   : > { %369 = vmatpush1.bf16.msra.mxu0 %v952_v7  ;;  %494 = vmatpush1.bf16.msra.mxu1 %v953_v8  ;;  %v911_v58 = vld [vmem:[%s1238_s2] ss:$0 sm:$0xff] }
  0x1b   : > { %370 = vmatprep.subr.bf16.mxu0 %v1012_v1  ;;  %495 = vmatprep.subr.bf16.mxu1 %v1012_v1 }
  0x1e   : > { %371 = vmatpush1.bf16.msra.mxu0 %v954_v9  ;;  %496 = vmatpush1.bf16.msra.mxu1 %v955_v10 }
  0x1f   : > { %372 = vmatprep.subr.bf16.mxu0 %v1012_v1  ;;  %497 = vmatprep.subr.bf16.mxu1 %v1012_v1 }
  0x22   : > { %373 = vmatpush1.bf16.msra.mxu0 %v956_v11  ;;  %498 = vmatpush1.bf16.msra.mxu1 %v957_v12 }
  0x23   : > { %374 = vmatprep.subr.bf16.mxu0 %v1012_v1  ;;  %499 = vmatprep.subr.bf16.mxu1 %v1012_v1 }
  0x26   : > { %375 = vmatpush1.bf16.msra.mxu0 %v958_v13  ;;  %500 = vmatpush1.bf16.msra.mxu1 %v959_v14 }
  0x27   : > { %376 = vmatprep.subr.bf16.mxu0 %v1012_v1  ;;  %501 = vmatprep.subr.bf16.mxu1 %v1012_v1 }
  0x2a   : > { %377 = vmatpush1.bf16.msra.mxu0 %v960_v20  ;;  %502 = vmatpush1.bf16.msra.mxu1 %v961_v21 }
  0x2b   : > { %386 = vmatprep.subr.bf16.mxu0 %v1012_v1  ;;  %511 = vmatprep.subr.bf16.mxu1 %v1012_v1 }
  0x2e   : > { %387 = vmatpush2.bf16.msra.mxu0 %v962_v22  ;;  %512 = vmatpush2.bf16.msra.mxu1 %v963_v23 }
  0x2f   : > { %388 = vmatprep.subr.bf16.mxu0 %v1012_v1  ;;  %513 = vmatprep.subr.bf16.mxu1 %v1012_v1 }
  0x32   : > { %389 = vmatpush2.bf16.msra.mxu0 %v964_v24  ;;  %514 = vmatpush2.bf16.msra.mxu1 %v965_v25 }
  0x33   : > { %390 = vmatprep.subr.bf16.mxu0 %v1012_v1  ;;  %515 = vmatprep.subr.bf16.mxu1 %v1012_v1 }
  0x36   : > { %391 = vmatpush2.bf16.msra.mxu0 %v966_v26  ;;  %516 = vmatpush2.bf16.msra.mxu1 %v967_v27 }
  0x37   : > { %392 = vmatprep.subr.bf16.mxu0 %v1012_v1  ;;  %517 = vmatprep.subr.bf16.mxu1 %v1012_v1 }
  0x3a   : > { %393 = vmatpush2.bf16.msra.mxu0 %v968_v28  ;;  %518 = vmatpush2.bf16.msra.mxu1 %v969_v29 }
  0x3b   : > { %640 = vmatprep.subr.bf16.mxu0 %v1012_v1 }
  0x3d   : > { %395 = vmatmul.mubr.bf16.vlgmr.msra.gmra.mxu0 %v840_v31  ;;  %520 = vmatmul.mubr.bf16.vlgmr.msra.gmra.mxu1 %v855_v32 }
  0x3e   : > { %641 = vmatpush1.bf16.msra.mxu0 %v974_v33  ;;  %910 = vmatprep.mubr.msk.bf16.mxu0 %vm358_vm0, %v897_v34 }
  0x3f   : > { %642 = vmatprep.subr.bf16.mxu0 %v1012_v1 }
  0x42   : > { %643 = vmatpush1.bf16.msra.mxu0 %v975_v35 }
  0x43   : > { %644 = vmatprep.subr.bf16.mxu0 %v1012_v1 }
  0x46   : > { %645 = vmatpush1.bf16.msra.mxu0 %v976_v36 }
  0x47   : > { %646 = vmatprep.subr.bf16.mxu0 %v1012_v1 }
  0x4a   : > { %647 = vmatpush1.bf16.msra.mxu0 %v977_v37 }
  0x4b   : > { %648 = vmatprep.subr.bf16.mxu0 %v1012_v1 }
  0x4e   : > { %649 = vmatpush1.bf16.msra.mxu0 %v978_v38 }
  0x4f   : > { %650 = vmatprep.subr.bf16.mxu0 %v1012_v1 }
  0x52   : > { %651 = vmatpush1.bf16.msra.mxu0 %v979_v39 }
  0x53   : > { %652 = vmatprep.subr.bf16.mxu0 %v1012_v1 }
  0x56   : > { %653 = vmatpush1.bf16.msra.mxu0 %v980_v40 }
  0x57   : > { %654 = vmatprep.subr.bf16.mxu0 %v1012_v1 }
  0x5a   : > { %655 = vmatpush1.bf16.msra.mxu0 %v981_v41 }
  0x5b   : > { %664 = vmatprep.subr.bf16.mxu0 %v1012_v1 }
  0x5e   : > { %665 = vmatpush2.bf16.msra.mxu0 %v982_v42 }
  0x5f   : > { %666 = vmatprep.subr.bf16.mxu0 %v1012_v1 }
  0x62   : > { %667 = vmatpush2.bf16.msra.mxu0 %v983_v43 }
  0x63   : > { %668 = vmatprep.subr.bf16.mxu0 %v1012_v1 }
  0x66   : > { %669 = vmatpush2.bf16.msra.mxu0 %v984_v44 }
  0x67   : > { %670 = vmatprep.subr.bf16.mxu0 %v1012_v1 }
  0x6a   : > { %671 = vmatpush2.bf16.msra.mxu0 %v985_v45 }
  0x6d   : > { %673 = vmatmul.mubr.bf16.vlgmr.msra.gmra.mxu0 %v896_v46 }
  0xfd   : > { %v396_v47 = vpop.f32.mrf.mxu0  ;;  %v521_v48 = vpop.f32.mrf.mxu1 }
  0xfe   : > { %v522_v55 = vadd.f32 %v521_v48, %v396_v47 }
  0xff   : > { %v398_v49 = vpop.f32.mrf.mxu0  ;;  %v523_v50 = vpop.f32.mrf.mxu1 }
 0x101   : > { %v399_v51 = vpop.f32.mrf.mxu0  ;;  %v524_v52 = vpop.f32.mrf.mxu1 }
 0x102   : > { %v525_v60 = vadd.f32 %v524_v52, %v399_v51 }
 0x103   : > { %v401_v53 = vpop.f32.mrf.mxu0  ;;  %v526_v54 = vpop.f32.mrf.mxu1 }
 0x12d   : > { %v674_v56 = vpop.f32.mrf.mxu0 }
 0x12e   : > { %v681_v57 = vadd.f32 %v674_v56, %v522_v55 }
 0x12f   : > { %v676_v59 = vpop.f32.mrf.mxu0 }
 0x130   : > { %v690_v62 = vadd.f32 %v911_v58, %v681_v57 }
 0x131   : > { %v677_v61 = vpop.f32.mrf.mxu0 }
 0x132   : > { %v682_v63 = vadd.f32 %v677_v61, %v525_v60  ;;  %v692_v2 = vmax.f32 %v690_v62, 0.0 }
 0x133   : > { %v679_v0 = vpop.f32.mrf.mxu0 }
 0x134   : > { %v691_v1 = vadd.f32 %v911_v58, %v682_v63 }
 0x136   : > { %v693_v3 = vmax.f32 %v691_v1, 0.0 }
 0x138   : > { %v919_v4 = vpack.c.bf16 %v693_v3, %v692_v2 }
 0x13a   : > { %920 = vst [vmem:[%s221_s28] sm:$0xff] %v919_v4  }
 0x13b PF: > { %s13_s14 = sadd.s32 1, %s1010_s14   ;;  %s1240_s12 = smov %s1006_s13 }
 0x13c   : > { %p10_p5 = scmp.ge.s32.totalorder %s13_s14, 4   ;;  %s1241_s13 = smov %s1243_s15 }
 0x13e   :  { %12 = sbr.rel (!%p10_p5) target bundleno = 2 (0x2), region = 72 }

</bundles_post_ra>
